<compile_context>
chip_gen: v7x
topology: tpu7x:2x2x1
jax: 0.10.0
libtpu: 0.0.40
codegen_flags: <defaults>
</compile_context>

<pallas_src>
import functools

import jax
import jax.numpy as jnp
from jax.experimental import pallas as pl
from jax.experimental.pallas import tpu as pltpu


# --------------------------------------------------------------------------------------
# Sizing helpers
# --------------------------------------------------------------------------------------

def _vmem_capacity_bytes():
    """Per-core VMEM capacity (64 MiB v7x, 128 MiB v5e/v6e); conservative fallback."""
    try:
        info = pltpu.get_tpu_info()
        cap = getattr(info, "vmem_capacity_bytes", None)
        if cap:
            return int(cap)
    except Exception:
        pass
    return 64 * 1024 * 1024


def _largest_divisor_leq(n, cap):
    cap = max(1, min(n, cap))
    for d in range(cap, 0, -1):
        if n % d == 0:
            return d
    return 1


def _pick_n_tile(N, HW, itemsize, block_budget_bytes):
    cap = max(1, block_budget_bytes // max(1, 8 * HW * itemsize))
    return _largest_divisor_leq(N, cap)


def _pick_c_tile(C, nt, HW, itemsize, block_budget_bytes):
    ct = block_budget_bytes // max(1, nt * HW * itemsize)
    if ct >= C:
        return C
    return min(C, max(8, (ct // 8) * 8))


def _vmem_limit(cap, needed_bytes):
    lim = max((cap * 3) // 4, needed_bytes + (4 << 20))
    return int(min(lim, (cap * 95) // 100))


# --------------------------------------------------------------------------------------
# Shared epilogue: 7x7 conv (flat layout) + train-mode BN + sigmoid
# --------------------------------------------------------------------------------------

def _conv_bn_sigmoid(padded, w_ref, masks, bn_ref, *, K, W, HW, PF, halo, eps):
    """7x7 (2->1 ch, bias-free) conv in flat (H*W-on-lanes) layout, BN, sigmoid.

    padded: (N, 2, HW + 2*PF) f32; pooled data at lanes [PF, PF+HW), zeros elsewhere.
    masks:  (K, 1, HW) f32; masks[kw] zeroes taps whose column falls outside its row
            (the flat layout would otherwise wrap those reads into the adjacent row).
    Row (kh) out-of-range taps land in the zero pad by construction (PF = halo*W + halo).
    """
    N = padded.shape[0]
    acc = jnp.zeros((N, 1, HW), jnp.float32)
    for kw in range(K):
        tmp = jnp.zeros((N, 1, HW), jnp.float32)
        for c in range(2):
            for kh in range(K):
                off = PF + (kh - halo) * W + (kw - halo)
                tap = w_ref[c * K * K + kh * K + kw]                 # SMEM scalar
                tmp = tmp + padded[:, c:c + 1, off:off + HW] * tap
        acc = acc + tmp * masks[kw:kw + 1]                           # one mask per kw
    # BatchNorm2d(1), training-mode (biased) batch statistics over N*H*W, then sigmoid.
    m = jnp.mean(acc, keepdims=True)
    v = jnp.mean((acc - m) ** 2, keepdims=True)
    y = (acc - m) * jax.lax.rsqrt(v + eps) * bn_ref[0] + bn_ref[1]
    return jax.nn.sigmoid(y)


# --------------------------------------------------------------------------------------
# Kernels
# --------------------------------------------------------------------------------------

def _sam_fused_kernel(x_ref, w_ref, bn_ref, mask_ref, o_ref, pad_ref,
                      *, C, K, W, HW, PF, halo, eps):
    """Single pass: pool -> conv -> BN -> sigmoid -> multiply, x resident in VMEM."""
    xt = x_ref[...].astype(jnp.float32)                      # (N, C, HW), lane-dense
    mx = jnp.max(xt, axis=1, keepdims=True)                  # (N, 1, HW)
    mn = jnp.sum(xt, axis=1, keepdims=True) * (1.0 / C)      # channel mean

    pad_ref[...] = jnp.zeros(pad_ref.shape, pad_ref.dtype)
    pad_ref[:, 0:1, PF:PF + HW] = mx
    pad_ref[:, 1:2, PF:PF + HW] = mn

    scale = _conv_bn_sigmoid(pad_ref[...], w_ref, mask_ref[...], bn_ref,
                             K=K, W=W, HW=HW, PF=PF, halo=halo, eps=eps)
    # Multiply in x's dtype (no f32 upcast of the bulk data).
    o_ref[...] = (x_ref[...] * scale.astype(x_ref.dtype)).astype(o_ref.dtype)


def _sam_scale_kernel(x_ref, w_ref, bn_ref, mask_ref, scale_ref, mx_ref, sm_ref, pad_ref,
                      *, C, K, W, HW, PF, halo, eps, ct, nt, n_nt):
    """Streaming (N-tile, C-tile) max/sum reduction; final step runs conv+BN+sigmoid."""
    i = pl.program_id(0)          # N-tile index
    j = pl.program_id(1)          # C-tile index (reduction axis, innermost)

    xt = x_ref[...].astype(jnp.float32)                      # (nt, ct, HW)
    if C % ct != 0:               # static branch: mask the ragged channel tail
        ch = jax.lax.broadcasted_iota(jnp.int32, (1, ct, 1), 1)
        valid = ch < (C - j * ct)
        t_max = jnp.max(jnp.where(valid, xt, -jnp.inf), axis=1, keepdims=True)
        t_sum = jnp.sum(jnp.where(valid, xt, 0.0), axis=1, keepdims=True)
    else:
        t_max = jnp.max(xt, axis=1, keepdims=True)
        t_sum = jnp.sum(xt, axis=1, keepdims=True)

    if n_nt == 1:                 # static: avoid dynamic scratch indexing when N untiled
        mx_view, sm_view = mx_ref, sm_ref
    else:
        mx_view = mx_ref.at[pl.ds(i * nt, nt)]
        sm_view = sm_ref.at[pl.ds(i * nt, nt)]

    @pl.when(j == 0)
    def _():
        mx_view[...] = t_max
        sm_view[...] = t_sum

    @pl.when(j > 0)
    def _():
        mx_view[...] = jnp.maximum(mx_view[...], t_max)
        sm_view[...] = sm_view[...] + t_sum

    @pl.when((i == pl.num_programs(0) - 1) & (j == pl.num_programs(1) - 1))
    def _():
        pad_ref[...] = jnp.zeros(pad_ref.shape, pad_ref.dtype)
        pad_ref[:, 0:1, PF:PF + HW] = mx_ref[...]
        pad_ref[:, 1:2, PF:PF + HW] = sm_ref[...] * (1.0 / C)
        scale_ref[...] = _conv_bn_sigmoid(pad_ref[...], w_ref, mask_ref[...], bn_ref,
                                          K=K, W=W, HW=HW, PF=PF, halo=halo, eps=eps)


def _sam_apply_kernel(x_ref, s_ref, o_ref):
    """out = scale * x; lane-dense, fully parallel grid; multiply in x's dtype."""
    s = s_ref[...]
    if s_ref.dtype != x_ref.dtype:
        s = s.astype(x_ref.dtype)
    o_ref[...] = (x_ref[...] * s).astype(o_ref.dtype)


# --------------------------------------------------------------------------------------
# Wrapper
# --------------------------------------------------------------------------------------

def _sam_forward(x, conv_w, bn_gamma, bn_beta, *, kernel_size=7, eps=1e-3,
                 force_two_pass=False, block_n=None, block_c=None):
    N, C, H, W = x.shape
    K = kernel_size
    halo = (K - 1) // 2
    HW = H * W
    PF = halo * W + halo              # flat zero-pad so every tap offset stays in-bounds
    Lp = HW + 2 * PF
    itemsize = jnp.dtype(x.dtype).itemsize

    # Small parameters -> SMEM (cheap scalar reads in-kernel).
    w_flat = conv_w.reshape(-1).astype(jnp.float32)                       # (2*K*K,)
    bn_par = jnp.stack([jnp.asarray(bn_gamma, jnp.float32).reshape(()),
                        jnp.asarray(bn_beta, jnp.float32).reshape(())])   # (2,)

    # Per-kw column-validity masks for the flat-layout conv (tiny, built once).
    cols = jnp.arange(HW, dtype=jnp.int32) % W
    col_mask = jnp.stack(
        [((cols >= (halo - kw)) & (cols < (W + halo - kw))).astype(jnp.float32)
         for kw in range(K)]).reshape(K, 1, HW)

    # VMEM-budget-driven sizing; always pass an explicit vmem_limit_bytes.
    cap = _vmem_capacity_bytes()
    budget = (cap * 3) // 4

    xf = x.reshape(N, C, HW)          # free row-major relayout outside the kernel
    x_bytes = N * C * HW * itemsize
    x_f32_bytes = N * C * HW * 4
    pad_bytes = N * 2 * Lp * 4
    small_bytes = pad_bytes + 2 * (K * HW * 4) + 2 * N * HW * 4

    fused_fits = (4 * x_bytes + x_f32_bytes + small_bytes + (2 << 20)) <= budget

    if fused_fits and not force_two_pass:
        # ---- Fused single-pass path: x read once from HBM, out written once ----------
        kernel = functools.partial(_sam_fused_kernel, C=C, K=K, W=W, HW=HW, PF=PF,
                                   halo=halo, eps=eps)
        needed = 4 * x_bytes + x_f32_bytes + small_bytes
        out = pl.pallas_call(
            kernel,
            out_shape=jax.ShapeDtypeStruct((N, C, HW), x.dtype),
            grid=(1,),
            in_specs=[
                pl.BlockSpec((N, C, HW), lambda i: (0, 0, 0)),
                pl.BlockSpec(memory_space=pltpu.MemorySpace.SMEM),    # conv taps
                pl.BlockSpec(memory_space=pltpu.MemorySpace.SMEM),    # [gamma, beta]
                pl.BlockSpec((K, 1, HW), lambda i: (0, 0, 0)),        # column masks
            ],
            out_specs=pl.BlockSpec((N, C, HW), lambda i: (0, 0, 0)),
            scratch_shapes=[pltpu.VMEM((N, 2, Lp), jnp.float32)],     # padded pooled map
            compiler_params=pltpu.CompilerParams(
                dimension_semantics=("arbitrary",),
                vmem_limit_bytes=_vmem_limit(cap, needed)),
        )(xf, w_flat, bn_par, col_mask)
        return out.reshape(N, C, H, W)

    # ---- Two-pass path (large x) ------------------------------------------------------
    # Kernel 1: streaming channel reduction -> scale (N, 1, HW).
    blk_budget1 = budget // 4                         # x2 double-buffer stays <= budget/2
    nt = block_n if block_n is not None else _pick_n_tile(N, HW, itemsize, blk_budget1)
    ct = block_c if block_c is not None else _pick_c_tile(C, nt, HW, itemsize, blk_budget1)
    assert N % nt == 0, "block_n must divide N"
    assert ct == C or ct % 8 == 0, "block_c must be a multiple of 8 (or the full C)"
    n_nt, n_ct = pl.cdiv(N, nt), pl.cdiv(C, ct)

    blk1 = nt * ct * HW * itemsize
    need1 = 2 * blk1 + nt * ct * HW * 4 + small_bytes + 2 * N * HW * 4
    kernel1 = functools.partial(_sam_scale_kernel, C=C, K=K, W=W, HW=HW, PF=PF,
                                halo=halo, eps=eps, ct=ct, nt=nt, n_nt=n_nt)
    scale = pl.pallas_call(
        kernel1,
        out_shape=jax.ShapeDtypeStruct((N, 1, HW), jnp.float32),
        grid=(n_nt, n_ct),
        in_specs=[
            pl.BlockSpec((nt, ct, HW), lambda i, j: (i, j, 0)),
            pl.BlockSpec(memory_space=pltpu.MemorySpace.SMEM),
            pl.BlockSpec(memory_space=pltpu.MemorySpace.SMEM),
            pl.BlockSpec((K, 1, HW), lambda i, j: (0, 0, 0)),
        ],
        out_specs=pl.BlockSpec((N, 1, HW), lambda i, j: (0, 0, 0)),
        scratch_shapes=[
            pltpu.VMEM((N, 1, HW), jnp.float32),      # running channel max
            pltpu.VMEM((N, 1, HW), jnp.float32),      # running channel sum
            pltpu.VMEM((N, 2, Lp), jnp.float32),      # flat zero-padded pooled map
        ],
        compiler_params=pltpu.CompilerParams(
            dimension_semantics=("arbitrary", "arbitrary"),
            vmem_limit_bytes=_vmem_limit(cap, need1)),
    )(xf, w_flat, bn_par, col_mask)

    # Kernel 2: out = scale * x. Large lane-dense blocks, fully parallel grid (megacore).
    blk_budget2 = (budget * 3) // 20
    nt2 = block_n if block_n is not None else _pick_n_tile(N, HW, itemsize, blk_budget2)
    ct2 = block_c if block_c is not None else _pick_c_tile(C, nt2, HW, itemsize, blk_budget2)
    assert N % nt2 == 0 and (ct2 == C or ct2 % 8 == 0)
    blk2 = nt2 * ct2 * HW * itemsize
    need2 = 4 * blk2 + 2 * nt2 * HW * 4
    out = pl.pallas_call(
        _sam_apply_kernel,
        out_shape=jax.ShapeDtypeStruct((N, C, HW), x.dtype),
        grid=(pl.cdiv(N, nt2), pl.cdiv(C, ct2)),
        in_specs=[
            pl.BlockSpec((nt2, ct2, HW), lambda i, j: (i, j, 0)),
            pl.BlockSpec((nt2, 1, HW), lambda i, j: (i, 0, 0)),
        ],
        out_specs=pl.BlockSpec((nt2, ct2, HW), lambda i, j: (i, j, 0)),
        compiler_params=pltpu.CompilerParams(
            dimension_semantics=("parallel", "parallel"),
            vmem_limit_bytes=_vmem_limit(cap, need2)),
    )(xf, scale)
    return out.reshape(N, C, H, W)


sam_forward = jax.jit(_sam_forward, static_argnames=(
    "kernel_size", "eps", "force_two_pass", "block_n", "block_c"))


# --------------------------------------------------------------------------------------
# Pure-JAX reference (mirrors the PyTorch SAM forward, train-mode BN)
# --------------------------------------------------------------------------------------

def _reference(x, conv_w, bn_gamma, bn_beta, *, kernel_size=7, eps=1e-3):
    K = kernel_size
    halo = (K - 1) // 2
    mx = jnp.max(x, axis=1, keepdims=True)
    mn = jnp.mean(x, axis=1, keepdims=True)
    pooled = jnp.concatenate([mx, mn], axis=1)                     # (N, 2, H, W)
    y = jax.lax.conv_general_dilated(
        pooled, conv_w.reshape(1, 2, K, K), window_strides=(1, 1),
        padding=[(halo, halo), (halo, halo)],
        dimension_numbers=("NCHW", "OIHW", "NCHW"),
        precision=jax.lax.Precision.HIGHEST)
    m = y.mean(axis=(0, 2, 3), keepdims=True)
    v = ((y - m) ** 2).mean(axis=(0, 2, 3), keepdims=True)
    ybn = (y - m) / jnp.sqrt(v + eps) * bn_gamma.reshape(1, -1, 1, 1) \
        + bn_beta.reshape(1, -1, 1, 1)
    return jax.nn.sigmoid(ybn) * x


if __name__ == "__main__":
    key = jax.random.PRNGKey(0)
    k1, k2, k3, k4, k5 = jax.random.split(key, 5)

    K = 7  # SAM default kernel_size
    conv_w = 0.1 * jax.random.normal(k2, (1, 2, K, K), jnp.float32)   # Conv2d(2,1,7) weight
    bn_gamma = 1.0 + 0.1 * jax.random.normal(k3, (1,), jnp.float32)
    bn_beta = 0.1 * jax.random.normal(k4, (1,), jnp.float32)

    # 1) Small shape -> fused single-pass path.
    x1 = jax.random.normal(k1, (2, 4, 16, 16), jnp.float32)
    out1 = jax.block_until_ready(sam_forward(x1, conv_w, bn_gamma, bn_beta, kernel_size=K))
    ref1 = _reference(x1, conv_w, bn_gamma, bn_beta, kernel_size=K)
    assert out1.shape == x1.shape, out1.shape
    if not bool(jnp.allclose(out1, ref1, atol=1e-3, rtol=1e-3)):
        raise AssertionError("Pallas SAM (fused path) does not match reference")

    # 2) More channels, forced through the tiled two-pass path (exercises the streaming
    #    reduction grid, N tiling, and the parallel apply kernel).
    x2 = jax.random.normal(k5, (2, 192, 16, 16), jnp.float32)
    out2 = jax.block_until_ready(
        sam_forward(x2, conv_w, bn_gamma, bn_beta, kernel_size=K,
                    force_two_pass=True, block_n=1, block_c=64))
    ref2 = _reference(x2, conv_w, bn_gamma, bn_beta, kernel_size=K)
    if not bool(jnp.allclose(out2, ref2, atol=1e-3, rtol=1e-3)):
        raise AssertionError("Pallas SAM (two-pass path) does not match reference")

    print("KERNEL_OK")
</pallas_src>

<mosaic_0001>
module attributes {stable_mosaic.version = 11 : i64} {
  func.func @_sam_fused_kernel(%arg0: i32, %arg1: memref<2x4x256xf32, #tpu.memory_space<vmem>>, %arg2: memref<98xf32, #tpu.memory_space<smem>>, %arg3: memref<2xf32, #tpu.memory_space<smem>>, %arg4: memref<7x1x256xf32, #tpu.memory_space<vmem>>, %arg5: memref<2x4x256xf32, #tpu.memory_space<vmem>>, %arg6: memref<2x2x358xf32, #tpu.memory_space<vmem>>) attributes {dimension_semantics = [#tpu.dimension_semantics<arbitrary>], iteration_bounds = array<i64: 1>, scalar_prefetch = 0 : i64, scratch_operands = 1 : i64, tpu.core_type = #tpu.core_type<tc>, window_params = [{pipeline_mode = #tpu.pipeline_mode<synchronous>, transform_indices = @transform_0, window_bounds = array<i64: 2, 4, 256>}, {transform_indices = @transform_1, window_bounds = array<i64: 98>}, {transform_indices = @transform_2, window_bounds = array<i64: 2>}, {pipeline_mode = #tpu.pipeline_mode<synchronous>, transform_indices = @transform_3, window_bounds = array<i64: 7, 1, 256>}, {pipeline_mode = #tpu.pipeline_mode<synchronous>, transform_indices = @transform_4, window_bounds = array<i64: 2, 4, 256>}]} {
    %c0 = arith.constant 0 : index
    %c0_0 = arith.constant 0 : index
    %c0_1 = arith.constant 0 : index
    %0 = vector.load %arg1[%c0, %c0_0, %c0_1] : memref<2x4x256xf32, #tpu.memory_space<vmem>>, vector<2x4x256xf32>
    %cst = arith.constant dense<0xFF800000> : vector<2x256xf32>
    %1 = vector.multi_reduction <maximumf>, %0, %cst [1] : vector<2x4x256xf32> to vector<2x256xf32>
    %2 = vector.shape_cast %1 : vector<2x256xf32> to vector<2x1x256xf32>
    %cst_2 = arith.constant dense<0.000000e+00> : vector<2x256xf32>
    %3 = vector.multi_reduction <add>, %0, %cst_2 [1] : vector<2x4x256xf32> to vector<2x256xf32>
    %4 = vector.shape_cast %3 : vector<2x256xf32> to vector<2x1x256xf32>
    %cst_3 = arith.constant 2.500000e-01 : f32
    %5 = vector.broadcast %cst_3 : f32 to vector<2x1x256xf32>
    %6 = arith.mulf %4, %5 : vector<2x1x256xf32>
    %cst_4 = arith.constant 0.000000e+00 : f32
    %7 = vector.broadcast %cst_4 : f32 to vector<2x2x358xf32>
    %c0_5 = arith.constant 0 : index
    %c0_6 = arith.constant 0 : index
    %c0_7 = arith.constant 0 : index
    %8 = vector.load %arg6[%c0_5, %c0_6, %c0_7] : memref<2x2x358xf32, #tpu.memory_space<vmem>>, vector<2x2x358xf32>
    tpu.vector_store %arg6[%c0_5, %c0_6, %c0_7], %7 {strides = array<i32>} : memref<2x2x358xf32, #tpu.memory_space<vmem>>, vector<2x2x358xf32>,
    %c0_8 = arith.constant 0 : index
    %c0_9 = arith.constant 0 : index
    %c51 = arith.constant 51 : index
    %9 = vector.load %arg6[%c0_8, %c0_9, %c51] : memref<2x2x358xf32, #tpu.memory_space<vmem>>, vector<2x1x256xf32>
    tpu.vector_store %arg6[%c0_8, %c0_9, %c51], %2 {strides = array<i32>} : memref<2x2x358xf32, #tpu.memory_space<vmem>>, vector<2x1x256xf32>,
    %c0_10 = arith.constant 0 : index
    %c1 = arith.constant 1 : index
    %c51_11 = arith.constant 51 : index
    %10 = vector.load %arg6[%c0_10, %c1, %c51_11] : memref<2x2x358xf32, #tpu.memory_space<vmem>>, vector<2x1x256xf32>
    tpu.vector_store %arg6[%c0_10, %c1, %c51_11], %6 {strides = array<i32>} : memref<2x2x358xf32, #tpu.memory_space<vmem>>, vector<2x1x256xf32>,
    %c0_12 = arith.constant 0 : index
    %c0_13 = arith.constant 0 : index
    %c0_14 = arith.constant 0 : index
    %11 = vector.load %arg6[%c0_12, %c0_13, %c0_14] : memref<2x2x358xf32, #tpu.memory_space<vmem>>, vector<2x2x358xf32>
    %c0_15 = arith.constant 0 : index
    %c0_16 = arith.constant 0 : index
    %c0_17 = arith.constant 0 : index
    %12 = vector.load %arg4[%c0_15, %c0_16, %c0_17] : memref<7x1x256xf32, #tpu.memory_space<vmem>>, vector<7x1x256xf32>
    %cst_18 = arith.constant 0.000000e+00 : f32
    %13 = vector.broadcast %cst_18 : f32 to vector<2x1x256xf32>
    %cst_19 = arith.constant 0.000000e+00 : f32
    %14 = vector.broadcast %cst_19 : f32 to vector<2x1x256xf32>
    %c0_20 = arith.constant 0 : index
    %15 = memref.load %arg2[%c0_20] : memref<98xf32, #tpu.memory_space<smem>>
    %16 = vector.extract_strided_slice %11 {offsets = [0, 0, 0], sizes = [2, 1, 256], strides = [1, 1, 1]} : vector<2x2x358xf32> to vector<2x1x256xf32>
    %17 = vector.broadcast %15 : f32 to vector<2x1x256xf32>
    %18 = arith.mulf %16, %17 : vector<2x1x256xf32>
    %19 = arith.addf %14, %18 : vector<2x1x256xf32>
    %c7 = arith.constant 7 : index
    %20 = memref.load %arg2[%c7] : memref<98xf32, #tpu.memory_space<smem>>
    %21 = vector.extract_strided_slice %11 {offsets = [0, 0, 16], sizes = [2, 1, 256], strides = [1, 1, 1]} : vector<2x2x358xf32> to vector<2x1x256xf32>
    %22 = vector.broadcast %20 : f32 to vector<2x1x256xf32>
    %23 = arith.mulf %21, %22 : vector<2x1x256xf32>
    %24 = arith.addf %19, %23 : vector<2x1x256xf32>
    %c14 = arith.constant 14 : index
    %25 = memref.load %arg2[%c14] : memref<98xf32, #tpu.memory_space<smem>>
    %26 = vector.extract_strided_slice %11 {offsets = [0, 0, 32], sizes = [2, 1, 256], strides = [1, 1, 1]} : vector<2x2x358xf32> to vector<2x1x256xf32>
    %27 = vector.broadcast %25 : f32 to vector<2x1x256xf32>
    %28 = arith.mulf %26, %27 : vector<2x1x256xf32>
    %29 = arith.addf %24, %28 : vector<2x1x256xf32>
    %c21 = arith.constant 21 : index
    %30 = memref.load %arg2[%c21] : memref<98xf32, #tpu.memory_space<smem>>
    %31 = vector.extract_strided_slice %11 {offsets = [0, 0, 48], sizes = [2, 1, 256], strides = [1, 1, 1]} : vector<2x2x358xf32> to vector<2x1x256xf32>
    %32 = vector.broadcast %30 : f32 to vector<2x1x256xf32>
    %33 = arith.mulf %31, %32 : vector<2x1x256xf32>
    %34 = arith.addf %29, %33 : vector<2x1x256xf32>
    %c28 = arith.constant 28 : index
    %35 = memref.load %arg2[%c28] : memref<98xf32, #tpu.memory_space<smem>>
    %36 = vector.extract_strided_slice %11 {offsets = [0, 0, 64], sizes = [2, 1, 256], strides = [1, 1, 1]} : vector<2x2x358xf32> to vector<2x1x256xf32>
    %37 = vector.broadcast %35 : f32 to vector<2x1x256xf32>
    %38 = arith.mulf %36, %37 : vector<2x1x256xf32>
    %39 = arith.addf %34, %38 : vector<2x1x256xf32>
    %c35 = arith.constant 35 : index
    %40 = memref.load %arg2[%c35] : memref<98xf32, #tpu.memory_space<smem>>
    %41 = vector.extract_strided_slice %11 {offsets = [0, 0, 80], sizes = [2, 1, 256], strides = [1, 1, 1]} : vector<2x2x358xf32> to vector<2x1x256xf32>
    %42 = vector.broadcast %40 : f32 to vector<2x1x256xf32>
    %43 = arith.mulf %41, %42 : vector<2x1x256xf32>
    %44 = arith.addf %39, %43 : vector<2x1x256xf32>
    %c42 = arith.constant 42 : index
    %45 = memref.load %arg2[%c42] : memref<98xf32, #tpu.memory_space<smem>>
    %46 = vector.extract_strided_slice %11 {offsets = [0, 0, 96], sizes = [2, 1, 256], strides = [1, 1, 1]} : vector<2x2x358xf32> to vector<2x1x256xf32>
    %47 = vector.broadcast %45 : f32 to vector<2x1x256xf32>
    %48 = arith.mulf %46, %47 : vector<2x1x256xf32>
    %49 = arith.addf %44, %48 : vector<2x1x256xf32>
    %c49 = arith.constant 49 : index
    %50 = memref.load %arg2[%c49] : memref<98xf32, #tpu.memory_space<smem>>
    %51 = vector.extract_strided_slice %11 {offsets = [0, 1, 0], sizes = [2, 1, 256], strides = [1, 1, 1]} : vector<2x2x358xf32> to vector<2x1x256xf32>
    %52 = vector.broadcast %50 : f32 to vector<2x1x256xf32>
    %53 = arith.mulf %51, %52 : vector<2x1x256xf32>
    %54 = arith.addf %49, %53 : vector<2x1x256xf32>
    %c56 = arith.constant 56 : index
    %55 = memref.load %arg2[%c56] : memref<98xf32, #tpu.memory_space<smem>>
    %56 = vector.extract_strided_slice %11 {offsets = [0, 1, 16], sizes = [2, 1, 256], strides = [1, 1, 1]} : vector<2x2x358xf32> to vector<2x1x256xf32>
    %57 = vector.broadcast %55 : f32 to vector<2x1x256xf32>
    %58 = arith.mulf %56, %57 : vector<2x1x256xf32>
    %59 = arith.addf %54, %58 : vector<2x1x256xf32>
    %c63 = arith.constant 63 : index
    %60 = memref.load %arg2[%c63] : memref<98xf32, #tpu.memory_space<smem>>
    %61 = vector.extract_strided_slice %11 {offsets = [0, 1, 32], sizes = [2, 1, 256], strides = [1, 1, 1]} : vector<2x2x358xf32> to vector<2x1x256xf32>
    %62 = vector.broadcast %60 : f32 to vector<2x1x256xf32>
    %63 = arith.mulf %61, %62 : vector<2x1x256xf32>
    %64 = arith.addf %59, %63 : vector<2x1x256xf32>
    %c70 = arith.constant 70 : index
    %65 = memref.load %arg2[%c70] : memref<98xf32, #tpu.memory_space<smem>>
    %66 = vector.extract_strided_slice %11 {offsets = [0, 1, 48], sizes = [2, 1, 256], strides = [1, 1, 1]} : vector<2x2x358xf32> to vector<2x1x256xf32>
    %67 = vector.broadcast %65 : f32 to vector<2x1x256xf32>
    %68 = arith.mulf %66, %67 : vector<2x1x256xf32>
    %69 = arith.addf %64, %68 : vector<2x1x256xf32>
    %c77 = arith.constant 77 : index
    %70 = memref.load %arg2[%c77] : memref<98xf32, #tpu.memory_space<smem>>
    %71 = vector.extract_strided_slice %11 {offsets = [0, 1, 64], sizes = [2, 1, 256], strides = [1, 1, 1]} : vector<2x2x358xf32> to vector<2x1x256xf32>
    %72 = vector.broadcast %70 : f32 to vector<2x1x256xf32>
    %73 = arith.mulf %71, %72 : vector<2x1x256xf32>
    %74 = arith.addf %69, %73 : vector<2x1x256xf32>
    %c84 = arith.constant 84 : index
    %75 = memref.load %arg2[%c84] : memref<98xf32, #tpu.memory_space<smem>>
    %76 = vector.extract_strided_slice %11 {offsets = [0, 1, 80], sizes = [2, 1, 256], strides = [1, 1, 1]} : vector<2x2x358xf32> to vector<2x1x256xf32>
    %77 = vector.broadcast %75 : f32 to vector<2x1x256xf32>
    %78 = arith.mulf %76, %77 : vector<2x1x256xf32>
    %79 = arith.addf %74, %78 : vector<2x1x256xf32>
    %c91 = arith.constant 91 : index
    %80 = memref.load %arg2[%c91] : memref<98xf32, #tpu.memory_space<smem>>
    %81 = vector.extract_strided_slice %11 {offsets = [0, 1, 96], sizes = [2, 1, 256], strides = [1, 1, 1]} : vector<2x2x358xf32> to vector<2x1x256xf32>
    %82 = vector.broadcast %80 : f32 to vector<2x1x256xf32>
    %83 = arith.mulf %81, %82 : vector<2x1x256xf32>
    %84 = arith.addf %79, %83 : vector<2x1x256xf32>
    %85 = vector.extract_strided_slice %12 {offsets = [0, 0, 0], sizes = [1, 1, 256], strides = [1, 1, 1]} : vector<7x1x256xf32> to vector<1x1x256xf32>
    %86 = vector.broadcast %85 : vector<1x1x256xf32> to vector<2x1x256xf32>
    %87 = arith.mulf %84, %86 : vector<2x1x256xf32>
    %88 = arith.addf %13, %87 : vector<2x1x256xf32>
    %cst_21 = arith.constant 0.000000e+00 : f32
    %89 = vector.broadcast %cst_21 : f32 to vector<2x1x256xf32>
    %c1_22 = arith.constant 1 : index
    %90 = memref.load %arg2[%c1_22] : memref<98xf32, #tpu.memory_space<smem>>
    %91 = vector.extract_strided_slice %11 {offsets = [0, 0, 1], sizes = [2, 1, 256], strides = [1, 1, 1]} : vector<2x2x358xf32> to vector<2x1x256xf32>
    %92 = vector.broadcast %90 : f32 to vector<2x1x256xf32>
    %93 = arith.mulf %91, %92 : vector<2x1x256xf32>
    %94 = arith.addf %89, %93 : vector<2x1x256xf32>
    %c8 = arith.constant 8 : index
    %95 = memref.load %arg2[%c8] : memref<98xf32, #tpu.memory_space<smem>>
    %96 = vector.extract_strided_slice %11 {offsets = [0, 0, 17], sizes = [2, 1, 256], strides = [1, 1, 1]} : vector<2x2x358xf32> to vector<2x1x256xf32>
    %97 = vector.broadcast %95 : f32 to vector<2x1x256xf32>
    %98 = arith.mulf %96, %97 : vector<2x1x256xf32>
    %99 = arith.addf %94, %98 : vector<2x1x256xf32>
    %c15 = arith.constant 15 : index
    %100 = memref.load %arg2[%c15] : memref<98xf32, #tpu.memory_space<smem>>
    %101 = vector.extract_strided_slice %11 {offsets = [0, 0, 33], sizes = [2, 1, 256], strides = [1, 1, 1]} : vector<2x2x358xf32> to vector<2x1x256xf32>
    %102 = vector.broadcast %100 : f32 to vector<2x1x256xf32>
    %103 = arith.mulf %101, %102 : vector<2x1x256xf32>
    %104 = arith.addf %99, %103 : vector<2x1x256xf32>
    %c22 = arith.constant 22 : index
    %105 = memref.load %arg2[%c22] : memref<98xf32, #tpu.memory_space<smem>>
    %106 = vector.extract_strided_slice %11 {offsets = [0, 0, 49], sizes = [2, 1, 256], strides = [1, 1, 1]} : vector<2x2x358xf32> to vector<2x1x256xf32>
    %107 = vector.broadcast %105 : f32 to vector<2x1x256xf32>
    %108 = arith.mulf %106, %107 : vector<2x1x256xf32>
    %109 = arith.addf %104, %108 : vector<2x1x256xf32>
    %c29 = arith.constant 29 : index
    %110 = memref.load %arg2[%c29] : memref<98xf32, #tpu.memory_space<smem>>
    %111 = vector.extract_strided_slice %11 {offsets = [0, 0, 65], sizes = [2, 1, 256], strides = [1, 1, 1]} : vector<2x2x358xf32> to vector<2x1x256xf32>
    %112 = vector.broadcast %110 : f32 to vector<2x1x256xf32>
    %113 = arith.mulf %111, %112 : vector<2x1x256xf32>
    %114 = arith.addf %109, %113 : vector<2x1x256xf32>
    %c36 = arith.constant 36 : index
    %115 = memref.load %arg2[%c36] : memref<98xf32, #tpu.memory_space<smem>>
    %116 = vector.extract_strided_slice %11 {offsets = [0, 0, 81], sizes = [2, 1, 256], strides = [1, 1, 1]} : vector<2x2x358xf32> to vector<2x1x256xf32>
    %117 = vector.broadcast %115 : f32 to vector<2x1x256xf32>
    %118 = arith.mulf %116, %117 : vector<2x1x256xf32>
    %119 = arith.addf %114, %118 : vector<2x1x256xf32>
    %c43 = arith.constant 43 : index
    %120 = memref.load %arg2[%c43] : memref<98xf32, #tpu.memory_space<smem>>
    %121 = vector.extract_strided_slice %11 {offsets = [0, 0, 97], sizes = [2, 1, 256], strides = [1, 1, 1]} : vector<2x2x358xf32> to vector<2x1x256xf32>
    %122 = vector.broadcast %120 : f32 to vector<2x1x256xf32>
    %123 = arith.mulf %121, %122 : vector<2x1x256xf32>
    %124 = arith.addf %119, %123 : vector<2x1x256xf32>
    %c50 = arith.constant 50 : index
    %125 = memref.load %arg2[%c50] : memref<98xf32, #tpu.memory_space<smem>>
    %126 = vector.extract_strided_slice %11 {offsets = [0, 1, 1], sizes = [2, 1, 256], strides = [1, 1, 1]} : vector<2x2x358xf32> to vector<2x1x256xf32>
    %127 = vector.broadcast %125 : f32 to vector<2x1x256xf32>
    %128 = arith.mulf %126, %127 : vector<2x1x256xf32>
    %129 = arith.addf %124, %128 : vector<2x1x256xf32>
    %c57 = arith.constant 57 : index
    %130 = memref.load %arg2[%c57] : memref<98xf32, #tpu.memory_space<smem>>
    %131 = vector.extract_strided_slice %11 {offsets = [0, 1, 17], sizes = [2, 1, 256], strides = [1, 1, 1]} : vector<2x2x358xf32> to vector<2x1x256xf32>
    %132 = vector.broadcast %130 : f32 to vector<2x1x256xf32>
    %133 = arith.mulf %131, %132 : vector<2x1x256xf32>
    %134 = arith.addf %129, %133 : vector<2x1x256xf32>
    %c64 = arith.constant 64 : index
    %135 = memref.load %arg2[%c64] : memref<98xf32, #tpu.memory_space<smem>>
    %136 = vector.extract_strided_slice %11 {offsets = [0, 1, 33], sizes = [2, 1, 256], strides = [1, 1, 1]} : vector<2x2x358xf32> to vector<2x1x256xf32>
    %137 = vector.broadcast %135 : f32 to vector<2x1x256xf32>
    %138 = arith.mulf %136, %137 : vector<2x1x256xf32>
    %139 = arith.addf %134, %138 : vector<2x1x256xf32>
    %c71 = arith.constant 71 : index
    %140 = memref.load %arg2[%c71] : memref<98xf32, #tpu.memory_space<smem>>
    %141 = vector.extract_strided_slice %11 {offsets = [0, 1, 49], sizes = [2, 1, 256], strides = [1, 1, 1]} : vector<2x2x358xf32> to vector<2x1x256xf32>
    %142 = vector.broadcast %140 : f32 to vector<2x1x256xf32>
    %143 = arith.mulf %141, %142 : vector<2x1x256xf32>
    %144 = arith.addf %139, %143 : vector<2x1x256xf32>
    %c78 = arith.constant 78 : index
    %145 = memref.load %arg2[%c78] : memref<98xf32, #tpu.memory_space<smem>>
    %146 = vector.extract_strided_slice %11 {offsets = [0, 1, 65], sizes = [2, 1, 256], strides = [1, 1, 1]} : vector<2x2x358xf32> to vector<2x1x256xf32>
    %147 = vector.broadcast %145 : f32 to vector<2x1x256xf32>
    %148 = arith.mulf %146, %147 : vector<2x1x256xf32>
    %149 = arith.addf %144, %148 : vector<2x1x256xf32>
    %c85 = arith.constant 85 : index
    %150 = memref.load %arg2[%c85] : memref<98xf32, #tpu.memory_space<smem>>
    %151 = vector.extract_strided_slice %11 {offsets = [0, 1, 81], sizes = [2, 1, 256], strides = [1, 1, 1]} : vector<2x2x358xf32> to vector<2x1x256xf32>
    %152 = vector.broadcast %150 : f32 to vector<2x1x256xf32>
    %153 = arith.mulf %151, %152 : vector<2x1x256xf32>
    %154 = arith.addf %149, %153 : vector<2x1x256xf32>
    %c92 = arith.constant 92 : index
    %155 = memref.load %arg2[%c92] : memref<98xf32, #tpu.memory_space<smem>>
    %156 = vector.extract_strided_slice %11 {offsets = [0, 1, 97], sizes = [2, 1, 256], strides = [1, 1, 1]} : vector<2x2x358xf32> to vector<2x1x256xf32>
    %157 = vector.broadcast %155 : f32 to vector<2x1x256xf32>
    %158 = arith.mulf %156, %157 : vector<2x1x256xf32>
    %159 = arith.addf %154, %158 : vector<2x1x256xf32>
    %160 = vector.extract_strided_slice %12 {offsets = [1, 0, 0], sizes = [1, 1, 256], strides = [1, 1, 1]} : vector<7x1x256xf32> to vector<1x1x256xf32>
    %161 = vector.broadcast %160 : vector<1x1x256xf32> to vector<2x1x256xf32>
    %162 = arith.mulf %159, %161 : vector<2x1x256xf32>
    %163 = arith.addf %88, %162 : vector<2x1x256xf32>
    %cst_23 = arith.constant 0.000000e+00 : f32
    %164 = vector.broadcast %cst_23 : f32 to vector<2x1x256xf32>
    %c2 = arith.constant 2 : index
    %165 = memref.load %arg2[%c2] : memref<98xf32, #tpu.memory_space<smem>>
    %166 = vector.extract_strided_slice %11 {offsets = [0, 0, 2], sizes = [2, 1, 256], strides = [1, 1, 1]} : vector<2x2x358xf32> to vector<2x1x256xf32>
    %167 = vector.broadcast %165 : f32 to vector<2x1x256xf32>
    %168 = arith.mulf %166, %167 : vector<2x1x256xf32>
    %169 = arith.addf %164, %168 : vector<2x1x256xf32>
    %c9 = arith.constant 9 : index
    %170 = memref.load %arg2[%c9] : memref<98xf32, #tpu.memory_space<smem>>
    %171 = vector.extract_strided_slice %11 {offsets = [0, 0, 18], sizes = [2, 1, 256], strides = [1, 1, 1]} : vector<2x2x358xf32> to vector<2x1x256xf32>
    %172 = vector.broadcast %170 : f32 to vector<2x1x256xf32>
    %173 = arith.mulf %171, %172 : vector<2x1x256xf32>
    %174 = arith.addf %169, %173 : vector<2x1x256xf32>
    %c16 = arith.constant 16 : index
    %175 = memref.load %arg2[%c16] : memref<98xf32, #tpu.memory_space<smem>>
    %176 = vector.extract_strided_slice %11 {offsets = [0, 0, 34], sizes = [2, 1, 256], strides = [1, 1, 1]} : vector<2x2x358xf32> to vector<2x1x256xf32>
    %177 = vector.broadcast %175 : f32 to vector<2x1x256xf32>
    %178 = arith.mulf %176, %177 : vector<2x1x256xf32>
    %179 = arith.addf %174, %178 : vector<2x1x256xf32>
    %c23 = arith.constant 23 : index
    %180 = memref.load %arg2[%c23] : memref<98xf32, #tpu.memory_space<smem>>
    %181 = vector.extract_strided_slice %11 {offsets = [0, 0, 50], sizes = [2, 1, 256], strides = [1, 1, 1]} : vector<2x2x358xf32> to vector<2x1x256xf32>
    %182 = vector.broadcast %180 : f32 to vector<2x1x256xf32>
    %183 = arith.mulf %181, %182 : vector<2x1x256xf32>
    %184 = arith.addf %179, %183 : vector<2x1x256xf32>
    %c30 = arith.constant 30 : index
    %185 = memref.load %arg2[%c30] : memref<98xf32, #tpu.memory_space<smem>>
    %186 = vector.extract_strided_slice %11 {offsets = [0, 0, 66], sizes = [2, 1, 256], strides = [1, 1, 1]} : vector<2x2x358xf32> to vector<2x1x256xf32>
    %187 = vector.broadcast %185 : f32 to vector<2x1x256xf32>
    %188 = arith.mulf %186, %187 : vector<2x1x256xf32>
    %189 = arith.addf %184, %188 : vector<2x1x256xf32>
    %c37 = arith.constant 37 : index
    %190 = memref.load %arg2[%c37] : memref<98xf32, #tpu.memory_space<smem>>
    %191 = vector.extract_strided_slice %11 {offsets = [0, 0, 82], sizes = [2, 1, 256], strides = [1, 1, 1]} : vector<2x2x358xf32> to vector<2x1x256xf32>
    %192 = vector.broadcast %190 : f32 to vector<2x1x256xf32>
    %193 = arith.mulf %191, %192 : vector<2x1x256xf32>
    %194 = arith.addf %189, %193 : vector<2x1x256xf32>
    %c44 = arith.constant 44 : index
    %195 = memref.load %arg2[%c44] : memref<98xf32, #tpu.memory_space<smem>>
    %196 = vector.extract_strided_slice %11 {offsets = [0, 0, 98], sizes = [2, 1, 256], strides = [1, 1, 1]} : vector<2x2x358xf32> to vector<2x1x256xf32>
    %197 = vector.broadcast %195 : f32 to vector<2x1x256xf32>
    %198 = arith.mulf %196, %197 : vector<2x1x256xf32>
    %199 = arith.addf %194, %198 : vector<2x1x256xf32>
    %c51_24 = arith.constant 51 : index
    %200 = memref.load %arg2[%c51_24] : memref<98xf32, #tpu.memory_space<smem>>
    %201 = vector.extract_strided_slice %11 {offsets = [0, 1, 2], sizes = [2, 1, 256], strides = [1, 1, 1]} : vector<2x2x358xf32> to vector<2x1x256xf32>
    %202 = vector.broadcast %200 : f32 to vector<2x1x256xf32>
    %203 = arith.mulf %201, %202 : vector<2x1x256xf32>
    %204 = arith.addf %199, %203 : vector<2x1x256xf32>
    %c58 = arith.constant 58 : index
    %205 = memref.load %arg2[%c58] : memref<98xf32, #tpu.memory_space<smem>>
    %206 = vector.extract_strided_slice %11 {offsets = [0, 1, 18], sizes = [2, 1, 256], strides = [1, 1, 1]} : vector<2x2x358xf32> to vector<2x1x256xf32>
    %207 = vector.broadcast %205 : f32 to vector<2x1x256xf32>
    %208 = arith.mulf %206, %207 : vector<2x1x256xf32>
    %209 = arith.addf %204, %208 : vector<2x1x256xf32>
    %c65 = arith.constant 65 : index
    %210 = memref.load %arg2[%c65] : memref<98xf32, #tpu.memory_space<smem>>
    %211 = vector.extract_strided_slice %11 {offsets = [0, 1, 34], sizes = [2, 1, 256], strides = [1, 1, 1]} : vector<2x2x358xf32> to vector<2x1x256xf32>
    %212 = vector.broadcast %210 : f32 to vector<2x1x256xf32>
    %213 = arith.mulf %211, %212 : vector<2x1x256xf32>
    %214 = arith.addf %209, %213 : vector<2x1x256xf32>
    %c72 = arith.constant 72 : index
    %215 = memref.load %arg2[%c72] : memref<98xf32, #tpu.memory_space<smem>>
    %216 = vector.extract_strided_slice %11 {offsets = [0, 1, 50], sizes = [2, 1, 256], strides = [1, 1, 1]} : vector<2x2x358xf32> to vector<2x1x256xf32>
    %217 = vector.broadcast %215 : f32 to vector<2x1x256xf32>
    %218 = arith.mulf %216, %217 : vector<2x1x256xf32>
    %219 = arith.addf %214, %218 : vector<2x1x256xf32>
    %c79 = arith.constant 79 : index
    %220 = memref.load %arg2[%c79] : memref<98xf32, #tpu.memory_space<smem>>
    %221 = vector.extract_strided_slice %11 {offsets = [0, 1, 66], sizes = [2, 1, 256], strides = [1, 1, 1]} : vector<2x2x358xf32> to vector<2x1x256xf32>
    %222 = vector.broadcast %220 : f32 to vector<2x1x256xf32>
    %223 = arith.mulf %221, %222 : vector<2x1x256xf32>
    %224 = arith.addf %219, %223 : vector<2x1x256xf32>
    %c86 = arith.constant 86 : index
    %225 = memref.load %arg2[%c86] : memref<98xf32, #tpu.memory_space<smem>>
    %226 = vector.extract_strided_slice %11 {offsets = [0, 1, 82], sizes = [2, 1, 256], strides = [1, 1, 1]} : vector<2x2x358xf32> to vector<2x1x256xf32>
    %227 = vector.broadcast %225 : f32 to vector<2x1x256xf32>
    %228 = arith.mulf %226, %227 : vector<2x1x256xf32>
    %229 = arith.addf %224, %228 : vector<2x1x256xf32>
    %c93 = arith.constant 93 : index
    %230 = memref.load %arg2[%c93] : memref<98xf32, #tpu.memory_space<smem>>
    %231 = vector.extract_strided_slice %11 {offsets = [0, 1, 98], sizes = [2, 1, 256], strides = [1, 1, 1]} : vector<2x2x358xf32> to vector<2x1x256xf32>
    %232 = vector.broadcast %230 : f32 to vector<2x1x256xf32>
    %233 = arith.mulf %231, %232 : vector<2x1x256xf32>
    %234 = arith.addf %229, %233 : vector<2x1x256xf32>
    %235 = vector.extract_strided_slice %12 {offsets = [2, 0, 0], sizes = [1, 1, 256], strides = [1, 1, 1]} : vector<7x1x256xf32> to vector<1x1x256xf32>
    %236 = vector.broadcast %235 : vector<1x1x256xf32> to vector<2x1x256xf32>
    %237 = arith.mulf %234, %236 : vector<2x1x256xf32>
    %238 = arith.addf %163, %237 : vector<2x1x256xf32>
    %cst_25 = arith.constant 0.000000e+00 : f32
    %239 = vector.broadcast %cst_25 : f32 to vector<2x1x256xf32>
    %c3 = arith.constant 3 : index
    %240 = memref.load %arg2[%c3] : memref<98xf32, #tpu.memory_space<smem>>
    %241 = vector.extract_strided_slice %11 {offsets = [0, 0, 3], sizes = [2, 1, 256], strides = [1, 1, 1]} : vector<2x2x358xf32> to vector<2x1x256xf32>
    %242 = vector.broadcast %240 : f32 to vector<2x1x256xf32>
    %243 = arith.mulf %241, %242 : vector<2x1x256xf32>
    %244 = arith.addf %239, %243 : vector<2x1x256xf32>
    %c10 = arith.constant 10 : index
    %245 = memref.load %arg2[%c10] : memref<98xf32, #tpu.memory_space<smem>>
    %246 = vector.extract_strided_slice %11 {offsets = [0, 0, 19], sizes = [2, 1, 256], strides = [1, 1, 1]} : vector<2x2x358xf32> to vector<2x1x256xf32>
    %247 = vector.broadcast %245 : f32 to vector<2x1x256xf32>
    %248 = arith.mulf %246, %247 : vector<2x1x256xf32>
    %249 = arith.addf %244, %248 : vector<2x1x256xf32>
    %c17 = arith.constant 17 : index
    %250 = memref.load %arg2[%c17] : memref<98xf32, #tpu.memory_space<smem>>
    %251 = vector.extract_strided_slice %11 {offsets = [0, 0, 35], sizes = [2, 1, 256], strides = [1, 1, 1]} : vector<2x2x358xf32> to vector<2x1x256xf32>
    %252 = vector.broadcast %250 : f32 to vector<2x1x256xf32>
    %253 = arith.mulf %251, %252 : vector<2x1x256xf32>
    %254 = arith.addf %249, %253 : vector<2x1x256xf32>
    %c24 = arith.constant 24 : index
    %255 = memref.load %arg2[%c24] : memref<98xf32, #tpu.memory_space<smem>>
    %256 = vector.extract_strided_slice %11 {offsets = [0, 0, 51], sizes = [2, 1, 256], strides = [1, 1, 1]} : vector<2x2x358xf32> to vector<2x1x256xf32>
    %257 = vector.broadcast %255 : f32 to vector<2x1x256xf32>
    %258 = arith.mulf %256, %257 : vector<2x1x256xf32>
    %259 = arith.addf %254, %258 : vector<2x1x256xf32>
    %c31 = arith.constant 31 : index
    %260 = memref.load %arg2[%c31] : memref<98xf32, #tpu.memory_space<smem>>
    %261 = vector.extract_strided_slice %11 {offsets = [0, 0, 67], sizes = [2, 1, 256], strides = [1, 1, 1]} : vector<2x2x358xf32> to vector<2x1x256xf32>
    %262 = vector.broadcast %260 : f32 to vector<2x1x256xf32>
    %263 = arith.mulf %261, %262 : vector<2x1x256xf32>
    %264 = arith.addf %259, %263 : vector<2x1x256xf32>
    %c38 = arith.constant 38 : index
    %265 = memref.load %arg2[%c38] : memref<98xf32, #tpu.memory_space<smem>>
    %266 = vector.extract_strided_slice %11 {offsets = [0, 0, 83], sizes = [2, 1, 256], strides = [1, 1, 1]} : vector<2x2x358xf32> to vector<2x1x256xf32>
    %267 = vector.broadcast %265 : f32 to vector<2x1x256xf32>
    %268 = arith.mulf %266, %267 : vector<2x1x256xf32>
    %269 = arith.addf %264, %268 : vector<2x1x256xf32>
    %c45 = arith.constant 45 : index
    %270 = memref.load %arg2[%c45] : memref<98xf32, #tpu.memory_space<smem>>
    %271 = vector.extract_strided_slice %11 {offsets = [0, 0, 99], sizes = [2, 1, 256], strides = [1, 1, 1]} : vector<2x2x358xf32> to vector<2x1x256xf32>
    %272 = vector.broadcast %270 : f32 to vector<2x1x256xf32>
    %273 = arith.mulf %271, %272 : vector<2x1x256xf32>
    %274 = arith.addf %269, %273 : vector<2x1x256xf32>
    %c52 = arith.constant 52 : index
    %275 = memref.load %arg2[%c52] : memref<98xf32, #tpu.memory_space<smem>>
    %276 = vector.extract_strided_slice %11 {offsets = [0, 1, 3], sizes = [2, 1, 256], strides = [1, 1, 1]} : vector<2x2x358xf32> to vector<2x1x256xf32>
    %277 = vector.broadcast %275 : f32 to vector<2x1x256xf32>
    %278 = arith.mulf %276, %277 : vector<2x1x256xf32>
    %279 = arith.addf %274, %278 : vector<2x1x256xf32>
    %c59 = arith.constant 59 : index
    %280 = memref.load %arg2[%c59] : memref<98xf32, #tpu.memory_space<smem>>
    %281 = vector.extract_strided_slice %11 {offsets = [0, 1, 19], sizes = [2, 1, 256], strides = [1, 1, 1]} : vector<2x2x358xf32> to vector<2x1x256xf32>
    %282 = vector.broadcast %280 : f32 to vector<2x1x256xf32>
    %283 = arith.mulf %281, %282 : vector<2x1x256xf32>
    %284 = arith.addf %279, %283 : vector<2x1x256xf32>
    %c66 = arith.constant 66 : index
    %285 = memref.load %arg2[%c66] : memref<98xf32, #tpu.memory_space<smem>>
    %286 = vector.extract_strided_slice %11 {offsets = [0, 1, 35], sizes = [2, 1, 256], strides = [1, 1, 1]} : vector<2x2x358xf32> to vector<2x1x256xf32>
    %287 = vector.broadcast %285 : f32 to vector<2x1x256xf32>
    %288 = arith.mulf %286, %287 : vector<2x1x256xf32>
    %289 = arith.addf %284, %288 : vector<2x1x256xf32>
    %c73 = arith.constant 73 : index
    %290 = memref.load %arg2[%c73] : memref<98xf32, #tpu.memory_space<smem>>
    %291 = vector.extract_strided_slice %11 {offsets = [0, 1, 51], sizes = [2, 1, 256], strides = [1, 1, 1]} : vector<2x2x358xf32> to vector<2x1x256xf32>
    %292 = vector.broadcast %290 : f32 to vector<2x1x256xf32>
    %293 = arith.mulf %291, %292 : vector<2x1x256xf32>
    %294 = arith.addf %289, %293 : vector<2x1x256xf32>
    %c80 = arith.constant 80 : index
    %295 = memref.load %arg2[%c80] : memref<98xf32, #tpu.memory_space<smem>>
    %296 = vector.extract_strided_slice %11 {offsets = [0, 1, 67], sizes = [2, 1, 256], strides = [1, 1, 1]} : vector<2x2x358xf32> to vector<2x1x256xf32>
    %297 = vector.broadcast %295 : f32 to vector<2x1x256xf32>
    %298 = arith.mulf %296, %297 : vector<2x1x256xf32>
    %299 = arith.addf %294, %298 : vector<2x1x256xf32>
    %c87 = arith.constant 87 : index
    %300 = memref.load %arg2[%c87] : memref<98xf32, #tpu.memory_space<smem>>
    %301 = vector.extract_strided_slice %11 {offsets = [0, 1, 83], sizes = [2, 1, 256], strides = [1, 1, 1]} : vector<2x2x358xf32> to vector<2x1x256xf32>
    %302 = vector.broadcast %300 : f32 to vector<2x1x256xf32>
    %303 = arith.mulf %301, %302 : vector<2x1x256xf32>
    %304 = arith.addf %299, %303 : vector<2x1x256xf32>
    %c94 = arith.constant 94 : index
    %305 = memref.load %arg2[%c94] : memref<98xf32, #tpu.memory_space<smem>>
    %306 = vector.extract_strided_slice %11 {offsets = [0, 1, 99], sizes = [2, 1, 256], strides = [1, 1, 1]} : vector<2x2x358xf32> to vector<2x1x256xf32>
    %307 = vector.broadcast %305 : f32 to vector<2x1x256xf32>
    %308 = arith.mulf %306, %307 : vector<2x1x256xf32>
    %309 = arith.addf %304, %308 : vector<2x1x256xf32>
    %310 = vector.extract_strided_slice %12 {offsets = [3, 0, 0], sizes = [1, 1, 256], strides = [1, 1, 1]} : vector<7x1x256xf32> to vector<1x1x256xf32>
    %311 = vector.broadcast %310 : vector<1x1x256xf32> to vector<2x1x256xf32>
    %312 = arith.mulf %309, %311 : vector<2x1x256xf32>
    %313 = arith.addf %238, %312 : vector<2x1x256xf32>
    %cst_26 = arith.constant 0.000000e+00 : f32
    %314 = vector.broadcast %cst_26 : f32 to vector<2x1x256xf32>
    %c4 = arith.constant 4 : index
    %315 = memref.load %arg2[%c4] : memref<98xf32, #tpu.memory_space<smem>>
    %316 = vector.extract_strided_slice %11 {offsets = [0, 0, 4], sizes = [2, 1, 256], strides = [1, 1, 1]} : vector<2x2x358xf32> to vector<2x1x256xf32>
    %317 = vector.broadcast %315 : f32 to vector<2x1x256xf32>
    %318 = arith.mulf %316, %317 : vector<2x1x256xf32>
    %319 = arith.addf %314, %318 : vector<2x1x256xf32>
    %c11 = arith.constant 11 : index
    %320 = memref.load %arg2[%c11] : memref<98xf32, #tpu.memory_space<smem>>
    %321 = vector.extract_strided_slice %11 {offsets = [0, 0, 20], sizes = [2, 1, 256], strides = [1, 1, 1]} : vector<2x2x358xf32> to vector<2x1x256xf32>
    %322 = vector.broadcast %320 : f32 to vector<2x1x256xf32>
    %323 = arith.mulf %321, %322 : vector<2x1x256xf32>
    %324 = arith.addf %319, %323 : vector<2x1x256xf32>
    %c18 = arith.constant 18 : index
    %325 = memref.load %arg2[%c18] : memref<98xf32, #tpu.memory_space<smem>>
    %326 = vector.extract_strided_slice %11 {offsets = [0, 0, 36], sizes = [2, 1, 256], strides = [1, 1, 1]} : vector<2x2x358xf32> to vector<2x1x256xf32>
    %327 = vector.broadcast %325 : f32 to vector<2x1x256xf32>
    %328 = arith.mulf %326, %327 : vector<2x1x256xf32>
    %329 = arith.addf %324, %328 : vector<2x1x256xf32>
    %c25 = arith.constant 25 : index
    %330 = memref.load %arg2[%c25] : memref<98xf32, #tpu.memory_space<smem>>
    %331 = vector.extract_strided_slice %11 {offsets = [0, 0, 52], sizes = [2, 1, 256], strides = [1, 1, 1]} : vector<2x2x358xf32> to vector<2x1x256xf32>
    %332 = vector.broadcast %330 : f32 to vector<2x1x256xf32>
    %333 = arith.mulf %331, %332 : vector<2x1x256xf32>
    %334 = arith.addf %329, %333 : vector<2x1x256xf32>
    %c32 = arith.constant 32 : index
    %335 = memref.load %arg2[%c32] : memref<98xf32, #tpu.memory_space<smem>>
    %336 = vector.extract_strided_slice %11 {offsets = [0, 0, 68], sizes = [2, 1, 256], strides = [1, 1, 1]} : vector<2x2x358xf32> to vector<2x1x256xf32>
    %337 = vector.broadcast %335 : f32 to vector<2x1x256xf32>
    %338 = arith.mulf %336, %337 : vector<2x1x256xf32>
    %339 = arith.addf %334, %338 : vector<2x1x256xf32>
    %c39 = arith.constant 39 : index
    %340 = memref.load %arg2[%c39] : memref<98xf32, #tpu.memory_space<smem>>
    %341 = vector.extract_strided_slice %11 {offsets = [0, 0, 84], sizes = [2, 1, 256], strides = [1, 1, 1]} : vector<2x2x358xf32> to vector<2x1x256xf32>
    %342 = vector.broadcast %340 : f32 to vector<2x1x256xf32>
    %343 = arith.mulf %341, %342 : vector<2x1x256xf32>
    %344 = arith.addf %339, %343 : vector<2x1x256xf32>
    %c46 = arith.constant 46 : index
    %345 = memref.load %arg2[%c46] : memref<98xf32, #tpu.memory_space<smem>>
    %346 = vector.extract_strided_slice %11 {offsets = [0, 0, 100], sizes = [2, 1, 256], strides = [1, 1, 1]} : vector<2x2x358xf32> to vector<2x1x256xf32>
    %347 = vector.broadcast %345 : f32 to vector<2x1x256xf32>
    %348 = arith.mulf %346, %347 : vector<2x1x256xf32>
    %349 = arith.addf %344, %348 : vector<2x1x256xf32>
    %c53 = arith.constant 53 : index
    %350 = memref.load %arg2[%c53] : memref<98xf32, #tpu.memory_space<smem>>
    %351 = vector.extract_strided_slice %11 {offsets = [0, 1, 4], sizes = [2, 1, 256], strides = [1, 1, 1]} : vector<2x2x358xf32> to vector<2x1x256xf32>
    %352 = vector.broadcast %350 : f32 to vector<2x1x256xf32>
    %353 = arith.mulf %351, %352 : vector<2x1x256xf32>
    %354 = arith.addf %349, %353 : vector<2x1x256xf32>
    %c60 = arith.constant 60 : index
    %355 = memref.load %arg2[%c60] : memref<98xf32, #tpu.memory_space<smem>>
    %356 = vector.extract_strided_slice %11 {offsets = [0, 1, 20], sizes = [2, 1, 256], strides = [1, 1, 1]} : vector<2x2x358xf32> to vector<2x1x256xf32>
    %357 = vector.broadcast %355 : f32 to vector<2x1x256xf32>
    %358 = arith.mulf %356, %357 : vector<2x1x256xf32>
    %359 = arith.addf %354, %358 : vector<2x1x256xf32>
    %c67 = arith.constant 67 : index
    %360 = memref.load %arg2[%c67] : memref<98xf32, #tpu.memory_space<smem>>
    %361 = vector.extract_strided_slice %11 {offsets = [0, 1, 36], sizes = [2, 1, 256], strides = [1, 1, 1]} : vector<2x2x358xf32> to vector<2x1x256xf32>
    %362 = vector.broadcast %360 : f32 to vector<2x1x256xf32>
    %363 = arith.mulf %361, %362 : vector<2x1x256xf32>
    %364 = arith.addf %359, %363 : vector<2x1x256xf32>
    %c74 = arith.constant 74 : index
    %365 = memref.load %arg2[%c74] : memref<98xf32, #tpu.memory_space<smem>>
    %366 = vector.extract_strided_slice %11 {offsets = [0, 1, 52], sizes = [2, 1, 256], strides = [1, 1, 1]} : vector<2x2x358xf32> to vector<2x1x256xf32>
    %367 = vector.broadcast %365 : f32 to vector<2x1x256xf32>
    %368 = arith.mulf %366, %367 : vector<2x1x256xf32>
    %369 = arith.addf %364, %368 : vector<2x1x256xf32>
    %c81 = arith.constant 81 : index
    %370 = memref.load %arg2[%c81] : memref<98xf32, #tpu.memory_space<smem>>
    %371 = vector.extract_strided_slice %11 {offsets = [0, 1, 68], sizes = [2, 1, 256], strides = [1, 1, 1]} : vector<2x2x358xf32> to vector<2x1x256xf32>
    %372 = vector.broadcast %370 : f32 to vector<2x1x256xf32>
    %373 = arith.mulf %371, %372 : vector<2x1x256xf32>
    %374 = arith.addf %369, %373 : vector<2x1x256xf32>
    %c88 = arith.constant 88 : index
    %375 = memref.load %arg2[%c88] : memref<98xf32, #tpu.memory_space<smem>>
    %376 = vector.extract_strided_slice %11 {offsets = [0, 1, 84], sizes = [2, 1, 256], strides = [1, 1, 1]} : vector<2x2x358xf32> to vector<2x1x256xf32>
    %377 = vector.broadcast %375 : f32 to vector<2x1x256xf32>
    %378 = arith.mulf %376, %377 : vector<2x1x256xf32>
    %379 = arith.addf %374, %378 : vector<2x1x256xf32>
    %c95 = arith.constant 95 : index
    %380 = memref.load %arg2[%c95] : memref<98xf32, #tpu.memory_space<smem>>
    %381 = vector.extract_strided_slice %11 {offsets = [0, 1, 100], sizes = [2, 1, 256], strides = [1, 1, 1]} : vector<2x2x358xf32> to vector<2x1x256xf32>
    %382 = vector.broadcast %380 : f32 to vector<2x1x256xf32>
    %383 = arith.mulf %381, %382 : vector<2x1x256xf32>
    %384 = arith.addf %379, %383 : vector<2x1x256xf32>
    %385 = vector.extract_strided_slice %12 {offsets = [4, 0, 0], sizes = [1, 1, 256], strides = [1, 1, 1]} : vector<7x1x256xf32> to vector<1x1x256xf32>
    %386 = vector.broadcast %385 : vector<1x1x256xf32> to vector<2x1x256xf32>
    %387 = arith.mulf %384, %386 : vector<2x1x256xf32>
    %388 = arith.addf %313, %387 : vector<2x1x256xf32>
    %cst_27 = arith.constant 0.000000e+00 : f32
    %389 = vector.broadcast %cst_27 : f32 to vector<2x1x256xf32>
    %c5 = arith.constant 5 : index
    %390 = memref.load %arg2[%c5] : memref<98xf32, #tpu.memory_space<smem>>
    %391 = vector.extract_strided_slice %11 {offsets = [0, 0, 5], sizes = [2, 1, 256], strides = [1, 1, 1]} : vector<2x2x358xf32> to vector<2x1x256xf32>
    %392 = vector.broadcast %390 : f32 to vector<2x1x256xf32>
    %393 = arith.mulf %391, %392 : vector<2x1x256xf32>
    %394 = arith.addf %389, %393 : vector<2x1x256xf32>
    %c12 = arith.constant 12 : index
    %395 = memref.load %arg2[%c12] : memref<98xf32, #tpu.memory_space<smem>>
    %396 = vector.extract_strided_slice %11 {offsets = [0, 0, 21], sizes = [2, 1, 256], strides = [1, 1, 1]} : vector<2x2x358xf32> to vector<2x1x256xf32>
    %397 = vector.broadcast %395 : f32 to vector<2x1x256xf32>
    %398 = arith.mulf %396, %397 : vector<2x1x256xf32>
    %399 = arith.addf %394, %398 : vector<2x1x256xf32>
    %c19 = arith.constant 19 : index
    %400 = memref.load %arg2[%c19] : memref<98xf32, #tpu.memory_space<smem>>
    %401 = vector.extract_strided_slice %11 {offsets = [0, 0, 37], sizes = [2, 1, 256], strides = [1, 1, 1]} : vector<2x2x358xf32> to vector<2x1x256xf32>
    %402 = vector.broadcast %400 : f32 to vector<2x1x256xf32>
    %403 = arith.mulf %401, %402 : vector<2x1x256xf32>
    %404 = arith.addf %399, %403 : vector<2x1x256xf32>
    %c26 = arith.constant 26 : index
    %405 = memref.load %arg2[%c26] : memref<98xf32, #tpu.memory_space<smem>>
    %406 = vector.extract_strided_slice %11 {offsets = [0, 0, 53], sizes = [2, 1, 256], strides = [1, 1, 1]} : vector<2x2x358xf32> to vector<2x1x256xf32>
    %407 = vector.broadcast %405 : f32 to vector<2x1x256xf32>
    %408 = arith.mulf %406, %407 : vector<2x1x256xf32>
    %409 = arith.addf %404, %408 : vector<2x1x256xf32>
    %c33 = arith.constant 33 : index
    %410 = memref.load %arg2[%c33] : memref<98xf32, #tpu.memory_space<smem>>
    %411 = vector.extract_strided_slice %11 {offsets = [0, 0, 69], sizes = [2, 1, 256], strides = [1, 1, 1]} : vector<2x2x358xf32> to vector<2x1x256xf32>
    %412 = vector.broadcast %410 : f32 to vector<2x1x256xf32>
    %413 = arith.mulf %411, %412 : vector<2x1x256xf32>
    %414 = arith.addf %409, %413 : vector<2x1x256xf32>
    %c40 = arith.constant 40 : index
    %415 = memref.load %arg2[%c40] : memref<98xf32, #tpu.memory_space<smem>>
    %416 = vector.extract_strided_slice %11 {offsets = [0, 0, 85], sizes = [2, 1, 256], strides = [1, 1, 1]} : vector<2x2x358xf32> to vector<2x1x256xf32>
    %417 = vector.broadcast %415 : f32 to vector<2x1x256xf32>
    %418 = arith.mulf %416, %417 : vector<2x1x256xf32>
    %419 = arith.addf %414, %418 : vector<2x1x256xf32>
    %c47 = arith.constant 47 : index
    %420 = memref.load %arg2[%c47] : memref<98xf32, #tpu.memory_space<smem>>
    %421 = vector.extract_strided_slice %11 {offsets = [0, 0, 101], sizes = [2, 1, 256], strides = [1, 1, 1]} : vector<2x2x358xf32> to vector<2x1x256xf32>
    %422 = vector.broadcast %420 : f32 to vector<2x1x256xf32>
    %423 = arith.mulf %421, %422 : vector<2x1x256xf32>
    %424 = arith.addf %419, %423 : vector<2x1x256xf32>
    %c54 = arith.constant 54 : index
    %425 = memref.load %arg2[%c54] : memref<98xf32, #tpu.memory_space<smem>>
    %426 = vector.extract_strided_slice %11 {offsets = [0, 1, 5], sizes = [2, 1, 256], strides = [1, 1, 1]} : vector<2x2x358xf32> to vector<2x1x256xf32>
    %427 = vector.broadcast %425 : f32 to vector<2x1x256xf32>
    %428 = arith.mulf %426, %427 : vector<2x1x256xf32>
    %429 = arith.addf %424, %428 : vector<2x1x256xf32>
    %c61 = arith.constant 61 : index
    %430 = memref.load %arg2[%c61] : memref<98xf32, #tpu.memory_space<smem>>
    %431 = vector.extract_strided_slice %11 {offsets = [0, 1, 21], sizes = [2, 1, 256], strides = [1, 1, 1]} : vector<2x2x358xf32> to vector<2x1x256xf32>
    %432 = vector.broadcast %430 : f32 to vector<2x1x256xf32>
    %433 = arith.mulf %431, %432 : vector<2x1x256xf32>
    %434 = arith.addf %429, %433 : vector<2x1x256xf32>
    %c68 = arith.constant 68 : index
    %435 = memref.load %arg2[%c68] : memref<98xf32, #tpu.memory_space<smem>>
    %436 = vector.extract_strided_slice %11 {offsets = [0, 1, 37], sizes = [2, 1, 256], strides = [1, 1, 1]} : vector<2x2x358xf32> to vector<2x1x256xf32>
    %437 = vector.broadcast %435 : f32 to vector<2x1x256xf32>
    %438 = arith.mulf %436, %437 : vector<2x1x256xf32>
    %439 = arith.addf %434, %438 : vector<2x1x256xf32>
    %c75 = arith.constant 75 : index
    %440 = memref.load %arg2[%c75] : memref<98xf32, #tpu.memory_space<smem>>
    %441 = vector.extract_strided_slice %11 {offsets = [0, 1, 53], sizes = [2, 1, 256], strides = [1, 1, 1]} : vector<2x2x358xf32> to vector<2x1x256xf32>
    %442 = vector.broadcast %440 : f32 to vector<2x1x256xf32>
    %443 = arith.mulf %441, %442 : vector<2x1x256xf32>
    %444 = arith.addf %439, %443 : vector<2x1x256xf32>
    %c82 = arith.constant 82 : index
    %445 = memref.load %arg2[%c82] : memref<98xf32, #tpu.memory_space<smem>>
    %446 = vector.extract_strided_slice %11 {offsets = [0, 1, 69], sizes = [2, 1, 256], strides = [1, 1, 1]} : vector<2x2x358xf32> to vector<2x1x256xf32>
    %447 = vector.broadcast %445 : f32 to vector<2x1x256xf32>
    %448 = arith.mulf %446, %447 : vector<2x1x256xf32>
    %449 = arith.addf %444, %448 : vector<2x1x256xf32>
    %c89 = arith.constant 89 : index
    %450 = memref.load %arg2[%c89] : memref<98xf32, #tpu.memory_space<smem>>
    %451 = vector.extract_strided_slice %11 {offsets = [0, 1, 85], sizes = [2, 1, 256], strides = [1, 1, 1]} : vector<2x2x358xf32> to vector<2x1x256xf32>
    %452 = vector.broadcast %450 : f32 to vector<2x1x256xf32>
    %453 = arith.mulf %451, %452 : vector<2x1x256xf32>
    %454 = arith.addf %449, %453 : vector<2x1x256xf32>
    %c96 = arith.constant 96 : index
    %455 = memref.load %arg2[%c96] : memref<98xf32, #tpu.memory_space<smem>>
    %456 = vector.extract_strided_slice %11 {offsets = [0, 1, 101], sizes = [2, 1, 256], strides = [1, 1, 1]} : vector<2x2x358xf32> to vector<2x1x256xf32>
    %457 = vector.broadcast %455 : f32 to vector<2x1x256xf32>
    %458 = arith.mulf %456, %457 : vector<2x1x256xf32>
    %459 = arith.addf %454, %458 : vector<2x1x256xf32>
    %460 = vector.extract_strided_slice %12 {offsets = [5, 0, 0], sizes = [1, 1, 256], strides = [1, 1, 1]} : vector<7x1x256xf32> to vector<1x1x256xf32>
    %461 = vector.broadcast %460 : vector<1x1x256xf32> to vector<2x1x256xf32>
    %462 = arith.mulf %459, %461 : vector<2x1x256xf32>
    %463 = arith.addf %388, %462 : vector<2x1x256xf32>
    %cst_28 = arith.constant 0.000000e+00 : f32
    %464 = vector.broadcast %cst_28 : f32 to vector<2x1x256xf32>
    %c6 = arith.constant 6 : index
    %465 = memref.load %arg2[%c6] : memref<98xf32, #tpu.memory_space<smem>>
    %466 = vector.extract_strided_slice %11 {offsets = [0, 0, 6], sizes = [2, 1, 256], strides = [1, 1, 1]} : vector<2x2x358xf32> to vector<2x1x256xf32>
    %467 = vector.broadcast %465 : f32 to vector<2x1x256xf32>
    %468 = arith.mulf %466, %467 : vector<2x1x256xf32>
    %469 = arith.addf %464, %468 : vector<2x1x256xf32>
    %c13 = arith.constant 13 : index
    %470 = memref.load %arg2[%c13] : memref<98xf32, #tpu.memory_space<smem>>
    %471 = vector.extract_strided_slice %11 {offsets = [0, 0, 22], sizes = [2, 1, 256], strides = [1, 1, 1]} : vector<2x2x358xf32> to vector<2x1x256xf32>
    %472 = vector.broadcast %470 : f32 to vector<2x1x256xf32>
    %473 = arith.mulf %471, %472 : vector<2x1x256xf32>
    %474 = arith.addf %469, %473 : vector<2x1x256xf32>
    %c20 = arith.constant 20 : index
    %475 = memref.load %arg2[%c20] : memref<98xf32, #tpu.memory_space<smem>>
    %476 = vector.extract_strided_slice %11 {offsets = [0, 0, 38], sizes = [2, 1, 256], strides = [1, 1, 1]} : vector<2x2x358xf32> to vector<2x1x256xf32>
    %477 = vector.broadcast %475 : f32 to vector<2x1x256xf32>
    %478 = arith.mulf %476, %477 : vector<2x1x256xf32>
    %479 = arith.addf %474, %478 : vector<2x1x256xf32>
    %c27 = arith.constant 27 : index
    %480 = memref.load %arg2[%c27] : memref<98xf32, #tpu.memory_space<smem>>
    %481 = vector.extract_strided_slice %11 {offsets = [0, 0, 54], sizes = [2, 1, 256], strides = [1, 1, 1]} : vector<2x2x358xf32> to vector<2x1x256xf32>
    %482 = vector.broadcast %480 : f32 to vector<2x1x256xf32>
    %483 = arith.mulf %481, %482 : vector<2x1x256xf32>
    %484 = arith.addf %479, %483 : vector<2x1x256xf32>
    %c34 = arith.constant 34 : index
    %485 = memref.load %arg2[%c34] : memref<98xf32, #tpu.memory_space<smem>>
    %486 = vector.extract_strided_slice %11 {offsets = [0, 0, 70], sizes = [2, 1, 256], strides = [1, 1, 1]} : vector<2x2x358xf32> to vector<2x1x256xf32>
    %487 = vector.broadcast %485 : f32 to vector<2x1x256xf32>
    %488 = arith.mulf %486, %487 : vector<2x1x256xf32>
    %489 = arith.addf %484, %488 : vector<2x1x256xf32>
    %c41 = arith.constant 41 : index
    %490 = memref.load %arg2[%c41] : memref<98xf32, #tpu.memory_space<smem>>
    %491 = vector.extract_strided_slice %11 {offsets = [0, 0, 86], sizes = [2, 1, 256], strides = [1, 1, 1]} : vector<2x2x358xf32> to vector<2x1x256xf32>
    %492 = vector.broadcast %490 : f32 to vector<2x1x256xf32>
    %493 = arith.mulf %491, %492 : vector<2x1x256xf32>
    %494 = arith.addf %489, %493 : vector<2x1x256xf32>
    %c48 = arith.constant 48 : index
    %495 = memref.load %arg2[%c48] : memref<98xf32, #tpu.memory_space<smem>>
    %496 = vector.extract_strided_slice %11 {offsets = [0, 0, 102], sizes = [2, 1, 256], strides = [1, 1, 1]} : vector<2x2x358xf32> to vector<2x1x256xf32>
    %497 = vector.broadcast %495 : f32 to vector<2x1x256xf32>
    %498 = arith.mulf %496, %497 : vector<2x1x256xf32>
    %499 = arith.addf %494, %498 : vector<2x1x256xf32>
    %c55 = arith.constant 55 : index
    %500 = memref.load %arg2[%c55] : memref<98xf32, #tpu.memory_space<smem>>
    %501 = vector.extract_strided_slice %11 {offsets = [0, 1, 6], sizes = [2, 1, 256], strides = [1, 1, 1]} : vector<2x2x358xf32> to vector<2x1x256xf32>
    %502 = vector.broadcast %500 : f32 to vector<2x1x256xf32>
    %503 = arith.mulf %501, %502 : vector<2x1x256xf32>
    %504 = arith.addf %499, %503 : vector<2x1x256xf32>
    %c62 = arith.constant 62 : index
    %505 = memref.load %arg2[%c62] : memref<98xf32, #tpu.memory_space<smem>>
    %506 = vector.extract_strided_slice %11 {offsets = [0, 1, 22], sizes = [2, 1, 256], strides = [1, 1, 1]} : vector<2x2x358xf32> to vector<2x1x256xf32>
    %507 = vector.broadcast %505 : f32 to vector<2x1x256xf32>
    %508 = arith.mulf %506, %507 : vector<2x1x256xf32>
    %509 = arith.addf %504, %508 : vector<2x1x256xf32>
    %c69 = arith.constant 69 : index
    %510 = memref.load %arg2[%c69] : memref<98xf32, #tpu.memory_space<smem>>
    %511 = vector.extract_strided_slice %11 {offsets = [0, 1, 38], sizes = [2, 1, 256], strides = [1, 1, 1]} : vector<2x2x358xf32> to vector<2x1x256xf32>
    %512 = vector.broadcast %510 : f32 to vector<2x1x256xf32>
    %513 = arith.mulf %511, %512 : vector<2x1x256xf32>
    %514 = arith.addf %509, %513 : vector<2x1x256xf32>
    %c76 = arith.constant 76 : index
    %515 = memref.load %arg2[%c76] : memref<98xf32, #tpu.memory_space<smem>>
    %516 = vector.extract_strided_slice %11 {offsets = [0, 1, 54], sizes = [2, 1, 256], strides = [1, 1, 1]} : vector<2x2x358xf32> to vector<2x1x256xf32>
    %517 = vector.broadcast %515 : f32 to vector<2x1x256xf32>
    %518 = arith.mulf %516, %517 : vector<2x1x256xf32>
    %519 = arith.addf %514, %518 : vector<2x1x256xf32>
    %c83 = arith.constant 83 : index
    %520 = memref.load %arg2[%c83] : memref<98xf32, #tpu.memory_space<smem>>
    %521 = vector.extract_strided_slice %11 {offsets = [0, 1, 70], sizes = [2, 1, 256], strides = [1, 1, 1]} : vector<2x2x358xf32> to vector<2x1x256xf32>
    %522 = vector.broadcast %520 : f32 to vector<2x1x256xf32>
    %523 = arith.mulf %521, %522 : vector<2x1x256xf32>
    %524 = arith.addf %519, %523 : vector<2x1x256xf32>
    %c90 = arith.constant 90 : index
    %525 = memref.load %arg2[%c90] : memref<98xf32, #tpu.memory_space<smem>>
    %526 = vector.extract_strided_slice %11 {offsets = [0, 1, 86], sizes = [2, 1, 256], strides = [1, 1, 1]} : vector<2x2x358xf32> to vector<2x1x256xf32>
    %527 = vector.broadcast %525 : f32 to vector<2x1x256xf32>
    %528 = arith.mulf %526, %527 : vector<2x1x256xf32>
    %529 = arith.addf %524, %528 : vector<2x1x256xf32>
    %c97 = arith.constant 97 : index
    %530 = memref.load %arg2[%c97] : memref<98xf32, #tpu.memory_space<smem>>
    %531 = vector.extract_strided_slice %11 {offsets = [0, 1, 102], sizes = [2, 1, 256], strides = [1, 1, 1]} : vector<2x2x358xf32> to vector<2x1x256xf32>
    %532 = vector.broadcast %530 : f32 to vector<2x1x256xf32>
    %533 = arith.mulf %531, %532 : vector<2x1x256xf32>
    %534 = arith.addf %529, %533 : vector<2x1x256xf32>
    %535 = vector.extract_strided_slice %12 {offsets = [6, 0, 0], sizes = [1, 1, 256], strides = [1, 1, 1]} : vector<7x1x256xf32> to vector<1x1x256xf32>
    %536 = vector.broadcast %535 : vector<1x1x256xf32> to vector<2x1x256xf32>
    %537 = arith.mulf %534, %536 : vector<2x1x256xf32>
    %538 = arith.addf %463, %537 : vector<2x1x256xf32>
    %539 = vector.shape_cast %538 : vector<2x1x256xf32> to vector<1x2x1x256xf32>
    %cst_29 = arith.constant dense<0.000000e+00> : vector<1xf32>
    %540 = vector.multi_reduction <add>, %539, %cst_29 [1, 2, 3] : vector<1x2x1x256xf32> to vector<1xf32>
    %541 = vector.shape_cast %540 : vector<1xf32> to vector<1x1x1x1xf32>
    %542 = vector.extract %541[0, 0, 0, 0] : f32 from vector<1x1x1x1xf32>
    %543 = vector.broadcast %542 : f32 to vector<1x1x1xf32>
    %cst_30 = arith.constant 5.120000e+02 : f32
    %544 = vector.broadcast %cst_30 : f32 to vector<1x1x1xf32>
    %545 = arith.divf %543, %544 : vector<1x1x1xf32>
    %546 = vector.broadcast %545 : vector<1x1x1xf32> to vector<2x1x256xf32>
    %547 = arith.subf %538, %546 : vector<2x1x256xf32>
    %548 = arith.mulf %547, %547 : vector<2x1x256xf32>
    %549 = vector.shape_cast %548 : vector<2x1x256xf32> to vector<1x2x1x256xf32>
    %cst_31 = arith.constant dense<0.000000e+00> : vector<1xf32>
    %550 = vector.multi_reduction <add>, %549, %cst_31 [1, 2, 3] : vector<1x2x1x256xf32> to vector<1xf32>
    %551 = vector.shape_cast %550 : vector<1xf32> to vector<1x1x1x1xf32>
    %552 = vector.extract %551[0, 0, 0, 0] : f32 from vector<1x1x1x1xf32>
    %553 = vector.broadcast %552 : f32 to vector<1x1x1xf32>
    %cst_32 = arith.constant 5.120000e+02 : f32
    %554 = vector.broadcast %cst_32 : f32 to vector<1x1x1xf32>
    %555 = arith.divf %553, %554 : vector<1x1x1xf32>
    %556 = vector.broadcast %545 : vector<1x1x1xf32> to vector<2x1x256xf32>
    %557 = arith.subf %538, %556 : vector<2x1x256xf32>
    %cst_33 = arith.constant 1.000000e-03 : f32
    %558 = vector.broadcast %cst_33 : f32 to vector<1x1x1xf32>
    %559 = arith.addf %555, %558 : vector<1x1x1xf32>
    %560 = math.rsqrt %559 : vector<1x1x1xf32>
    %561 = vector.broadcast %560 : vector<1x1x1xf32> to vector<2x1x256xf32>
    %562 = arith.mulf %557, %561 : vector<2x1x256xf32>
    %c0_34 = arith.constant 0 : index
    %563 = memref.load %arg3[%c0_34] : memref<2xf32, #tpu.memory_space<smem>>
    %564 = vector.broadcast %563 : f32 to vector<2x1x256xf32>
    %565 = arith.mulf %562, %564 : vector<2x1x256xf32>
    %c1_35 = arith.constant 1 : index
    %566 = memref.load %arg3[%c1_35] : memref<2xf32, #tpu.memory_space<smem>>
    %567 = vector.broadcast %566 : f32 to vector<2x1x256xf32>
    %568 = arith.addf %565, %567 : vector<2x1x256xf32>
    %569 = arith.negf %568 : vector<2x1x256xf32>
    %570 = math.exp %569 : vector<2x1x256xf32>
    %cst_36 = arith.constant 1.000000e+00 : f32
    %571 = vector.broadcast %cst_36 : f32 to vector<2x1x256xf32>
    %572 = arith.addf %571, %570 : vector<2x1x256xf32>
    %573 = arith.divf %571, %572 : vector<2x1x256xf32>
    %c0_37 = arith.constant 0 : index
    %c0_38 = arith.constant 0 : index
    %c0_39 = arith.constant 0 : index
    %574 = vector.load %arg1[%c0_37, %c0_38, %c0_39] : memref<2x4x256xf32, #tpu.memory_space<vmem>>, vector<2x4x256xf32>
    %575 = vector.broadcast %573 : vector<2x1x256xf32> to vector<2x4x256xf32>
    %576 = arith.mulf %574, %575 : vector<2x4x256xf32>
    %c0_40 = arith.constant 0 : index
    %c0_41 = arith.constant 0 : index
    %c0_42 = arith.constant 0 : index
    %577 = vector.load %arg5[%c0_40, %c0_41, %c0_42] : memref<2x4x256xf32, #tpu.memory_space<vmem>>, vector<2x4x256xf32>
    tpu.vector_store %arg5[%c0_40, %c0_41, %c0_42], %576 {strides = array<i32>} : memref<2x4x256xf32, #tpu.memory_space<vmem>>, vector<2x4x256xf32>,
    return
  }
  func.func @transform_0(%arg0: i32) -> (i32, i32, i32) {
    %c0_i32 = arith.constant 0 : i32
    %c0_i32_0 = arith.constant 0 : i32
    %c0_i32_1 = arith.constant 0 : i32
    %c0_i32_2 = arith.constant 0 : i32
    return %c0_i32, %c0_i32_0, %c0_i32_1 : i32, i32, i32
  }
  func.func @transform_1(%arg0: i32) -> i32 {
    %c0_i32 = arith.constant 0 : i32
    %c0_i32_0 = arith.constant 0 : i32
    return %c0_i32 : i32
  }
  func.func @transform_2(%arg0: i32) -> i32 {
    %c0_i32 = arith.constant 0 : i32
    %c0_i32_0 = arith.constant 0 : i32
    return %c0_i32 : i32
  }
  func.func @transform_3(%arg0: i32) -> (i32, i32, i32) {
    %c0_i32 = arith.constant 0 : i32
    %c0_i32_0 = arith.constant 0 : i32
    %c0_i32_1 = arith.constant 0 : i32
    %c0_i32_2 = arith.constant 0 : i32
    return %c0_i32, %c0_i32_0, %c0_i32_1 : i32, i32, i32
  }
  func.func @transform_4(%arg0: i32) -> (i32, i32, i32) {
    %c0_i32 = arith.constant 0 : i32
    %c0_i32_0 = arith.constant 0 : i32
    %c0_i32_1 = arith.constant 0 : i32
    %c0_i32_2 = arith.constant 0 : i32
    return %c0_i32, %c0_i32_0, %c0_i32_1 : i32, i32, i32
  }
}

</mosaic_0001>

<bundles_post_ra>
// kernel: _sam_forward.1
= control target key start
LH: loop header
LB: loop body
LE: loop exit
PB: predicated region body
PF: predicated region fallthrough
CT: control target
= control target key end

     0   :  { %s4580_s0 = inlined_call_operand.vmem [shape: f32[2,4,256], index: 0, kind: input, shape index: {}]   ;;  %s4581_s1 = inlined_call_operand.vmem [shape: f32[98], index: 1, kind: input, shape index: {}]   ;;  %s4582_s2 = inlined_call_operand.vmem [shape: f32[2], index: 2, kind: input, shape index: {}]   ;;  %s4583_s3 = inlined_call_operand.vmem [shape: f32[7,1,256], index: 3, kind: input, shape index: {}]   ;;  %s4584_s4 = inlined_call_operand.vmem [shape: f32[2,4,256], index: 4, kind: output, shape index: {}]  }
   0x1   :  { %4694 = sst [smem:[#allocation103_spill]] %s4584_s4 }
   0x2   :  { %9 = vsyncpa [#allocation4], 0  ;;  %s19_s17 = sshll.u32 %s4581_s1, 4  ;;  %s20_s17 = int_to_ptr.vmem [resolvable:$true] %s19_s17 }
   0x3   :  { %10 = vsyncpa [#allocation6], 0  ;;  %s29_s20 = sshll.u32 %s4582_s2, 4  ;;  %s2662_s21 = scalar_lea.vmem %s20_s17, 16  ;;  %s30_s20 = int_to_ptr.vmem [resolvable:$true] %s29_s20 }
   0x4   :  { %p2663_p0 = scmp.ne.s32.totalorder %s20_s17, %s2662_s21  ;;  %p2667_p1 = scmp.lt.s32.totalorder %s20_s17, %s20_s17 }
   0x5   :  { %p2668_p2 = scmp.lt.s32.totalorder %s2662_s21, %s2662_s21 }
   0x7   :  { %p2669_p3 = por %p2668_p2, %p2667_p1 }
   0x9   :  { %p2670_p4 = pnand %p2669_p3, %p2663_p0 }
   0xb   :  { %2673 = shalt.err (!%p2670_p4)
}
   0xc   :  { %s2690_s22 = smov [#allocation3]   ;;  %s2674_s23 = scalar_lea.vmem %s30_s20, 16 }
   0xd   :  { %22 = dma.vmem_to_smem %s20_s17, 16, %s2690_s22, [#allocation4]  }
   0xe   :  { %p2675_p5 = scmp.ne.s32.totalorder %s30_s20, %s2674_s23  ;;  %p2679_p6 = scmp.lt.s32.totalorder %s30_s20, %s30_s20 }
   0xf   :  { %p2680_p7 = scmp.lt.s32.totalorder %s2674_s23, %s2674_s23 }
  0x11   :  { %p2681_p8 = por %p2680_p7, %p2679_p6 }
  0x13   :  { %p2682_p9 = pnand %p2681_p8, %p2675_p5 }
  0x15   :  { %2685 = shalt.err (!%p2682_p9)
}
  0x16   :  { %s2691_s1 = smov [#allocation5]  }
  0x17   :  { %32 = dma.vmem_to_smem %s30_s20, 16, %s2691_s1, [#allocation6]  }
  0x18   :  { %2686 = dma.done.wait [#allocation4], 16  }
  0x19   :  { %2687 = vsyncadd [#allocation4], 4294967280 }
  0x1a   :  { %2688 = dma.done.wait [#allocation6], 16  }
  0x1b   :  { %2689 = vsyncadd [#allocation6], 4294967280 }
  0x1c   :  { %41 = sfence }
  0x1d   :  { %v43_v0 = vld [vmem:[%s4580_s0 + $0x8] sm:$0xff]  ;;  %vm50_vm0 = vcmask 1043456   ;;  %v126_v1 = vlaneseq  ;;  %v42_v2 = vld [vmem:[%s4580_s0] sm:$0xff]  ;;  %v2692_v5 = vmov 1966171168   ;;  %vm111_vm1 = vcmask 1041408  }
  0x1e   :  { %v47_v3 = vcombine.high %v43_v0, %v43_v0  ;;  %v65_v4 = vsel %vm50_vm0, %v43_v0, -inf  ;;  %v124_v6 = vunpack.c.l.s4 %v2692_v5  ;;  %v46_v7 = vcombine.high %v42_v2, %v42_v2  ;;  %s2694_s27 = smov 51   ;;  %s2448_s28 = sld [smem:[#allocation3 + $0x8]] }
  0x1f   :  { %v66_v8 = vrot.slane %v65_v4, 4  ;;  %v2753_v9 = vshrl.u32 %v126_v1, 7  ;;  %v51_v10 = vsel %vm50_vm0, %v42_v2, -inf  ;;  %v93_v11 = vsel %vm50_vm0, %v43_v0, 0.0  ;;  %s2788_s29 = sld [smem:[#allocation3 + $0x9]]  ;;  %s2449_s30 = sld [smem:[#allocation3 + $0xf]] }
  0x20   :  { %v72_v12 = vsel %vm50_vm0, %v47_v3, -inf  ;;  %v125_v13 = vunpack.c.0.s8 %v124_v6  ;;  %v52_v14 = vrot.slane %v51_v10, 4  ;;  %v58_v15 = vsel %vm50_vm0, %v46_v7, -inf  ;;  %s2450_s5 = sld [smem:[#allocation3 + $0x16]]  ;;  %s2797_s6 = sld [smem:[#allocation3 + $0x10]] }
  0x21   :  { %4695 = vst [vmem:[#allocation9_spill] sm:$0xff] %v2753_v9  ;;  %v67_v16 = vmax.f32 %v65_v4, %v66_v8  ;;  %v73_v17 = vrot.slane %v72_v12, 4  ;;  %v59_v18 = vrot.slane %v58_v15, 4  ;;  %v94_v21 = vrot.slane %v93_v11, 4  ;;  %s4619_s7 = smov 112   ;;  %s2504_s8 = sld [smem:[#allocation3 + $0xa]] }
  0x22   :  { %v2760_v19 = vsub.s32 %v125_v13, %v2753_v9  ;;  %v53_v20 = vmax.f32 %v51_v10, %v52_v14  ;;  %v100_v22 = vsel %vm50_vm0, %v47_v3, 0.0  ;;  %v79_v29 = vsel %vm50_vm0, %v42_v2, 0.0  ;;  %s4631_s9 = smov 96   ;;  %s4621_s10 = smov 80  }
  0x23   :  { %v68_v23 = vrot.slane %v67_v16, 2  ;;  %v74_v24 = vmax.f32 %v72_v12, %v73_v17  ;;  %v60_v25 = vmax.f32 %v58_v15, %v59_v18  ;;  %v101_v26 = vrot.slane %v100_v22, 4  ;;  %s2813_s11 = sld [smem:[#allocation3 + $0x1d]]  ;;  %s2819_s12 = sld [smem:[#allocation3 + $0x17]] }
  0x24   :  { %v54_v27 = vrot.slane %v53_v20, 2  ;;  %v95_v28 = vadd.f32 %v94_v21, %v93_v11  ;;  %v86_v30 = vsel %vm50_vm0, %v46_v7, 0.0  ;;  %v80_v37 = vrot.slane %v79_v29, 4  ;;  %s2822_s13 = sld [smem:[#allocation3 + $0xb]]  ;;  %s2828_s14 = sld [smem:[#allocation3 + $0x11]] }
  0x25   :  { %v69_v31 = vmax.f32 %v67_v16, %v68_v23  ;;  %v75_v32 = vrot.slane %v74_v24, 2  ;;  %v61_v33 = vrot.slane %v60_v25, 2  ;;  %v102_v34 = vadd.f32 %v101_v26, %v100_v22  ;;  %s2831_s15 = sld [smem:[#allocation3 + $0x24]]  ;;  %s4623_s16 = smov 64  }
  0x26   :  { %v55_v35 = vmax.f32 %v53_v20, %v54_v27  ;;  %v96_v36 = vrot.slane %v95_v28, 2  ;;  %v87_v38 = vrot.slane %v86_v30, 4  ;;  %v81_v45 = vadd.f32 %v80_v37, %v79_v29  ;;  %s2839_s17 = sld [smem:[#allocation3 + $0x1e]]  ;;  %s2847_s18 = sld [smem:[#allocation3 + $0x18]] }
  0x27   :  { %v70_v39 = vrot.slane %v69_v31, 1  ;;  %v76_v40 = vmax.f32 %v74_v24, %v75_v32  ;;  %v62_v41 = vmax.f32 %v60_v25, %v61_v33  ;;  %v103_v42 = vrot.slane %v102_v34, 2  ;;  %s2854_s19 = sld [smem:[#allocation3 + $0x12]]  ;;  %s4625_s20 = smov 48  }
  0x28   :  { %v56_v43 = vrot.slane %v55_v35, 1  ;;  %v97_v44 = vadd.f32 %v96_v36, %v95_v28  ;;  %v88_v46 = vadd.f32 %v87_v38, %v86_v30  ;;  %v82_v53 = vrot.slane %v81_v45, 2  ;;  %s2864_s21 = sld [smem:[#allocation3 + $0xc]]  ;;  %s2871_s22 = sld [smem:[#allocation3 + $0x2b]] }
  0x29   :  { %v71_v47 = vmax.f32 %v69_v31, %v70_v39  ;;  %v77_v48 = vrot.slane %v76_v40, 1  ;;  %v63_v49 = vrot.slane %v62_v41, 1  ;;  %v104_v50 = vadd.f32 %v103_v42, %v102_v34  ;;  %s2878_s23 = sld [smem:[#allocation3 + $0x25]]  ;;  %s2885_s1 = sld [smem:[#allocation3 + $0x1f]] }
  0x2a   :  { %v57_v51 = vmax.f32 %v55_v35, %v56_v43  ;;  %v98_v52 = vrot.slane %v97_v44, 1  ;;  %v89_v54 = vrot.slane %v88_v46, 2  ;;  %v83_v59 = vadd.f32 %v82_v53, %v81_v45  ;;  %s2892_s2 = sld [smem:[#allocation3 + $0x19]]  ;;  %s4627_s24 = smov 32  }
  0x2b   :  { %v78_v55 = vmax.f32 %v76_v40, %v77_v48  ;;  %v64_v56 = vmax.f32 %v62_v41, %v63_v49  ;;  %v105_v57 = vrot.slane %v104_v50, 1  ;;  %vm112_vm2 = vcmask 1043458   ;;  %s2895_s25 = sld [smem:[#allocation3 + $0xd]]  ;;  %s2901_s26 = sld [smem:[#allocation3 + $0x13]] }
  0x2c   :  { %v99_v58 = vadd.f32 %v98_v52, %v97_v44  ;;  %v90_v60 = vadd.f32 %v89_v54, %v88_v46  ;;  %vm113_vm3 = vmor %vm112_vm2, %vm111_vm1  ;;  %vm114_vm4 = vcmask 832516   ;;  %v84_v2 = vrot.slane %v83_v59, 1  ;;  %s3472_s4 = sld [smem:[#allocation3 + $0x38]] }
  0x2d   :  { %v137_v61 = vcombine.low %v71_v47, %v78_v55  ;;  %v122_v62 = vcombine.low %v57_v51, %v64_v56  ;;  %v106_v63 = vadd.f32 %v105_v57, %v104_v50  ;;  %vm115_vm5 = vmor %vm114_vm4, %vm113_vm3  ;;  %v2693_v7 = vmov 0.0  }
  0x2e   :  { %v109_v0 = vmul.f32 0.25, %v99_v58  ;;  %v91_v3 = vrot.slane %v90_v60, 1  ;;  %117 = vst.msk [vmem:[#allocation2 + $0x6] sm:$0x3f] %vm115_vm5, %v2693_v7  ;;  %116 = vst.msk [vmem:[#allocation2] sm:$0x3f] %vm115_vm5, %v2693_v7  ;;  %v85_v8 = vadd.f32 %v84_v2, %v83_v59  ;;  %v513_v33 = vstv %s2448_s28 }
  0x2f   :  { %v144_v4 = vrot.slane %v137_v61, %v2760_v19  ;;  %v129_v5 = vrot.slane %v122_v62, %v2760_v19  ;;  %v110_v6 = vmul.f32 0.25, %v106_v63  ;;  %vm164_vm6 = vcmp.ge.s32.totalorder %v126_v1, 51  ;;  %s2508_s28 = sld [smem:[#allocation3 + $0x26]] }
  0x30   :  { %v92_v10 = vadd.f32 %v91_v3, %v90_v60  ;;  %v107_v14 = vmul.f32 0.25, %v85_v8  ;;  %vm165_vm7 = vcmp.lt.s32.totalorder %v126_v1, 307  ;;  %vm158_vm8 = vcmask 416768  }
  0x31   :  { %v151_v11 = vrot.slane %v144_v4, %v2760_v19  ;;  %v136_v12 = vrot.slane %v129_v5, %v2760_v19  ;;  %v189_v13 = vcombine.low %v109_v0, %v110_v6  ;;  %vm2775_vm9 = vmand %vm164_vm6, %vm165_vm7  ;;  %v804_v36 = vstv %s2788_s29  ;;  %s2535_s29 = sld [smem:[#allocation3 + $0x20]] }
  0x32   :  { %v108_v15 = vmul.f32 0.25, %v92_v10  ;;  %v531_v40 = vstv %s2449_s30  ;;  %v549_v41 = vstv %s2450_s5  ;;  %v822_v44 = vstv %s2797_s6  ;;  %s2562_s30 = sld [smem:[#allocation3 + $0x1a]]  ;;  %s2589_s5 = sld [smem:[#allocation3 + $0x14]] }
  0x33   :  { %154 = vrot.lane.b32.xlu1 %v151_v11, %s2694_s27  ;;  %152 = vrot.lane.b32.xlu0 %v136_v12, %s2694_s27  ;;  %v196_v16 = vrot.slane %v189_v13, %v2760_v19  ;;  %v1095_v49 = vstv %s2504_s8  ;;  %v567_v52 = vstv %s2813_s11  ;;  %s2941_s6 = sld [smem:[#allocation3 + $0x2d]]  ;;  %s2536_s8 = sld [smem:[#allocation3 + $0x27]]  ;;  %vm245_vm10 = vcmask 916480  }
  0x34   :  { %v174_v17 = vcombine.low %v107_v14, %v108_v15  ;;  %v840_v55 = vstv %s2819_s12  ;;  %v1386_v56 = vstv %s2822_s13  ;;  %v1113_v59 = vstv %s2828_s14  ;;  %s2563_s11 = sld [smem:[#allocation3 + $0x21]]  ;;  %s2590_s12 = sld [smem:[#allocation3 + $0x1b]] }
  0x35   :  { %v203_v18 = vrot.slane %v196_v16, %v2760_v19  ;;  %v585_v60 = vstv %s2831_s15  ;;  %v858_v63 = vstv %s2839_s17  ;;  %v1131_v3 = vstv %s2847_s18  ;;  %s2961_s13 = sld [smem:[#allocation3 + $0x28]]  ;;  %s2457_s14 = sld [smem:[#allocation3 + $0x39]] }
  0x36   :  { %v181_v20 = vrot.slane %v174_v17, %v2760_v19  ;;  %v1404_v6 = vstv %s2854_s19  ;;  %v1677_v12 = vstv %s2864_s21  ;;  %v603_v15 = vstv %s2871_s22  ;;  %s2966_s15 = sld [smem:[#allocation3 + $0x2e]]  ;;  %s2976_s17 = sld [smem:[#allocation3 + $0x3a]] }
  0x37   :  { %206 = vrot.lane.b32.xlu1 %v203_v18, %s2694_s27  ;;  %v876_v18 = vstv %s2878_s23  ;;  %s2987_s18 = sld [smem:[#allocation3 + $0x22]]  ;;  %s2990_s19 = sld [smem:[#allocation3 + $0x40]]  ;;  %vm264_vm11 = vcmask 785408   ;;  %vm283_vm12 = vcmask 654336   ;;  %vm302_vm13 = vcmask 523264  }
  0x38   :  { %v188_v21 = vrot.slane %v181_v20, %v2760_v19  ;;  %s3009_s21 = sld [smem:[#allocation3 + $0x47]]  ;;  %s3013_s22 = sld [smem:[#allocation3 + $0x3b]]  ;;  %vm321_vm14 = vcmask 392192   ;;  %vm340_vm15 = vcmask 261120   ;;  %vm777_vm0 = vcmask 7168  }
  0x39   :  { %s3022_s23 = sld [smem:[#allocation3 + $0x41]]  ;;  %vm1068_vm1 = vcmask 15360   ;;  %vm1359_vm2 = vcmask 23552   ;;  %vm1650_vm3 = vcmask 31744   ;;  %vm1941_vm4 = vcmask 39936  }
  0x3a   :  { %204 = vrot.lane.b32.xlu0 %v188_v21, %s2694_s27  ;;  %s2914_s27 = sld [smem:[#allocation3 + $0x2c]]  ;;  %vm2232_vm5 = vcmask 48128   ;;  %vm790_vm6 = vcmask 1039360   ;;  %vm1081_vm7 = vcmask 1031168  }
  0xa5   :  { %v155_v22 = vpop.permute.xlu1 %154  ;;  %v153_v23 = vpop.permute.xlu0 %152 }
  0xa6   :  { %v157_v25 = vrot.slane %v155_v22, 7  ;;  %v156_v26 = vrot.slane %v153_v23, 7 }
  0xa8   :  { %v160_v27 = vsel %vm158_vm8, %v157_v25, %v155_v22  ;;  %v159_v28 = vsel %vm158_vm8, %v156_v26, %v153_v23  ;;  %v1149_v22 = vstv %s2885_s1  ;;  %v1422_v25 = vstv %s2892_s2  ;;  %s3044_s1 = sld [smem:[#allocation3 + $0x2f]]  ;;  %s3053_s2 = sld [smem:[#allocation3 + $0x29]] }
  0xa9   :  { %169 = vst.msk [vmem:[#allocation2 + $0x6] ss:$2 sm:$0x7] %vm2775_vm9, %v160_v27  ;;  %167 = vst.msk [vmem:[#allocation2] ss:$2 sm:$0x7] %vm2775_vm9, %v159_v28  ;;  %v207_v1 = vpop.permute.xlu1 %206  ;;  %v1968_v26 = vstv %s2895_s25 }
  0xaa   :  { %v209_v19 = vrot.slane %v207_v1, 7  ;;  %s3055_s25 = sld [smem:[#allocation3 + $0x4e]] }
  0xac   :  { %v211_v29 = vsel %vm158_vm8, %v209_v19, %v207_v1  ;;  %v205_v30 = vpop.permute.xlu0 %204  ;;  %v1695_v1 = vstv %s2901_s26  ;;  %s3066_s26 = sld [smem:[#allocation3 + $0x48]] }
  0xad   :  { %217 = vst.msk [vmem:[#allocation2 + $0x7] ss:$2 sm:$0x7] %vm2775_vm9, %v211_v29  ;;  %v208_v31 = vrot.slane %v205_v30, 7 }
  0xaf   :  { %v210_v32 = vsel %vm158_vm8, %v208_v31, %v205_v30  ;;  %vm1372_vm8 = vcmask 1022976  }
  0xb0   :  { %215 = vst.msk [vmem:[#allocation2 + $0x1] ss:$2 sm:$0x7] %vm2775_vm9, %v210_v32  ;;  %v894_v32 = vstv %s2914_s27  ;;  %s3069_s27 = sld [smem:[#allocation3 + $0x3c]]  ;;  %vm1663_vm9 = vcmask 1014784  }
  0xb4   :  { %v2793_v34 = vld [vmem:[#allocation2 + $0x6] sm:$0x3f] }
  0xb5   :  { %v515_v35 = vmul.f32 %v513_v33, %v2793_v34  ;;  %v533_v45 = vmul.f32 %v531_v40, %v2793_v34  ;;  %v806_v47 = vmul.f32 %v804_v36, %v2793_v34  ;;  %v551_v48 = vmul.f32 %v549_v41, %v2793_v34 }
  0xb6   :  { %v824_v51 = vmul.f32 %v822_v44, %v2793_v34  ;;  %v1097_v54 = vmul.f32 %v1095_v49, %v2793_v34  ;;  %v569_v0 = vmul.f32 %v567_v52, %v2793_v34  ;;  %v842_v4 = vmul.f32 %v840_v55, %v2793_v34 }
  0xb7   :  { %v2799_v37 = vld [vmem:[#allocation2] sm:$0x3f]  ;;  %520 = vrot.lane.b32.xlu1 %v515_v35, %s4619_s7  ;;  %v1115_v7 = vmul.f32 %v1113_v59, %v2793_v34  ;;  %v1388_v10 = vmul.f32 %v1386_v56, %v2793_v34  ;;  %v587_v11 = vmul.f32 %v585_v60, %v2793_v34  ;;  %v860_v14 = vmul.f32 %v858_v63, %v2793_v34 }
  0xb8   :  { %v514_v38 = vmul.f32 %v513_v33, %v2799_v37  ;;  %v805_v39 = vmul.f32 %v804_v36, %v2799_v37  ;;  %v532_v42 = vmul.f32 %v531_v40, %v2799_v37  ;;  %v550_v43 = vmul.f32 %v549_v41, %v2799_v37 }
  0xb9   :  { %v823_v46 = vmul.f32 %v822_v44, %v2799_v37  ;;  %v1096_v50 = vmul.f32 %v1095_v49, %v2799_v37  ;;  %v568_v53 = vmul.f32 %v567_v52, %v2799_v37  ;;  %v841_v57 = vmul.f32 %v840_v55, %v2799_v37 }
  0xba   :  { %518 = vrot.lane.b32.xlu0 %v514_v38, %s4619_s7  ;;  %v1387_v58 = vmul.f32 %v1386_v56, %v2799_v37  ;;  %v1114_v61 = vmul.f32 %v1113_v59, %v2799_v37  ;;  %v586_v62 = vmul.f32 %v585_v60, %v2799_v37  ;;  %v859_v2 = vmul.f32 %v858_v63, %v2799_v37 }
  0xbb   :  { %809 = vrot.lane.b32.xlu1 %v805_v39, %s4619_s7  ;;  %v1132_v5 = vmul.f32 %v1131_v3, %v2799_v37  ;;  %v1405_v8 = vmul.f32 %v1404_v6, %v2799_v37  ;;  %v1678_v13 = vmul.f32 %v1677_v12, %v2799_v37  ;;  %v604_v16 = vmul.f32 %v603_v15, %v2799_v37 }
  0xbc   :  { %v1133_v17 = vmul.f32 %v1131_v3, %v2793_v34  ;;  %v877_v20 = vmul.f32 %v876_v18, %v2799_v37  ;;  %v1406_v21 = vmul.f32 %v1404_v6, %v2793_v34  ;;  %v1150_v23 = vmul.f32 %v1149_v22, %v2799_v37 }
  0xbd   :  { %v1679_v24 = vmul.f32 %v1677_v12, %v2793_v34  ;;  %v1423_v27 = vmul.f32 %v1422_v25, %v2799_v37  ;;  %v1969_v28 = vmul.f32 %v1968_v26, %v2799_v37  ;;  %v1696_v19 = vmul.f32 %v1695_v1, %v2799_v37 }
  0xbe   :  { %536 = vrot.lane.b32.xlu0 %v532_v42, %s4631_s9  ;;  %v878_v29 = vmul.f32 %v876_v18, %v2793_v34  ;;  %v605_v30 = vmul.f32 %v603_v15, %v2793_v34  ;;  %v1151_v31 = vmul.f32 %v1149_v22, %v2793_v34  ;;  %v895_v33 = vmul.f32 %v894_v32, %v2799_v37 }
  0xbf   :  { %554 = vrot.lane.b32.xlu1 %v550_v43, %s4621_s10  ;;  %v1424_v35 = vmul.f32 %v1422_v25, %v2793_v34  ;;  %v1167_v36 = vstv %s2508_s28  ;;  %v1697_v39 = vmul.f32 %v1695_v1, %v2793_v34  ;;  %v1440_v40 = vstv %s2535_s29  ;;  %s3080_s28 = sld [smem:[#allocation3 + $0x42]]  ;;  %s3109_s29 = sld [smem:[#allocation3 + $0x30]] }
  0xc0   :  { %v1168_v38 = vmul.f32 %v1167_v36, %v2799_v37  ;;  %v1441_v41 = vmul.f32 %v1440_v40, %v2799_v37  ;;  %v1970_v42 = vmul.f32 %v1968_v26, %v2793_v34  ;;  %v1713_v43 = vstv %s2562_s30  ;;  %s3111_s30 = sld [smem:[#allocation3 + $0x55]] }
  0xc1   :  { %v1714_v44 = vmul.f32 %v1713_v43, %v2799_v37  ;;  %v896_v49 = vmul.f32 %v894_v32, %v2793_v34  ;;  %v2004_v60 = vstv %s2590_s12  ;;  %v926_v15 = vstv %s2976_s17  ;;  %s3168_s12 = sld [smem:[#allocation3 + $0x5c]]  ;;  %s3205_s17 = sld [smem:[#allocation3 + $0x3e]] }
  0xc2   :  { %538 = vrot.lane.b32.xlu0 %v533_v45, %s4631_s9  ;;  %v1169_v45 = vmul.f32 %v1167_v36, %v2793_v34  ;;  %v2006_v63 = vmul.f32 %v2004_v60, %v2793_v34  ;;  %v927_v22 = vmul.f32 %v926_v15, %v2799_v37  ;;  %v928_v32 = vmul.f32 %v926_v15, %v2793_v34 }
  0xc3   :  { %827 = vrot.lane.b32.xlu1 %v823_v46, %s4631_s9  ;;  %v1986_v46 = vstv %s2589_s5  ;;  %s3121_s5 = sld [smem:[#allocation3 + $0x4f]] }
  0xc6   :  { %811 = vrot.lane.b32.xlu0 %v806_v47, %s4619_s7  ;;  %v1987_v47 = vmul.f32 %v1986_v46, %v2799_v37 }
  0xc7   :  { %556 = vrot.lane.b32.xlu1 %v551_v48, %s4621_s10  ;;  %v1442_v48 = vmul.f32 %v1440_v40, %v2793_v34 }
  0xca   :  { %1100 = vrot.lane.b32.xlu0 %v1096_v50, %s4619_s7  ;;  %v1715_v50 = vmul.f32 %v1713_v43, %v2793_v34  ;;  %v948_v43 = vstv %s3022_s23  ;;  %s3425_s23 = sld [smem:[#allocation3 + $0x34]] }
  0xcb   :  { %829 = vrot.lane.b32.xlu1 %v824_v51, %s4631_s9  ;;  %v1185_v51 = vstv %s2941_s6  ;;  %s3133_s6 = sld [smem:[#allocation3 + $0x49]] }
  0xcc   :  { %v1186_v52 = vmul.f32 %v1185_v51, %v2799_v37 }
  0xce   :  { %572 = vrot.lane.b32.xlu0 %v568_v53, %s4623_s16  ;;  %v1988_v53 = vmul.f32 %v1986_v46, %v2793_v34  ;;  %v949_v46 = vmul.f32 %v948_v43, %v2799_v37 }
  0xcf   :  { %1102 = vrot.lane.b32.xlu1 %v1097_v54, %s4619_s7  ;;  %v1458_v54 = vstv %s2536_s8  ;;  %s3136_s8 = sld [smem:[#allocation3 + $0x3d]] }
  0xd0   :  { %v1459_v55 = vmul.f32 %v1458_v54, %v2799_v37  ;;  %v1460_v56 = vmul.f32 %v1458_v54, %v2793_v34 }
  0xd2   :  { %845 = vrot.lane.b32.xlu0 %v841_v57, %s4621_s10  ;;  %v1731_v57 = vstv %s2563_s11  ;;  %s3147_s11 = sld [smem:[#allocation3 + $0x43]] }
  0xd3   :  { %1391 = vrot.lane.b32.xlu1 %v1387_v58, %s4619_s7  ;;  %v1732_v58 = vmul.f32 %v1731_v57, %v2799_v37  ;;  %v1733_v59 = vmul.f32 %v1731_v57, %v2793_v34 }
  0xd6   :  { %1118 = vrot.lane.b32.xlu0 %v1114_v61, %s4631_s9  ;;  %v2005_v61 = vmul.f32 %v2004_v60, %v2799_v37  ;;  %v950_v60 = vmul.f32 %v948_v43, %v2793_v34  ;;  %v2058_v43 = vstv %s3109_s29  ;;  %s3434_s29 = sld [smem:[#allocation3 + $0x35]] }
  0xd7   :  { %590 = vrot.lane.b32.xlu1 %v586_v62, %s4625_s20 }
  0xda   :  { %574 = vrot.lane.b32.xlu0 %v569_v0, %s4623_s16  ;;  %v1749_v0 = vstv %s2961_s13  ;;  %s3178_s13 = sld [smem:[#allocation3 + $0x56]] }
  0xdb   :  { %863 = vrot.lane.b32.xlu1 %v859_v2, %s4623_s16  ;;  %v635_v2 = vstv %s2457_s14  ;;  %v1751_v6 = vmul.f32 %v1749_v0, %v2793_v34  ;;  %s3188_s14 = sld [smem:[#allocation3 + $0x50]] }
  0xde   :  { %847 = vrot.lane.b32.xlu0 %v842_v4, %s4621_s10  ;;  %v1187_v4 = vmul.f32 %v1185_v51, %v2793_v34 }
  0xdf   :  { %1136 = vrot.lane.b32.xlu1 %v1132_v5, %s4621_s10 }
  0xe2   :  { %1120 = vrot.lane.b32.xlu0 %v1115_v7, %s4631_s9  ;;  %v1476_v7 = vstv %s2966_s15  ;;  %s3202_s15 = sld [smem:[#allocation3 + $0x4a]] }
  0xe3   :  { %1409 = vrot.lane.b32.xlu1 %v1405_v8, %s4631_s9  ;;  %v636_v8 = vmul.f32 %v635_v2, %v2799_v37 }
  0xe6   :  { %1393 = vrot.lane.b32.xlu0 %v1388_v10, %s4619_s7 }
  0xe7   :  { %592 = vrot.lane.b32.xlu1 %v587_v11, %s4625_s20  ;;  %v1477_v11 = vmul.f32 %v1476_v7, %v2799_v37 }
  0xea   :  { %1682 = vrot.lane.b32.xlu0 %v1678_v13, %s4619_s7  ;;  %v2458_v13 = vrot.slane %v636_v8, 9  ;;  %v970_v8 = vstv %s3066_s26  ;;  %s3289_s26 = sld [smem:[#allocation3 + $0x45]] }
  0xeb   :  { %865 = vrot.lane.b32.xlu1 %v860_v14, %s4623_s16  ;;  %v637_v14 = vmul.f32 %v635_v2, %v2793_v34  ;;  %v971_v15 = vmul.f32 %v970_v8, %v2799_v37 }
  0xee   :  { %608 = vrot.lane.b32.xlu0 %v604_v16, %s4627_s24 }
  0xef   :  { %1138 = vrot.lane.b32.xlu1 %v1133_v17, %s4621_s10  ;;  %v1750_v17 = vmul.f32 %v1749_v0, %v2799_v37 }
  0xf2   :  { %881 = vrot.lane.b32.xlu0 %v877_v20, %s4625_s20  ;;  %v2459_v20 = vrot.slane %v637_v14, 9 }
  0xf3   :  { %1411 = vrot.lane.b32.xlu1 %v1406_v21, %s4631_s9  ;;  %v2022_v21 = vstv %s2987_s18  ;;  %s3217_s18 = sld [smem:[#allocation3 + $0x44]] }
  0xf4   :  { %v2023_v25 = vmul.f32 %v2022_v21, %v2799_v37 }
  0xf6   :  { %1154 = vrot.lane.b32.xlu0 %v1150_v23, %s4623_s16  ;;  %v657_v23 = vstv %s2990_s19  ;;  %s3230_s19 = sld [smem:[#allocation3 + $0x5d]] }
  0xf7   :  { %1684 = vrot.lane.b32.xlu1 %v1679_v24, %s4619_s7 }
  0xfa   :  { %1427 = vrot.lane.b32.xlu0 %v1423_v27, %s4621_s10  ;;  %v2486_v27 = vrot.slane %v927_v22, 9  ;;  %v1239_v22 = vstv %s3080_s28  ;;  %s3325_s28 = sld [smem:[#allocation3 + $0x58]] }
  0xfb   :  { %1973 = vrot.lane.b32.xlu1 %v1969_v28, %s4619_s7  ;;  %v659_v28 = vmul.f32 %v657_v23, %v2793_v34 }
  0xfe   :  { %1700 = vrot.lane.b32.xlu0 %v1696_v19, %s4631_s9  ;;  %v1478_v19 = vmul.f32 %v1476_v7, %v2793_v34 }
  0xff   :  { %883 = vrot.lane.b32.xlu1 %v878_v29, %s4625_s20  ;;  %v658_v29 = vmul.f32 %v657_v23, %v2799_v37 }
 0x102   :  { %610 = vrot.lane.b32.xlu0 %v605_v30, %s4627_s24 }
 0x103   :  { %1156 = vrot.lane.b32.xlu1 %v1151_v31, %s4623_s16  ;;  %v2462_v31 = vrot.slane %v659_v28, 9 }
 0x106   :  { %899 = vrot.lane.b32.xlu0 %v895_v33, %s4627_s24  ;;  %v679_v33 = vstv %s3009_s21  ;;  %s3243_s21 = sld [smem:[#allocation3 + $0x57]] }
 0x107   :  { %1429 = vrot.lane.b32.xlu1 %v1424_v35, %s4621_s10  ;;  %v1217_v35 = vstv %s3013_s22  ;;  %v681_v54 = vmul.f32 %v679_v33, %v2793_v34  ;;  %s3417_s22 = sld [smem:[#allocation3 + $0x33]] }
 0x108   :  { %v1219_v7 = vmul.f32 %v1217_v35, %v2793_v34 }
 0x10a   :  { %1172 = vrot.lane.b32.xlu0 %v1168_v38, %s4625_s20  ;;  %v2461_v38 = vrot.slane %v658_v29, 9 }
 0x10b   :  { %1702 = vrot.lane.b32.xlu1 %v1697_v39, %s4631_s9  ;;  %v680_v39 = vmul.f32 %v679_v33, %v2799_v37 }
 0x10e   :  { %1445 = vrot.lane.b32.xlu0 %v1441_v41, %s4623_s16  ;;  %v2487_v41 = vrot.slane %v928_v32, 9 }
 0x10f   :  { %1975 = vrot.lane.b32.xlu1 %v1970_v42, %s4619_s7  ;;  %v1218_v42 = vmul.f32 %v1217_v35, %v2799_v37 }
 0x112   :  { %1718 = vrot.lane.b32.xlu0 %v1714_v44, %s4621_s10 }
 0x113   :  { %1174 = vrot.lane.b32.xlu1 %v1169_v45, %s4625_s20  ;;  %v2464_v45 = vrot.slane %v680_v39, 9 }
 0x116   :  { %1991 = vrot.lane.b32.xlu0 %v1987_v47, %s4631_s9 }
 0x117   :  { %1447 = vrot.lane.b32.xlu1 %v1442_v48, %s4623_s16  ;;  %v2514_v48 = vrot.slane %v1218_v42, 9 }
 0x11a   :  { %901 = vrot.lane.b32.xlu0 %v896_v49, %s4627_s24 }
 0x11b   :  { %1720 = vrot.lane.b32.xlu1 %v1715_v50, %s4621_s10  ;;  %v2489_v50 = vrot.slane %v949_v46, 9  ;;  %v723_v46 = vstv %s3111_s30  ;;  %s3440_s30 = sld [smem:[#allocation3 + $0x5a]] }
 0x11e   :  { %1190 = vrot.lane.b32.xlu0 %v1186_v52, %s4627_s24  ;;  %v2024_v52 = vmul.f32 %v2022_v21, %v2793_v34 }
 0x11f   :  { %1993 = vrot.lane.b32.xlu1 %v1988_v53, %s4631_s9  ;;  %v1767_v53 = vstv %s3044_s1  ;;  %s3259_s1 = sld [smem:[#allocation3 + $0x51]] }
 0x120   :  { %v1769_v39 = vmul.f32 %v1767_v53, %v2793_v34 }
 0x122   :  { %1463 = vrot.lane.b32.xlu0 %v1459_v55, %s4625_s20 }
 0x123   :  { %1465 = vrot.lane.b32.xlu1 %v1460_v56, %s4625_s20  ;;  %v1768_v56 = vmul.f32 %v1767_v53, %v2799_v37 }
 0x126   :  { %1736 = vrot.lane.b32.xlu0 %v1732_v58, %s4623_s16  ;;  %v2465_v58 = vrot.slane %v681_v54, 9 }
 0x127   :  { %1738 = vrot.lane.b32.xlu1 %v1733_v59, %s4623_s16  ;;  %v2040_v59 = vstv %s3053_s2  ;;  %s3275_s2 = sld [smem:[#allocation3 + $0x4b]] }
 0x128   :  { %v2041_v0 = vmul.f32 %v2040_v59, %v2799_v37  ;;  %v2042_v33 = vmul.f32 %v2040_v59, %v2793_v34 }
 0x129   :  { %v2971_v62 = vpop.permute.xlu1 %520 }
 0x12a   :  { %2009 = vrot.lane.b32.xlu0 %v2005_v61, %s4621_s10  ;;  %v701_v61 = vstv %s3055_s25  ;;  %s2702_s25 = smov 1  }
 0x12b   :  { %2011 = vrot.lane.b32.xlu1 %v2006_v63, %s4621_s10  ;;  %v702_v2 = vmul.f32 %v701_v61, %v2799_v37  ;;  %v703_v35 = vmul.f32 %v701_v61, %v2793_v34 }
 0x12c   :  { %v2979_v3 = vpop.permute.xlu0 %518 }
 0x12d   :  { %v2982_v5 = vpop.permute.xlu1 %809  ;;  %v2467_v14 = vrot.slane %v702_v2, 9  ;;  %v2468_v42 = vrot.slane %v703_v35, 9 }
 0x12e   :  { %1192 = vrot.lane.b32.xlu0 %v1187_v4, %s4627_s24 }
 0x12f   :  { %1756 = vrot.lane.b32.xlu1 %v1751_v6, %s4625_s20  ;;  %v2490_v6 = vrot.slane %v950_v60, 9 }
 0x130   :  { %v2993_v10 = vpop.permute.xlu0 %536 }
 0x131   :  { %v2996_v12 = vpop.permute.xlu1 %554 }
 0x132   :  { %1481 = vrot.lane.b32.xlu0 %v1477_v11, %s4627_s24  ;;  %v1508_v11 = vstv %s3069_s27  ;;  %s3313_s27 = sld [smem:[#allocation3 + $0x5e]] }
 0x133   :  { %644 = vrot.lane.b32.xlu1 %v2458_v13, %s4619_s7  ;;  %v1509_v21 = vmul.f32 %v1508_v11, %v2799_v37 }
 0x134   :  { %v3002_v16 = vpop.permute.xlu0 %538 }
 0x135   :  { %v3005_v18 = vpop.permute.xlu1 %827 }
 0x136   :  { %1754 = vrot.lane.b32.xlu0 %v1750_v17, %s4625_s20 }
 0x137   :  { %646 = vrot.lane.b32.xlu1 %v2459_v20, %s4619_s7  ;;  %v2515_v20 = vrot.slane %v1219_v7, 9  ;;  %v1261_v7 = vstv %s3133_s6  ;;  %s3356_s6 = sld [smem:[#allocation3 + $0x4c]] }
 0x138   :  { %v3016_v24 = vpop.permute.xlu0 %811 }
 0x139   :  { %v3019_v26 = vpop.permute.xlu1 %556 }
 0x13a   :  { %2027 = vrot.lane.b32.xlu0 %v2023_v25, %s4623_s16  ;;  %v2492_v25 = vrot.slane %v971_v15, 9 }
 0x13b   :  { %935 = vrot.lane.b32.xlu1 %v2486_v27, %s4619_s7  ;;  %v1240_v27 = vmul.f32 %v1239_v22, %v2799_v37 }
 0x13c   :  { %v3026_v1 = vpop.permute.xlu0 %1100 }
 0x13d   :  { %v3030_v30 = vpop.permute.xlu1 %829 }
 0x13e   :  { %1483 = vrot.lane.b32.xlu0 %v1478_v19, %s4627_s24  ;;  %v2542_v19 = vrot.slane %v1509_v21, 9 }
 0x13f   :  { %668 = vrot.lane.b32.xlu1 %v2462_v31, %s4631_s9  ;;  %v2517_v31 = vrot.slane %v1240_v27, 9  ;;  %v1530_v27 = vstv %s3147_s11  ;;  %s3383_s11 = sld [smem:[#allocation3 + $0x5f]] }
 0x140   :  { %v3037_v36 = vpop.permute.xlu0 %572 }
 0x141   :  { %v3040_v40 = vpop.permute.xlu1 %1102 }
 0x142   :  { %666 = vrot.lane.b32.xlu0 %v2461_v38, %s4631_s9 }
 0x143   :  { %937 = vrot.lane.b32.xlu1 %v2487_v41, %s4619_s7 }
 0x144   :  { %v3048_v44 = vpop.permute.xlu0 %845 }
 0x145   :  { %v3051_v47 = vpop.permute.xlu1 %1391 }
 0x146   :  { %688 = vrot.lane.b32.xlu0 %v2464_v45, %s4621_s10  ;;  %v972_v45 = vmul.f32 %v970_v8, %v2793_v34  ;;  %v1799_v8 = vstv %s3136_s8  ;;  %s2703_s8 = smov 2  }
 0x147   :  { %1226 = vrot.lane.b32.xlu1 %v2514_v48, %s4619_s7 }
 0x148   :  { %v3059_v49 = vpop.permute.xlu0 %1118  ;;  %v2493_v54 = vrot.slane %v972_v45, 9 }
 0x149   :  { %v3061_v51 = vpop.permute.xlu1 %590 }
 0x14a   :  { %957 = vrot.lane.b32.xlu0 %v2489_v50, %s4631_s9  ;;  %v2059_v50 = vmul.f32 %v2058_v43, %v2799_v37 }
 0x14b   :  { %2029 = vrot.lane.b32.xlu1 %v2024_v52, %s4623_s16  ;;  %v724_v52 = vmul.f32 %v723_v46, %v2799_v37 }
 0x14c   :  { %v3072_v55 = vpop.permute.xlu0 %574 }
 0x14d   :  { %v3075_v57 = vpop.permute.xlu1 %863  ;;  %v2470_v60 = vrot.slane %v724_v52, 9 }
 0x14e   :  { %1772 = vrot.lane.b32.xlu0 %v1768_v56, %s4627_s24  ;;  %v1241_v56 = vmul.f32 %v1239_v22, %v2793_v34 }
 0x14f   :  { %690 = vrot.lane.b32.xlu1 %v2465_v58, %s4621_s10  ;;  %v992_v58 = vstv %s3121_s5  ;;  %s3340_s5 = sld [smem:[#allocation3 + $0x52]] }
 0x150   :  { %v3084_v63 = vpop.permute.xlu0 %847  ;;  %v993_v61 = vmul.f32 %v992_v58, %v2799_v37  ;;  %v2518_v2 = vrot.slane %v1241_v56, 9  ;;  %v994_v52 = vmul.f32 %v992_v58, %v2793_v34  ;;  %v2060_v56 = vmul.f32 %v2058_v43, %v2793_v34 }
 0x151   :  { %4698 = vst [vmem:[#allocation10_spill] sm:$0xff] %v3084_v63  ;;  %v3088_v4 = vpop.permute.xlu1 %1136  ;;  %v1263_v58 = vmul.f32 %v1261_v7, %v2793_v34 }
 0x152   :  { %4699 = vst [vmem:[#allocation11_spill] sm:$0xff] %v3088_v4  ;;  %2045 = vrot.lane.b32.xlu0 %v2041_v0, %s4625_s20  ;;  %v2495_v15 = vrot.slane %v993_v61, 9 }
 0x153   :  { %959 = vrot.lane.b32.xlu1 %v2490_v6, %s4631_s9  ;;  %v1510_v6 = vmul.f32 %v1508_v11, %v2793_v34 }
 0x154   :  { %v3095_v13 = vpop.permute.xlu0 %1120 }
 0x155   :  { %4700 = vst [vmem:[#allocation12_spill] sm:$0xff] %v3095_v13  ;;  %v3098_v17 = vpop.permute.xlu1 %1409  ;;  %v2543_v22 = vrot.slane %v1510_v6, 9 }
 0x156   :  { %4701 = vst [vmem:[#allocation13_spill] sm:$0xff] %v3098_v17  ;;  %710 = vrot.lane.b32.xlu0 %v2467_v14, %s4623_s16 }
 0x157   :  { %1228 = vrot.lane.b32.xlu1 %v2515_v20, %s4619_s7  ;;  %v1262_v20 = vmul.f32 %v1261_v7, %v2799_v37 }
 0x158   :  { %v3104_v23 = vpop.permute.xlu0 %1393 }
 0x159   :  { %v3107_v28 = vpop.permute.xlu1 %592 }
 0x15a   :  { %4702 = vst [vmem:[#allocation14_spill] sm:$0xff] %v3107_v28  ;;  %979 = vrot.lane.b32.xlu0 %v2492_v25, %s4621_s10  ;;  %v1800_v25 = vmul.f32 %v1799_v8, %v2799_v37 }
 0x15b   :  { %1517 = vrot.lane.b32.xlu1 %v2542_v19, %s4619_s7  ;;  %v2520_v19 = vrot.slane %v1262_v20, 9 }
 0x15c   :  { %v3115_v29 = vpop.permute.xlu0 %1682 }
 0x15d   :  { %v3117_v32 = vpop.permute.xlu1 %865 }
 0x15e   :  { %4703 = vst [vmem:[#allocation15_spill] sm:$0xff] %v3117_v32  ;;  %1248 = vrot.lane.b32.xlu0 %v2517_v31, %s4631_s9  ;;  %v1531_v31 = vmul.f32 %v1530_v27, %v2799_v37 }
 0x15f   :  { %2047 = vrot.lane.b32.xlu1 %v2042_v33, %s4625_s20  ;;  %v725_v33 = vmul.f32 %v723_v46, %v2793_v34  ;;  %v4586_v46 = vstv %s3168_s12 }
 0x160   :  { %v3125_v38 = vpop.permute.xlu0 %608  ;;  %v2545_v45 = vrot.slane %v1531_v31, 9  ;;  %v746_v61 = vmul.f32 %v4586_v46, %v2799_v37  ;;  %v1283_v31 = vstv %s3188_s14  ;;  %v1821_v46 = vstv %s3217_s18  ;;  %s3390_s14 = sld [smem:[#allocation3 + $0x3]]  ;;  %s3410_s18 = sld [smem:[#allocation3 + $0x6]] }
 0x161   :  { %4704 = vst [vmem:[#allocation16_spill] sm:$0xff] %v3125_v38  ;;  %v3128_v41 = vpop.permute.xlu1 %1138 }
 0x162   :  { %4705 = vst [vmem:[#allocation17_spill] sm:$0xff] %v3128_v41  ;;  %1774 = vrot.lane.b32.xlu0 %v1769_v39, %s4627_s24  ;;  %v2570_v39 = vrot.slane %v1800_v25, 9  ;;  %v2473_v20 = vrot.slane %v746_v61, 9  ;;  %v2521_v25 = vrot.slane %v1263_v58, 9  ;;  %v4587_v58 = vstv %s3205_s17 }
 0x163   :  { %712 = vrot.lane.b32.xlu1 %v2468_v42, %s4623_s16  ;;  %v4767_v41 = vstv %s3356_s6 }
 0x164   :  { %v3139_v48 = vpop.permute.xlu0 %881 }
 0x165   :  { %4706 = vst [vmem:[#allocation18_spill] sm:$0xff] %v3139_v48  ;;  %v3143_v53 = vpop.permute.xlu1 %1411 }
 0x166   :  { %2063 = vrot.lane.b32.xlu0 %v2059_v50, %s4627_s24  ;;  %v2471_v50 = vrot.slane %v725_v33, 9  ;;  %v2701_v33 = vmov 857870592  }
 0x167   :  { %981 = vrot.lane.b32.xlu1 %v2493_v54, %s4621_s10 }
 0x168   :  { %v3151_v59 = vpop.permute.xlu0 %1154 }
 0x169   :  { %4707 = vst [vmem:[#allocation19_spill] sm:$0xff] %v3151_v59  ;;  %v3154_v0 = vpop.permute.xlu1 %1684 }
 0x16a   :  { %4708 = vst [vmem:[#allocation20_spill] sm:$0xff] %v3154_v0  ;;  %732 = vrot.lane.b32.xlu0 %v2470_v60, %s4625_s20  ;;  %v4771_v0 = vstv %s3383_s11 }
 0x16b   :  { %1250 = vrot.lane.b32.xlu1 %v2518_v2, %s4631_s9  ;;  %v2496_v2 = vrot.slane %v994_v52, 9  ;;  %v1284_v52 = vmul.f32 %v1283_v31, %v2799_v37 }
 0x16c   :  { %v3161_v14 = vpop.permute.xlu0 %1427 }
 0x16d   :  { %4709 = vst [vmem:[#allocation21_spill] sm:$0xff] %v3161_v14  ;;  %v3164_v21 = vpop.permute.xlu1 %1973 }
 0x16e   :  { %4710 = vst [vmem:[#allocation22_spill] sm:$0xff] %v3164_v21  ;;  %1001 = vrot.lane.b32.xlu0 %v2495_v15, %s4623_s16  ;;  %v4585_v15 = vstv %s3178_s13 }
 0x16f   :  { %1519 = vrot.lane.b32.xlu1 %v2543_v22, %s4619_s7  ;;  %v1015_v22 = vmul.f32 %v4585_v15, %v2799_v37 }
 0x170   :  { %v3172_v11 = vpop.permute.xlu0 %1700 }
 0x171   :  { %4711 = vst [vmem:[#allocation23_spill] sm:$0xff] %v3172_v11  ;;  %v3176_v35 = vpop.permute.xlu1 %883  ;;  %v540_v11 = vrot.slane %v2993_v10, 2 }
 0x172   :  { %4712 = vst [vmem:[#allocation24_spill] sm:$0xff] %v3176_v35  ;;  %1270 = vrot.lane.b32.xlu0 %v2520_v19, %s4621_s10  ;;  %v1532_v19 = vmul.f32 %v1530_v27, %v2793_v34  ;;  %v1801_v27 = vmul.f32 %v1799_v8, %v2793_v34  ;;  %v2091_v8 = vmul.f32 %v4587_v58, %v2799_v37 }
 0x173   :  { %1808 = vrot.lane.b32.xlu1 %v2570_v39, %s4619_s7  ;;  %v495_v39 = vunpack.c.l.s4 %v2701_v33 }
 0x174   :  { %v3182_v42 = vpop.permute.xlu0 %610  ;;  %v2546_v61 = vrot.slane %v1532_v19, 9  ;;  %v2571_v19 = vrot.slane %v1801_v27, 9  ;;  %v221_v27 = vld [vmem:[%s4583_s3 + $0x2] sm:$0x3]  ;;  %v2598_v58 = vrot.slane %v2091_v8, 9 }
 0x175   :  { %4713 = vst [vmem:[#allocation25_spill] sm:$0xff] %v3182_v42  ;;  %v3185_v54 = vpop.permute.xlu1 %1156 }
 0x176   :  { %4714 = vst [vmem:[#allocation26_spill] sm:$0xff] %v3185_v54  ;;  %1539 = vrot.lane.b32.xlu0 %v2545_v45, %s4631_s9 }
 0x177   :  { %734 = vrot.lane.b32.xlu1 %v2471_v50, %s4625_s20  ;;  %v2498_v50 = vrot.slane %v1015_v22, 9  ;;  %v2523_v22 = vrot.slane %v1284_v52, 9 }
 0x178   :  { %v3193_v60 = vpop.permute.xlu0 %899 }
 0x179   :  { %4715 = vst [vmem:[#allocation27_spill] sm:$0xff] %v3193_v60  ;;  %v3199_v6 = vpop.permute.xlu1 %1429 }
 0x17a   :  { %2065 = vrot.lane.b32.xlu0 %v2060_v56, %s4627_s24 }
 0x17b   :  { %1003 = vrot.lane.b32.xlu1 %v2496_v2, %s4623_s16  ;;  %v1552_v2 = vstv %s3202_s15  ;;  %s3399_s15 = sld [smem:[#allocation3 + $0x4]] }
 0x17c   :  { %v3208_v43 = vpop.permute.xlu0 %1172  ;;  %v1553_v33 = vmul.f32 %v1552_v2, %v2799_v37 }
 0x17d   :  { %4716 = vst [vmem:[#allocation28_spill] sm:$0xff] %v3208_v43  ;;  %v3213_v7 = vpop.permute.xlu1 %1702 }
 0x17e   :  { %4717 = vst [vmem:[#allocation29_spill] sm:$0xff] %v3213_v7  ;;  %754 = vrot.lane.b32.xlu0 %v2473_v20, %s4627_s24  ;;  %v496_v20 = vunpack.c.0.s8 %v495_v39  ;;  %v2548_v52 = vrot.slane %v1553_v33, 9 }
 0x17f   :  { %1272 = vrot.lane.b32.xlu1 %v2521_v25, %s4621_s10 }
 0x180   :  { %v3221_v45 = vpop.permute.xlu0 %1445  ;;  %v3247_v39 = vsub.s32 %v496_v20, %v2753_v9 }
 0x181   :  { %4718 = vst [vmem:[#allocation30_spill] sm:$0xff] %v3221_v45  ;;  %v3224_v56 = vpop.permute.xlu1 %1975  ;;  %v1380_v21 = vstv %s3399_s15  ;;  %s3502_s15 = sld [smem:[#allocation3 + $0x5b]] }
 0x182   :  { %4719 = vst [vmem:[#allocation31_spill] sm:$0xff] %v3224_v56  ;;  %1023 = vrot.lane.b32.xlu0 %v2498_v50, %s4625_s20  ;;  %4722 = vst [vmem:[#allocation34_spill] sm:$0xff] %v3247_v39  ;;  %v773_v20 = vrot.slane %v221_v27, %v3247_v39  ;;  %v4728_v27 = vstv %s3178_s13  ;;  %s3388_s13 = sld [smem:[#allocation3 + $0x2]] }
 0x183   :  { %1541 = vrot.lane.b32.xlu1 %v2546_v61, %s4631_s9  ;;  %v1822_v61 = vmul.f32 %v1821_v46, %v2799_v37 }
 0x184   :  { %v3233_v25 = vpop.permute.xlu0 %1718 }
 0x185   :  { %4720 = vst [vmem:[#allocation32_spill] sm:$0xff] %v3233_v25  ;;  %v3236_v15 = vpop.permute.xlu1 %1174  ;;  %v2573_v9 = vrot.slane %v1822_v61, 9 }
 0x186   :  { %4721 = vst [vmem:[#allocation33_spill] sm:$0xff] %v3236_v15  ;;  %1292 = vrot.lane.b32.xlu0 %v2523_v22, %s4623_s16 }
 0x187   :  { %1810 = vrot.lane.b32.xlu1 %v2571_v19, %s4619_s7  ;;  %v4595_v19 = vstv %s3230_s19 }
 0x188   :  { %v3249_v50 = vpop.permute.xlu0 %1991  ;;  %v1037_v8 = vmul.f32 %v4595_v19, %v2799_v37 }
 0x189   :  { %4723 = vst [vmem:[#allocation35_spill] sm:$0xff] %v3249_v50  ;;  %v3255_v22 = vpop.permute.xlu1 %1447  ;;  %v4725_v50 = vstv %s3168_s12  ;;  %s3385_s12 = sld [smem:[#allocation3 + $0x1]] }
 0x18a   :  { %1561 = vrot.lane.b32.xlu0 %v2548_v52, %s4621_s10  ;;  %v747_v56 = vmul.f32 %v4725_v50, %v2793_v34  ;;  %v4597_v52 = vstv %s3243_s21  ;;  %v1016_v50 = vmul.f32 %v4728_v27, %v2793_v34  ;;  %v1285_v27 = vmul.f32 %v1283_v31, %v2793_v34 }
 0x18b   :  { %2099 = vrot.lane.b32.xlu1 %v2598_v58, %s4619_s7  ;;  %v1306_v19 = vmul.f32 %v4597_v52, %v2799_v37 }
 0x18c   :  { %v3263_v33 = vpop.permute.xlu0 %901  ;;  %v2474_v61 = vrot.slane %v747_v56, 9  ;;  %v2499_v56 = vrot.slane %v1016_v50, 9 }
 0x18d   :  { %4724 = vst [vmem:[#allocation36_spill] sm:$0xff] %v3263_v33  ;;  %v3268_v45 = vpop.permute.xlu1 %1720 }
 0x18e   :  { %4726 = vst [vmem:[#allocation37_spill] sm:$0xff] %v3268_v45  ;;  %1830 = vrot.lane.b32.xlu0 %v2573_v9, %s4631_s9  ;;  %v2501_v45 = vrot.slane %v1037_v8, 9  ;;  %v4600_v9 = vstv %s3259_s1  ;;  %v2526_v8 = vrot.slane %v1306_v19, 9 }
 0x18f   :  { %774 = vrot.lane.b32.xlu1 %v773_v20, %s2702_s25  ;;  %v1575_v52 = vmul.f32 %v4600_v9, %v2799_v37  ;;  %v4602_v9 = vstv %s3289_s26  ;;  %s3432_s25 = sld [smem:[#allocation3 + $0x53]] }
 0x190   :  { %v3277_v58 = vpop.permute.xlu0 %1190 }
 0x191   :  { %4727 = vst [vmem:[#allocation38_spill] sm:$0xff] %v3277_v58  ;;  %v3282_v15 = vpop.permute.xlu1 %1993  ;;  %v2551_v31 = vrot.slane %v1575_v52, 9 }
 0x192   :  { %4729 = vst [vmem:[#allocation39_spill] sm:$0xff] %v3282_v15  ;;  %756 = vrot.lane.b32.xlu0 %v2474_v61, %s4627_s24  ;;  %v4601_v61 = vstv %s3275_s2 }
 0x193   :  { %1045 = vrot.lane.b32.xlu1 %v2501_v45, %s4627_s24  ;;  %v2524_v45 = vrot.slane %v1285_v27, 9  ;;  %v1844_v19 = vmul.f32 %v4601_v61, %v2799_v37  ;;  %v2113_v61 = vmul.f32 %v4602_v9, %v2799_v37 }
 0x194   :  { %v3292_v20 = vpop.permute.xlu0 %1463 }
 0x195   :  { %4730 = vst [vmem:[#allocation40_spill] sm:$0xff] %v3292_v20  ;;  %v3295_v58 = vpop.permute.xlu1 %1465  ;;  %v1554_v20 = vmul.f32 %v1552_v2, %v2793_v34  ;;  %v1823_v2 = vmul.f32 %v1821_v46, %v2793_v34  ;;  %v2576_v52 = vrot.slane %v1844_v19, 9  ;;  %v222_v19 = vld [vmem:[%s4583_s3 + $0x4] sm:$0x3]  ;;  %v4792_v28 = vstv %s3432_s25 }
 0x196   :  { %1025 = vrot.lane.b32.xlu0 %v2499_v56, %s4625_s20 }
 0x197   :  { %1314 = vrot.lane.b32.xlu1 %v2526_v8, %s4625_s20  ;;  %v2549_v27 = vrot.slane %v1554_v20, 9  ;;  %v4736_v20 = vstv %s3205_s17  ;;  %s3401_s17 = sld [smem:[#allocation3 + $0x5]] }
 0x198   :  { %v3303_v15 = vpop.permute.xlu0 %1736  ;;  %v2092_v46 = vmul.f32 %v4736_v20, %v2793_v34 }
 0x199   :  { %4731 = vst [vmem:[#allocation41_spill] sm:$0xff] %v3303_v15  ;;  %v3306_v50 = vpop.permute.xlu1 %1738 }
 0x19a   :  { %4732 = vst [vmem:[#allocation42_spill] sm:$0xff] %v3306_v50  ;;  %1294 = vrot.lane.b32.xlu0 %v2524_v45, %s4623_s16  ;;  %v2599_v20 = vrot.slane %v2092_v46, 9 }
 0x19b   :  { %1583 = vrot.lane.b32.xlu1 %v2551_v31, %s4623_s16  ;;  %v2574_v31 = vrot.slane %v1823_v2, 9  ;;  %v1064_v2 = vrot.slane %v222_v19, %v3247_v39 }
 0x19c   :  { %v3316_v56 = vpop.permute.xlu0 %2009 }
 0x19d   :  { %4733 = vst [vmem:[#allocation43_spill] sm:$0xff] %v3316_v56  ;;  %v3319_v8 = vpop.permute.xlu1 %2011  ;;  %v4739_v56 = vstv %s3230_s19  ;;  %s3413_s19 = sld [smem:[#allocation3 + $0x59]] }
 0x19e   :  { %4734 = vst [vmem:[#allocation44_spill] sm:$0xff] %v3319_v8  ;;  %1563 = vrot.lane.b32.xlu0 %v2549_v27, %s4621_s10  ;;  %v2601_v27 = vrot.slane %v2113_v61, 9  ;;  %v4609_v8 = vstv %s3313_s27  ;;  %v1038_v50 = vmul.f32 %v4739_v56, %v2793_v34  ;;  %v4742_v56 = vstv %s3243_s21  ;;  %s3415_s21 = sld [smem:[#allocation3 + $0x32]] }
 0x19f   :  { %1852 = vrot.lane.b32.xlu1 %v2576_v52, %s4621_s10  ;;  %v1328_v61 = vmul.f32 %v4609_v8, %v2799_v37  ;;  %v4613_v8 = vstv %s3340_s5 }
 0x1a0   :  { %v3328_v45 = vpop.permute.xlu0 %1192  ;;  %v2502_v46 = vrot.slane %v1038_v50, 9  ;;  %v4745_v50 = vstv %s3259_s1  ;;  %s3446_s1 = sld [smem:[#allocation3 + $0x7]] }
 0x1a1   :  { %4735 = vst [vmem:[#allocation45_spill] sm:$0xff] %v3328_v45  ;;  %v3336_v9 = vpop.permute.xlu1 %1756  ;;  %v2529_v45 = vrot.slane %v1328_v61, 9  ;;  %v1576_v54 = vmul.f32 %v4745_v50, %v2793_v34  ;;  %v1866_v61 = vmul.f32 %v4613_v8, %v2799_v37 }
 0x1a2   :  { %4737 = vst [vmem:[#allocation46_spill] sm:$0xff] %v3336_v9  ;;  %1832 = vrot.lane.b32.xlu0 %v2574_v31, %s4631_s9  ;;  %v4614_v31 = vstv %s3325_s28 }
 0x1a3   :  { %2121 = vrot.lane.b32.xlu1 %v2601_v27, %s4631_s9  ;;  %v1307_v27 = vmul.f32 %v4742_v56, %v2793_v34  ;;  %v2579_v50 = vrot.slane %v1866_v61, 9  ;;  %v4759_v35 = vstv %s3413_s19 }
 0x1a4   :  { %v3344_v52 = vpop.permute.xlu0 %1481 }
 0x1a5   :  { %4738 = vst [vmem:[#allocation47_spill] sm:$0xff] %v3344_v52  ;;  %v3349_v9 = vpop.permute.xlu1 %644 }
 0x1a6   :  { %4740 = vst [vmem:[#allocation48_spill] sm:$0xff] %v3349_v9  ;;  %2101 = vrot.lane.b32.xlu0 %v2599_v20, %s4619_s7  ;;  %v1597_v20 = vmul.f32 %v4614_v31, %v2799_v37  ;;  %v4747_v37 = vstv %s3275_s2  ;;  %s3453_s2 = sld [smem:[#allocation3 + $0x36]] }
 0x1a7   :  { %1065 = vrot.lane.b32.xlu1 %v1064_v2, %s2703_s8  ;;  %v2527_v2 = vrot.slane %v1307_v27, 9  ;;  %v3394_v27 = vld [vmem:[#allocation2 + $0x6] sm:$0x3f]  ;;  %s3444_s8 = sld [smem:[#allocation3 + $0x61]]  ;;  %s3460_s7 = sld [smem:[#allocation3 + $0xe]] }
 0x1a8   :  { %v3358_v19 = vpop.permute.xlu0 %1754  ;;  %v2554_v56 = vrot.slane %v1597_v20, 9  ;;  %v1845_v20 = vmul.f32 %v3394_v27, %v4747_v37  ;;  %v4750_v37 = vstv %s3289_s26  ;;  %s3438_s26 = sld [smem:[#allocation3 + $0x60]] }
 0x1a9   :  { %4741 = vst [vmem:[#allocation49_spill] sm:$0xff] %v3358_v19  ;;  %v3363_v52 = vpop.permute.xlu1 %646  ;;  %v2114_v31 = vmul.f32 %v3394_v27, %v4750_v37 }
 0x1aa   :  { %4743 = vst [vmem:[#allocation50_spill] sm:$0xff] %v3363_v52  ;;  %1047 = vrot.lane.b32.xlu0 %v2502_v46, %s4627_s24  ;;  %v4615_v46 = vstv %s3356_s6  ;;  %v2577_v61 = vrot.slane %v1845_v20, 9  ;;  %v4764_v52 = vstv %s3432_s25  ;;  %s4779_s6 = smov 80   ;;  %s2709_s25 = smov 126  }
 0x1ab   :  { %1336 = vrot.lane.b32.xlu1 %v2529_v45, %s4627_s24  ;;  %v2552_v45 = vrot.slane %v1576_v54, 9  ;;  %v2602_v37 = vrot.slane %v2114_v31, 9  ;;  %s3470_s24 = sld [smem:[#allocation3 + $0x2a]]  ;;  %v4757_v31 = vstv %s3325_s28  ;;  %s3492_s28 = sld [smem:[#allocation3 + $0x46]] }
 0x1ac   :  { %v3371_v7 = vpop.permute.xlu0 %2027 }
 0x1ad   :  { %4744 = vst [vmem:[#allocation51_spill] sm:$0xff] %v3371_v7  ;;  %v3376_v43 = vpop.permute.xlu1 %935 }
 0x1ae   :  { %4746 = vst [vmem:[#allocation52_spill] sm:$0xff] %v3376_v43  ;;  %1316 = vrot.lane.b32.xlu0 %v2527_v2, %s4625_s20  ;;  %v4755_v43 = vstv %s3383_s11  ;;  %s2705_s11 = smov 4  }
 0x1af   :  { %1605 = vrot.lane.b32.xlu1 %v2554_v56, %s4625_s20  ;;  %v3405_v56 = vld [vmem:[#allocation2] sm:$0x3f]  ;;  %s2704_s20 = smov 3  }
 0x1b0   :  { %v3392_v34 = vpop.permute.xlu0 %1483  ;;  %v2135_v8 = vmul.f32 %v3405_v56, %v4615_v46  ;;  %v2157_v48 = vmul.f32 %v3405_v56, %v4764_v52  ;;  %v3575_v9 = vmul.f32 %v3405_v56, %v1380_v21 }
 0x1b1   :  { %v3403_v2 = vpop.permute.xlu1 %668 }
 0x1b2   :  { %4748 = vst [vmem:[#allocation53_spill] sm:$0xff] %v3403_v2  ;;  %1585 = vrot.lane.b32.xlu0 %v2552_v45, %s4623_s16  ;;  %v223_v45 = vld [vmem:[%s4583_s3 + $0x6] sm:$0x3]  ;;  %v2604_v7 = vrot.slane %v2135_v8, 9  ;;  %4772 = vst [vmem:[#allocation65_spill] sm:$0xff] %v3575_v9 }
 0x1b3   :  { %1874 = vrot.lane.b32.xlu1 %v2579_v50, %s4623_s16  ;;  %v1355_v50 = vrot.slane %v223_v45, %v3247_v39  ;;  %s3468_s16 = sld [smem:[#allocation3 + $0x23]] }
 0x1b4   :  { %v3420_v54 = vpop.permute.xlu0 %666 }
 0x1b5   :  { %4749 = vst [vmem:[#allocation54_spill] sm:$0xff] %v3420_v54  ;;  %v3430_v46 = vpop.permute.xlu1 %937  ;;  %v4762_v54 = vstv %s3340_s5 }
 0x1b6   :  { %4751 = vst [vmem:[#allocation55_spill] sm:$0xff] %v3430_v46  ;;  %1854 = vrot.lane.b32.xlu0 %v2577_v61, %s4621_s10  ;;  %v4753_v46 = vstv %s3313_s27  ;;  %s3466_s27 = sld [smem:[#allocation3 + $0x1c]] }
 0x1b7   :  { %2143 = vrot.lane.b32.xlu1 %v2604_v7, %s4621_s10  ;;  %v1329_v61 = vmul.f32 %v3394_v27, %v4753_v46  ;;  %v1619_v7 = vmul.f32 %v3405_v56, %v4755_v43  ;;  %s3462_s10 = sld [smem:[#allocation3 + $0x15]]  ;;  %v507_v43 = vstv %s3385_s12  ;;  %v798_v46 = vstv %s3388_s13  ;;  %s4760_s13 = smov 32  }
 0x1b8   :  { %v3448_v8 = vpop.permute.xlu0 %688  ;;  %s3494_s12 = sld [smem:[#allocation3 + $0x4d]]  ;;  %v3553_v42 = vmul.f32 %v3405_v56, %v507_v43  ;;  %v3556_v32 = vmul.f32 %v3405_v56, %v798_v46  ;;  %v3561_v17 = vmul.f32 %v3394_v27, %v798_v46 }
 0x1b9   :  { %4752 = vst [vmem:[#allocation56_spill] sm:$0xff] %v3448_v8  ;;  %v3455_v20 = vpop.permute.xlu1 %1226  ;;  %v2557_v14 = vrot.slane %v1619_v7, 9  ;;  %v912_v7 = vstv %s3417_s22  ;;  %v1867_v8 = vmul.f32 %v3394_v27, %v4762_v54 }
 0x1ba   :  { %4754 = vst [vmem:[#allocation57_spill] sm:$0xff] %v3455_v20  ;;  %2123 = vrot.lane.b32.xlu0 %v2602_v37, %s4631_s9  ;;  %v2530_v37 = vrot.slane %v1329_v61, 9  ;;  %v1598_v20 = vmul.f32 %v3394_v27, %v4757_v31  ;;  %s3481_s9 = sld [smem:[#allocation3 + $0x37]]  ;;  %v1671_v61 = vstv %s3401_s17  ;;  %v1962_v31 = vstv %s3410_s18  ;;  %s4765_s17 = smov 48  }
 0x1bb   :  { %1356 = vrot.lane.b32.xlu1 %v1355_v50, %s2704_s20  ;;  %s3483_s20 = sld [smem:[#allocation3 + $0x3f]]  ;;  %v1089_v50 = vstv %s3390_s14  ;;  %s3500_s14 = sld [smem:[#allocation3 + $0x54]] }
 0x1bc   :  { %v3476_v45 = vpop.permute.xlu0 %957 }
 0x1bd   :  { %4756 = vst [vmem:[#allocation58_spill] sm:$0xff] %v3476_v45  ;;  %v3487_v33 = vpop.permute.xlu1 %2029  ;;  %v1888_v45 = vmul.f32 %v3405_v56, %v4759_v35  ;;  %v621_v35 = vstv %s3415_s21  ;;  %s4769_s21 = smov 64  }
 0x1be   :  { %4758 = vst [vmem:[#allocation59_spill] sm:$0xff] %v3487_v33  ;;  %1338 = vrot.lane.b32.xlu0 %v2530_v37, %s4760_s13  ;;  %v1203_v33 = vstv %s3425_s23  ;;  %v2555_v37 = vrot.slane %v1598_v20, 9  ;;  %v224_v20 = vld [vmem:[%s4583_s3 + $0x8] sm:$0x3]  ;;  %s2708_s23 = smov 127  }
 0x1bf   :  { %1627 = vrot.lane.b32.xlu1 %v2557_v14, %s4760_s13  ;;  %v2582_v59 = vrot.slane %v1888_v45, 9  ;;  %v2580_v14 = vrot.slane %v1867_v8, 9  ;;  %v3572_v45 = vmul.f32 %v3394_v27, %v1089_v50 }
 0x1c0   :  { %v3508_v60 = vpop.permute.xlu0 %1772 }
 0x1c1   :  { %4761 = vst [vmem:[#allocation60_spill] sm:$0xff] %v3508_v60  ;;  %v3515_v2 = vpop.permute.xlu1 %690  ;;  %v4791_v60 = vstv %s3440_s30  ;;  %s2712_s30 = smov 123  }
 0x1c2   :  { %4763 = vst [vmem:[#allocation61_spill] sm:$0xff] %v3515_v2  ;;  %1607 = vrot.lane.b32.xlu0 %v2555_v37, %s4765_s17  ;;  %v2136_v37 = vmul.f32 %v3394_v27, %v4767_v41  ;;  %v3550_v41 = vmul.f32 %v3394_v27, %v507_v43  ;;  %v1620_v43 = vmul.f32 %v3394_v27, %v4771_v0 }
 0x1c3   :  { %1896 = vrot.lane.b32.xlu1 %v2582_v59, %s4765_s17  ;;  %v2607_v59 = vrot.slane %v2157_v48, 9  ;;  %v1646_v48 = vrot.slane %v224_v20, %v3247_v39  ;;  %v3578_v20 = vmul.f32 %v3394_v27, %v1380_v21  ;;  %v3589_v0 = vmul.f32 %v3394_v27, %v1671_v61 }
 0x1c4   :  { %v3530_v52 = vpop.permute.xlu0 %2045  ;;  %v2605_v8 = vrot.slane %v2136_v37, 9  ;;  %v3586_v37 = vmul.f32 %v3405_v56, %v1671_v61  ;;  %v3599_v21 = vmul.f32 %v3394_v27, %v1962_v31  ;;  %v3608_v61 = vmul.f32 %v3394_v27, %v912_v7 }
 0x1c5   :  { %4766 = vst [vmem:[#allocation62_spill] sm:$0xff] %v3530_v52  ;;  %v3540_v2 = vpop.permute.xlu1 %959  ;;  %4776 = vst [vmem:[#allocation68_spill] sm:$0xff] %v3589_v0  ;;  %v4788_v0 = vstv %s3434_s29  ;;  %v2179_v38 = vmul.f32 %v3405_v56, %v4791_v60 }
 0x1c6   :  { %4768 = vst [vmem:[#allocation63_spill] sm:$0xff] %v3540_v2  ;;  %1876 = vrot.lane.b32.xlu0 %v2580_v14, %s4769_s21  ;;  %v3564_v14 = vmul.f32 %v3405_v56, %v1089_v50  ;;  %4775 = vst [vmem:[#allocation67_spill] sm:$0xff] %v3586_v37  ;;  %v3592_v50 = vmul.f32 %v3405_v56, %v1962_v31  ;;  %v3595_v2 = vmul.f32 %v3405_v56, %v621_v35 }
 0x1c7   :  { %2165 = vrot.lane.b32.xlu1 %v2607_v59, %s4769_s21  ;;  %v4774_v59 = vstv %s3438_s26  ;;  %4780 = vst [vmem:[#allocation71_spill] sm:$0xff] %v3599_v21  ;;  %4783 = vst [vmem:[#allocation74_spill] sm:$0xff] %v3608_v61  ;;  %v3614_v31 = vmul.f32 %v3394_v27, %v1203_v33 }
 0x1c8   :  { %v3566_v52 = vpop.permute.xlu0 %710  ;;  %v1910_v54 = vmul.f32 %v3405_v56, %v4774_v59  ;;  %4777 = vst [vmem:[#allocation69_spill] sm:$0xff] %v3592_v50  ;;  %4778 = vst [vmem:[#allocation70_spill] sm:$0xff] %v3595_v2  ;;  %v3602_v59 = vmul.f32 %v3394_v27, %v621_v35  ;;  %v2558_v35 = vrot.slane %v1620_v43, 9  ;;  %v4787_v50 = vstv %s3413_s19 }
 0x1c9   :  { %4770 = vst [vmem:[#allocation64_spill] sm:$0xff] %v3566_v52  ;;  %v3580_v46 = vpop.permute.xlu1 %1228  ;;  %4785 = vst [vmem:[#allocation76_spill] sm:$0xff] %v3614_v31  ;;  %v1889_v52 = vmul.f32 %v3394_v27, %v4787_v50  ;;  %v4801_v2 = vstv %s3453_s2 }
 0x1ca   :  { %4773 = vst [vmem:[#allocation66_spill] sm:$0xff] %v3580_v46  ;;  %2145 = vrot.lane.b32.xlu0 %v2605_v8, %s4779_s6  ;;  %4781 = vst [vmem:[#allocation72_spill] sm:$0xff] %v3602_v59  ;;  %v3605_v46 = vmul.f32 %v3405_v56, %v912_v7  ;;  %v3611_v8 = vmul.f32 %v3405_v56, %v1203_v33  ;;  %v3624_v7 = vmul.f32 %v3405_v56, %v4788_v0 }
 0x1cb   :  { %1647 = vrot.lane.b32.xlu1 %v1646_v48, %s2705_s11  ;;  %v2585_v48 = vrot.slane %v1910_v54, 9  ;;  %v2158_v33 = vmul.f32 %v3394_v27, %v4792_v28  ;;  %v4794_v0 = vstv %s3444_s8  ;;  %v4795_v54 = vmov %v4791_v60  ;;  %v225_v60 = vld [vmem:[%s4583_s3 + $0xa] sm:$0x3]  ;;  %s2713_s8 = smov 122  }
 0x1cc   :  { %4782 = vst [vmem:[#allocation73_spill] sm:$0xff] %v3605_v46  ;;  %4784 = vst [vmem:[#allocation75_spill] sm:$0xff] %v3611_v8  ;;  %v3616_v21 = vpop.permute.xlu0 %979  ;;  %v3644_v19 = vmul.f32 %v3405_v56, %v4794_v0  ;;  %v2583_v4 = vrot.slane %v1889_v52, 9  ;;  %v4798_v28 = vstv %s3434_s29  ;;  %v3678_v52 = vmul.f32 %v3405_v56, %v4801_v2  ;;  %s2710_s29 = smov 125  }
 0x1cd   :  { %4786 = vst [vmem:[#allocation77_spill] sm:$0xff] %v3616_v21  ;;  %4789 = vst [vmem:[#allocation78_spill] sm:$0xff] %v3624_v7  ;;  %v3626_v13 = vpop.permute.xlu1 %1517  ;;  %v4793_v21 = vstv %s3438_s26  ;;  %v2608_v8 = vrot.slane %v2158_v33, 9  ;;  %v1937_v2 = vrot.slane %v225_v60, %v3247_v39  ;;  %s2711_s26 = smov 124  }
 0x1ce   :  { %4790 = vst [vmem:[#allocation79_spill] sm:$0xff] %v3626_v13  ;;  %1629 = vrot.lane.b32.xlu0 %v2558_v35, %s4760_s13  ;;  %v3639_v50 = vmul.f32 %v3394_v27, %v4793_v21  ;;  %v3649_v13 = vmul.f32 %v3394_v27, %v4795_v54  ;;  %v4796_v35 = vmov %v4794_v0  ;;  %v2610_v0 = vrot.slane %v2179_v38, 9  ;;  %4802 = vst [vmem:[#allocation83_spill] sm:$0xff] %v3678_v52 }
 0x1cf   :  { %1918 = vrot.lane.b32.xlu1 %v2585_v48, %s4760_s13  ;;  %v3658_v21 = vmul.f32 %v3394_v27, %v4796_v35  ;;  %v3670_v48 = vmul.f32 %v3394_v27, %v4798_v28  ;;  %v2613_v31 = vrot.slane %v3644_v19, 9  ;;  %v4821_v52 = vstv %s3483_s20 }
 0x1d0   :  { %v3662_v54 = vpop.permute.xlu0 %1248  ;;  %v2586_v28 = vrot.slane %v3639_v50, 9  ;;  %v4805_v50 = vstv %s3460_s7  ;;  %v4823_v37 = vmov %v4821_v52 }
 0x1d1   :  { %4797 = vst [vmem:[#allocation80_spill] sm:$0xff] %v3662_v54  ;;  %4799 = vst [vmem:[#allocation81_spill] sm:$0xff] %v3670_v48  ;;  %v3673_v43 = vpop.permute.xlu1 %2047  ;;  %v3700_v35 = vmul.f32 %v3394_v27, %v4805_v50  ;;  %v4807_v60 = vmov %v4805_v50  ;;  %v4809_v54 = vstv %s3453_s2  ;;  %s4484_s2 = sld [smem:[#allocation3 + $0x31]] }
 0x1d2   :  { %4800 = vst [vmem:[#allocation82_spill] sm:$0xff] %v3673_v43  ;;  %1898 = vrot.lane.b32.xlu0 %v2583_v4, %s4765_s17  ;;  %v4803_v43 = vstv %s3446_s1  ;;  %v3708_v7 = vmul.f32 %v3405_v56, %v4807_v60  ;;  %v4808_v4 = vstv %s3462_s10  ;;  %v3718_v50 = vmul.f32 %v3394_v27, %v4809_v54  ;;  %s227_s1 = sld [smem:[#allocation3]] }
 0x1d3   :  { %v3687_v38 = vmul.f32 %v3394_v27, %v4803_v43  ;;  %2187 = vrot.lane.b32.xlu1 %v2610_v0, %s4765_s17  ;;  %v4804_v33 = vmov %v4803_v43  ;;  %v4817_v54 = vstv %s3462_s10 }
 0x1d4   :  { %v3695_v19 = vmul.f32 %v3405_v56, %v4804_v33  ;;  %v3702_v43 = vpop.permute.xlu0 %1774  ;;  %v3713_v33 = vmul.f32 %v3394_v27, %v4808_v4  ;;  %4810 = vst [vmem:[#allocation85_spill] sm:$0xff] %v3718_v50  ;;  %v4815_v4 = vstv %s3481_s9  ;;  %v3742_v0 = vmul.f32 %v3405_v56, %v4817_v54 }
 0x1d5   :  { %4806 = vst [vmem:[#allocation84_spill] sm:$0xff] %v3702_v43  ;;  %v3720_v61 = vpop.permute.xlu1 %712  ;;  %v4812_v43 = vstv %s3472_s4  ;;  %v3736_v48 = vmul.f32 %v3405_v56, %v4815_v4  ;;  %v3757_v4 = vmul.f32 %v3405_v56, %v4823_v37  ;;  %s2706_s4 = smov 5   ;;  %v4827_v54 = vstv %s3468_s16  ;;  %s4851_s16 = smov 112  }
 0x1d6   :  { %4811 = vst [vmem:[#allocation86_spill] sm:$0xff] %v3720_v61  ;;  %v3726_v60 = vmul.f32 %v3394_v27, %v4812_v43  ;;  %v4813_v46 = vmov %v4812_v43  ;;  %2167 = vrot.lane.b32.xlu0 %v2608_v8, %s4769_s21  ;;  %4818 = vst [vmem:[#allocation89_spill] sm:$0xff] %v3742_v0  ;;  %v4819_v61 = vstv %s3466_s27  ;;  %v3767_v9 = vmul.f32 %v3394_v27, %v4827_v54 }
 0x1d7   :  { %v3731_v59 = vmul.f32 %v3405_v56, %v4813_v46  ;;  %4816 = vst [vmem:[#allocation88_spill] sm:$0xff] %v3736_v48  ;;  %v3747_v43 = vmul.f32 %v3394_v27, %v4819_v61  ;;  %v3752_v46 = vmul.f32 %v3394_v27, %v4821_v52  ;;  %4824 = vst [vmem:[#allocation92_spill] sm:$0xff] %v3757_v4  ;;  %1938 = vrot.lane.b32.xlu1 %v1937_v2, %s2706_s4  ;;  %v226_v2 = vld [vmem:[%s4583_s3 + $0xc] sm:$0x3] }
 0x1d8   :  { %v4825_v8 = vmov %v4819_v61  ;;  %4828 = vst [vmem:[#allocation94_spill] sm:$0xff] %v3767_v9  ;;  %v4829_v61 = vstv %s3492_s28  ;;  %v3779_v37 = vpop.permute.xlu0 %2063  ;;  %v4842_v4 = vstv %s3500_s14 }
 0x1d9   :  { %4814 = vst [vmem:[#allocation87_spill] sm:$0xff] %v3731_v59  ;;  %4820 = vst [vmem:[#allocation90_spill] sm:$0xff] %v3747_v43  ;;  %v3762_v15 = vmul.f32 %v3405_v56, %v4825_v8  ;;  %v3772_v63 = vmul.f32 %v3394_v27, %v4829_v61  ;;  %v4831_v52 = vmov %v4829_v61  ;;  %v4834_v8 = vmov %v4827_v54  ;;  %v3801_v0 = vpop.permute.xlu1 %981 }
 0x1da   :  { %4822 = vst [vmem:[#allocation91_spill] sm:$0xff] %v3752_v46  ;;  %v3777_v43 = vmul.f32 %v3405_v56, %v4831_v52  ;;  %4833 = vst [vmem:[#allocation97_spill] sm:$0xff] %v3779_v37  ;;  %v4835_v54 = vstv %s3470_s24  ;;  %v522_v37 = vrot.slane %v2979_v3, 2  ;;  %1920 = vrot.lane.b32.xlu0 %v2586_v28, %s4760_s13  ;;  %v4840_v28 = vstv %s3494_s12  ;;  %s4852_s24 = smov 96   ;;  %s2342_s12 = sld [smem:[#allocation5]] }
 0x1db   :  { %4826 = vst [vmem:[#allocation93_spill] sm:$0xff] %v3762_v15  ;;  %4830 = vst [vmem:[#allocation95_spill] sm:$0xff] %v3772_v63  ;;  %v3787_v15 = vmul.f32 %v3405_v56, %v4834_v8  ;;  %v3792_v9 = vmul.f32 %v3394_v27, %v4835_v54  ;;  %v4837_v61 = vmov %v4835_v54  ;;  %2209 = vrot.lane.b32.xlu1 %v2613_v31, %s4760_s13  ;;  %v4841_v52 = vmov %v4840_v28 }
 0x1dc   :  { %4832 = vst [vmem:[#allocation96_spill] sm:$0xff] %v3777_v43  ;;  %v3797_v25 = vmul.f32 %v3405_v56, %v4837_v61  ;;  %4838 = vst [vmem:[#allocation99_spill] sm:$0xff] %v3801_v0  ;;  %v813_v61 = vrot.slane %v2982_v5, 2  ;;  %v2228_v8 = vrot.slane %v226_v2, %v3247_v39  ;;  %v3816_v0 = vpop.permute.xlu0 %732  ;;  %v3821_v59 = vmul.f32 %v3394_v27, %v4840_v28 }
 0x1dd   :  { %4836 = vst [vmem:[#allocation98_spill] sm:$0xff] %v3792_v9  ;;  %v523_v9 = vrot.slane %v2971_v62, 2  ;;  %4839 = vst [vmem:[#allocation100_spill] sm:$0xff] %v3816_v0  ;;  %v3826_v50 = vmul.f32 %v3405_v56, %v4841_v52  ;;  %v3831_v46 = vmul.f32 %v3394_v27, %v4842_v4  ;;  %v4843_v31 = vmov %v4842_v4  ;;  %v3840_v54 = vpop.permute.xlu1 %1250 }
 0x1de   :  { %v3836_v2 = vmul.f32 %v3405_v56, %v4843_v31  ;;  %v524_v48 = vsel %vm245_vm10, %v2979_v3, %v522_v37  ;;  %4844 = vst [vmem:[#allocation101_spill] sm:$0xff] %v3840_v54  ;;  %v4845_v28 = vstv %s3502_s15  ;;  %v4847_v4 = vstv %s3481_s9  ;;  %s2707_s9 = smov 6  }
 0x1df   :  { %v3845_v39 = vmul.f32 %v3394_v27, %v4845_v28  ;;  %v4846_v52 = vmov %v4845_v28  ;;  %v3855_v43 = vmul.f32 %v3394_v27, %v4847_v4  ;;  %v525_v31 = vsel %vm245_vm10, %v2971_v62, %v523_v9  ;;  %2229 = vrot.lane.b32.xlu1 %v2228_v8, %s2707_s9 }
 0x1e0   :  { %v3850_v0 = vmul.f32 %v3405_v56, %v4846_v52  ;;  %v815_v3 = vsel %vm245_vm10, %v2982_v5, %v813_v61  ;;  %v558_v37 = vrot.slane %v2996_v12, 2  ;;  %v541_v54 = vrot.slane %v3002_v16, 2  ;;  %v3873_v61 = vpop.permute.xlu0 %1001 }
 0x1e1   :  { %4848 = vst [vmem:[#allocation102_spill] sm:$0xff] %v3855_v43  ;;  %v4849_v28 = vrot.slane %v3649_v13, 9  ;;  %v542_v56 = vsel %vm264_vm11, %v2993_v10, %v540_v11  ;;  %v831_v27 = vrot.slane %v3005_v18, 2  ;;  %v814_v52 = vrot.slane %v3016_v24, 2 }
 0x1e2   :  { %v559_v62 = vrot.slane %v3019_v26, 2  ;;  %v528_v5 = vadd.f32 %v524_v48, %v3553_v42  ;;  %v1396_v9 = vrot.slane %v3104_v23, 2  ;;  %v2439_v4 = vrot.slane %v3826_v50, 9 }
 0x1e3   :  { %2189 = vrot.lane.b32.xlu0 %v4849_v28, %s4765_s17  ;;  %v529_v10 = vadd.f32 %v525_v31, %v3550_v41  ;;  %v819_v11 = vadd.f32 %v815_v3, %v3556_v32  ;;  %v3879_v28 = vpop.permute.xlu1 %1519  ;;  %v2443_v43 = vrot.slane %v3831_v46, 9  ;;  %v2442_v8 = vrot.slane %v3836_v2, 9  ;;  %241 = vrot.lane.b32.xlu1 %v3687_v38, %s4851_s16 }
 0x1e4   :  { %v546_v63 = vadd.f32 %v542_v56, %v528_v5  ;;  %v560_v42 = vsel %vm283_vm12, %v2996_v12, %v558_v37  ;;  %v543_v48 = vsel %vm264_vm11, %v3002_v16, %v541_v54  ;;  %v1414_v13 = vrot.slane %v3143_v53, 2  ;;  %v3905_v37 = vpop.permute.xlu0 %1270 }
 0x1e5   :  { %v4850_v41 = vrot.slane %v3658_v21, 9  ;;  %v833_v32 = vsel %vm264_vm11, %v3005_v18, %v831_v27  ;;  %v816_v31 = vsel %vm245_vm10, %v3016_v24, %v814_v52  ;;  %v561_v3 = vsel %vm283_vm12, %v3019_v26, %v559_v62 }
 0x1e6   :  { %v1104_v12 = vrot.slane %v3026_v1, 2  ;;  %v832_v16 = vrot.slane %v3030_v30, 2  ;;  %v576_v21 = vrot.slane %v3037_v36, 2  ;;  %v1398_v54 = vsel %vm245_vm10, %v3104_v23, %v1396_v9 }
 0x1e7   :  { %2211 = vrot.lane.b32.xlu0 %v4850_v41, %s4760_s13  ;;  %v1432_v18 = vrot.slane %v3199_v6, 2  ;;  %v547_v24 = vadd.f32 %v543_v48, %v529_v10  ;;  %v1105_v26 = vrot.slane %v3040_v40, 2  ;;  %v3908_v56 = vpop.permute.xlu1 %1808  ;;  %v2446_v27 = vrot.slane %v3845_v39, 9  ;;  %260 = vrot.lane.b32.xlu1 %v3700_v35, %s4852_s24 }
 0x1e8   :  { %v564_v52 = vadd.f32 %v560_v42, %v546_v63  ;;  %v837_v62 = vadd.f32 %v833_v32, %v819_v11  ;;  %v1416_v5 = vsel %vm264_vm11, %v3143_v53, %v1414_v13  ;;  %v1450_v23 = vrot.slane %v3255_v22, 2  ;;  %v3930_v13 = vpop.permute.xlu0 %1539 }
 0x1e9   :  { %v820_v9 = vadd.f32 %v816_v31, %v3561_v17  ;;  %v565_v10 = vadd.f32 %v561_v3, %v547_v24  ;;  %v1106_v48 = vsel %vm245_vm10, %v3026_v1, %v1104_v12  ;;  %v1402_v41 = vadd.f32 %v1398_v54, %v3578_v20  ;;  %v4853_v24 = vld [vmem:[#allocation23_spill] sm:$0xff] }
 0x1ea   :  { %v834_v63 = vsel %vm264_vm11, %v3030_v30, %v832_v16  ;;  %v578_v53 = vsel %vm302_vm13, %v3037_v36, %v576_v21  ;;  %v1468_v17 = vrot.slane %v3295_v58, 2  ;;  %v1107_v1 = vsel %vm245_vm10, %v3040_v40, %v1105_v26 }
 0x1eb   :  { %239 = vrot.lane.b32.xlu0 %v3695_v19, %s4851_s16  ;;  %v1434_v19 = vsel %vm283_vm12, %v3199_v6, %v1432_v18  ;;  %v849_v20 = vrot.slane %v3048_v44, 2  ;;  %v1395_v35 = vrot.slane %v3051_v47, 2  ;;  %v1420_v11 = vadd.f32 %v1416_v5, %v1402_v41  ;;  %v3936_v42 = vpop.permute.xlu1 %734  ;;  %279 = vrot.lane.b32.xlu1 %v3713_v33, %s4779_s6  ;;  %v4855_v41 = vld [vmem:[#allocation32_spill] sm:$0xff] }
 0x1ec   :  { %v1122_v30 = vrot.slane %v3059_v49, 2  ;;  %v594_v36 = vrot.slane %v3061_v51, 2  ;;  %v1452_v6 = vsel %vm302_vm13, %v3255_v22, %v1450_v23  ;;  %v1486_v32 = vrot.slane %v3392_v34, 2  ;;  %v3955_v18 = vpop.permute.xlu0 %2065 }
 0x1ed   :  { %v1110_v40 = vadd.f32 %v1106_v48, %v3564_v14  ;;  %v577_v31 = vrot.slane %v3072_v55, 2  ;;  %v1686_v3 = vrot.slane %v3115_v29, 2  ;;  %v1438_v12 = vadd.f32 %v1434_v19, %v1420_v11 }
 0x1ee   :  { %v3950_v16 = vadd.f32 %v834_v63, %v820_v9  ;;  %v582_v21 = vadd.f32 %v578_v53, %v564_v52  ;;  %v867_v22 = vrot.slane %v3075_v57, 2  ;;  %v1470_v54 = vsel %vm321_vm14, %v3295_v58, %v1468_v17  ;;  %v4854_v9 = vld [vmem:[#allocation89_spill] sm:$0xff] }
 0x1ef   :  { %258 = vrot.lane.b32.xlu0 %v3708_v7, %s4852_s24  ;;  %v3958_v14 = vadd.f32 %v1107_v1, %v3572_v45  ;;  %v851_v7 = vsel %vm283_vm12, %v3048_v44, %v849_v20  ;;  %v1704_v26 = vrot.slane %v4853_v24, 2  ;;  %v1456_v5 = vadd.f32 %v1452_v6, %v1438_v12  ;;  %v3963_v33 = vpop.permute.xlu1 %1003 }
 0x1f0   :  { %v1397_v52 = vsel %vm245_vm10, %v3051_v47, %v1395_v35  ;;  %v1124_v23 = vsel %vm264_vm11, %v3059_v49, %v1122_v30  ;;  %v596_v58 = vsel %vm321_vm14, %v3061_v51, %v594_v36  ;;  %v1488_v45 = vsel %vm340_vm15, %v3392_v34, %v1486_v32  ;;  %v4856_v49 = vld [vmem:[#allocation90_spill] sm:$0xff]  ;;  %v3986_v1 = vpop.permute.xlu0 %754  ;;  %v4859_v35 = vld [vmem:[#allocation41_spill] sm:$0xff]  ;;  %v4860_v32 = vld [vmem:[#allocation67_spill] sm:$0xff] }
 0x1f1   :  { %v579_v44 = vsel %vm302_vm13, %v3072_v55, %v577_v31  ;;  %v1688_v48 = vsel %vm245_vm10, %v3115_v29, %v1686_v3  ;;  %v1722_v47 = vrot.slane %v4855_v41, 2  ;;  %v1474_v63 = vadd.f32 %v1470_v54, %v1456_v5  ;;  %298 = vrot.lane.b32.xlu1 %v4856_v49, %s4769_s21  ;;  %v4857_v34 = vld [vmem:[#allocation10_spill] sm:$0xff]  ;;  %v4858_v55 = vld [vmem:[#allocation65_spill] sm:$0xff] }
 0x1f2   :  { %v855_v53 = vadd.f32 %v851_v7, %v837_v62  ;;  %v869_v51 = vsel %vm302_vm13, %v3075_v57, %v867_v22  ;;  %v850_v19 = vrot.slane %v4857_v34, 2  ;;  %v1522_v17 = vrot.slane %v3879_v28, 2  ;;  %v4861_v3 = vld [vmem:[#allocation93_spill] sm:$0xff]  ;;  %v4862_v22 = vld [vmem:[#allocation11_spill] sm:$0xff]  ;;  %v4864_v5 = vld [vmem:[#allocation94_spill] sm:$0xff] }
 0x1f3   :  { %277 = vrot.lane.b32.xlu0 %v4854_v9, %s4779_s6  ;;  %v3989_v20 = vadd.f32 %v1397_v52, %v4858_v55  ;;  %v1706_v29 = vsel %vm264_vm11, %v4853_v24, %v1704_v26  ;;  %v1740_v11 = vrot.slane %v4859_v35, 2  ;;  %v1492_v30 = vadd.f32 %v1488_v45, %v1474_v63  ;;  %v3994_v36 = vpop.permute.xlu1 %1272  ;;  %v4863_v24 = vld [vmem:[#allocation49_spill] sm:$0xff]  ;;  %v4866_v45 = vld [vmem:[#allocation16_spill] sm:$0xff] }
 0x1f4   :  { %v1128_v62 = vadd.f32 %v1124_v23, %v1110_v40  ;;  %v600_v6 = vadd.f32 %v596_v58, %v582_v21  ;;  %v583_v57 = vadd.f32 %v579_v44, %v565_v10  ;;  %v1692_v31 = vadd.f32 %v1688_v48, %v4860_v32  ;;  %v4865_v40 = vld [vmem:[#allocation14_spill] sm:$0xff]  ;;  %v4012_v58 = vpop.permute.xlu0 %1023  ;;  %v4867_v48 = vld [vmem:[#allocation60_spill] sm:$0xff] }
 0x1f5   :  { %v3999_v12 = vadd.f32 %v869_v51, %v855_v53  ;;  %v1140_v54 = vrot.slane %v4862_v22, 2  ;;  %v1724_v7 = vsel %vm283_vm12, %v4855_v41, %v1722_v47  ;;  %v1758_v26 = vrot.slane %v4863_v24, 2  ;;  %317 = vrot.lane.b32.xlu1 %v4864_v5, %s4765_s17  ;;  %v4868_v47 = vld [vmem:[#allocation81_spill] sm:$0xff]  ;;  %v4870_v51 = vld [vmem:[#allocation12_spill] sm:$0xff] }
 0x1f6   :  { %v852_v10 = vsel %vm283_vm12, %v4857_v34, %v850_v19  ;;  %v595_v21 = vrot.slane %v4865_v40, 2  ;;  %v1710_v52 = vadd.f32 %v1706_v29, %v1692_v31  ;;  %v1524_v23 = vsel %vm245_vm10, %v3879_v28, %v1522_v17  ;;  %v4871_v19 = vld [vmem:[#allocation25_spill] sm:$0xff]  ;;  %v4873_v31 = vld [vmem:[#allocation15_spill] sm:$0xff] }
 0x1f7   :  { %296 = vrot.lane.b32.xlu0 %v4861_v3, %s4769_s21  ;;  %v612_v9 = vrot.slane %v4866_v45, 2  ;;  %v1742_v44 = vsel %vm302_vm13, %v4859_v35, %v1740_v11  ;;  %v1776_v41 = vrot.slane %v4867_v48, 2  ;;  %v4869_v63 = vrot.slane %v4868_v47, 9  ;;  %v1542_v53 = vpop.permute.xlu1 %1541  ;;  %v4872_v17 = vld [vmem:[#allocation13_spill] sm:$0xff] }
 0x1f8   :  { %v1123_v34 = vrot.slane %v4870_v51, 2  ;;  %v613_v55 = vrot.slane %v4871_v19, 2  ;;  %v1728_v29 = vadd.f32 %v1724_v7, %v1710_v52  ;;  %v1544_v28 = vrot.slane %v1542_v53, 2  ;;  %v4875_v47 = vld [vmem:[#allocation17_spill] sm:$0xff] }
 0x1f9   :  { %v1506_v49 = vadd.f32 %v4869_v63, %v1492_v30  ;;  %v1413_v32 = vrot.slane %v4872_v17, 2  ;;  %v868_v3 = vrot.slane %v4873_v31, 2  ;;  %v1760_v35 = vsel %vm321_vm14, %v4863_v24, %v1758_v26  ;;  %v4874_v30 = vld [vmem:[#allocation98_spill] sm:$0xff]  ;;  %v4034_v63 = vpop.permute.xlu0 %1292 }
 0x1fa   :  { %336 = vrot.lane.b32.xlu1 %v4874_v30, %s4760_s13  ;;  %v597_v5 = vsel %vm321_vm14, %v4865_v40, %v595_v21  ;;  %v1141_v7 = vrot.slane %v4875_v47, 2  ;;  %v1746_v52 = vadd.f32 %v1742_v44, %v1728_v29  ;;  %v1142_v38 = vsel %vm283_vm12, %v4862_v22, %v1140_v54  ;;  %v4876_v21 = vld [vmem:[#allocation18_spill] sm:$0xff] }
 0x1fb   :  { %315 = vrot.lane.b32.xlu0 %v3787_v15, %s4765_s17  ;;  %v1528_v11 = vadd.f32 %v1524_v23, %v1506_v49  ;;  %v1546_v15 = vsel %vm264_vm11, %v1542_v53, %v1544_v28  ;;  %v614_v24 = vsel %vm340_vm15, %v4866_v45, %v612_v9  ;;  %v1778_v26 = vsel %vm340_vm15, %v4867_v48, %v1776_v41  ;;  %v4044_v49 = vpop.permute.xlu1 %1810 }
 0x1fc   :  { %v1125_v40 = vsel %vm264_vm11, %v4870_v51, %v1123_v34  ;;  %v885_v44 = vrot.slane %v4876_v21, 2  ;;  %v615_v53 = vsel %vm340_vm15, %v4871_v19, %v613_v55  ;;  %v1764_v29 = vadd.f32 %v1760_v35, %v1746_v52  ;;  %v4878_v34 = vld [vmem:[#allocation50_spill] sm:$0xff] }
 0x1fd   :  { %v4042_v23 = vadd.f32 %v1546_v15, %v1528_v11  ;;  %v1415_v22 = vsel %vm264_vm11, %v4872_v17, %v1413_v32  ;;  %v601_v54 = vadd.f32 %v597_v5, %v583_v57  ;;  %v870_v45 = vsel %vm302_vm13, %v4873_v31, %v868_v3  ;;  %v4064_v55 = vpop.permute.xlu0 %1561  ;;  %v4879_v3 = vld [vmem:[#allocation19_spill] sm:$0xff]  ;;  %v4880_v11 = vld [vmem:[#allocation53_spill] sm:$0xff]  ;;  %v4886_v52 = vld [vmem:[#allocation70_spill] sm:$0xff] }
 0x1fe   :  { %v1812_v9 = vrot.slane %v3908_v56, 2  ;;  %v4877_v48 = vrot.slane %v3726_v60, 9  ;;  %v618_v41 = vadd.f32 %v614_v24, %v600_v6  ;;  %v1143_v51 = vsel %vm283_vm12, %v4875_v47, %v1141_v7  ;;  %v4881_v5 = vld [vmem:[#allocation87_spill] sm:$0xff] }
 0x1ff   :  { %334 = vrot.lane.b32.xlu0 %v3797_v25, %s4760_s13  ;;  %v649_v19 = vrot.slane %v4878_v34, 2  ;;  %v1782_v25 = vadd.f32 %v1778_v26, %v1764_v29  ;;  %v856_v57 = vadd.f32 %v852_v10, %v3950_v16  ;;  %v1146_v28 = vadd.f32 %v1142_v38, %v1128_v62  ;;  %v4068_v31 = vpop.permute.xlu1 %2099  ;;  %v4884_v10 = vld [vmem:[#allocation91_spill] sm:$0xff] }
 0x200   :  { %373 = vrot.lane.b32.xlu1 %v4877_v48, %s4851_s16  ;;  %v1129_v17 = vadd.f32 %v1125_v40, %v3958_v14  ;;  %v619_v32 = vadd.f32 %v615_v53, %v601_v54  ;;  %v4071_v60 = vadd.f32 %v1415_v22, %v3989_v20  ;;  %v887_v6 = vsel %vm321_vm14, %v4876_v21, %v885_v44  ;;  %v4883_v14 = vld [vmem:[#allocation20_spill] sm:$0xff]  ;;  %v4888_v40 = vld [vmem:[#allocation61_spill] sm:$0xff]  ;;  %v4889_v44 = vld [vmem:[#allocation83_spill] sm:$0xff] }
 0x201   :  { %v1158_v35 = vrot.slane %v4879_v3, 2  ;;  %v671_v30 = vrot.slane %v4880_v11, 2  ;;  %v4882_v47 = vrot.slane %v4881_v5, 9  ;;  %v4080_v38 = vadd.f32 %v870_v45, %v856_v57  ;;  %v1831_v22 = vpop.permute.xlu0 %1830  ;;  %v4891_v45 = vld [vmem:[#allocation48_spill] sm:$0xff] }
 0x202   :  { %v4082_v16 = vadd.f32 %v1143_v51, %v1129_v17  ;;  %v1687_v62 = vrot.slane %v4883_v14, 2  ;;  %v1814_v20 = vsel %vm245_vm10, %v3908_v56, %v1812_v9  ;;  %v4885_v7 = vrot.slane %v4884_v10, 9  ;;  %v4892_v9 = vld [vmem:[#allocation72_spill] sm:$0xff]  ;;  %v4897_v10 = vld [vmem:[#allocation54_spill] sm:$0xff] }
 0x203   :  { %371 = vrot.lane.b32.xlu0 %v4882_v47, %s4851_s16  ;;  %v4887_v15 = vrot.slane %v4886_v52, 9  ;;  %v651_v26 = vsel %vm245_vm10, %v4878_v34, %v649_v19  ;;  %v693_v21 = vrot.slane %v4888_v40, 2  ;;  %v4890_v53 = vrot.slane %v4889_v44, 9  ;;  %v4101_v17 = vpop.permute.xlu1 %774  ;;  %v4894_v19 = vld [vmem:[#allocation86_spill] sm:$0xff]  ;;  %v4895_v47 = vld [vmem:[#allocation92_spill] sm:$0xff] }
 0x204   :  { %395 = vrot.lane.b32.xlu1 %v4885_v7, %s4852_s24  ;;  %v891_v54 = vadd.f32 %v887_v6, %v3999_v12  ;;  %v648_v56 = vrot.slane %v4891_v45, 2  ;;  %v4893_v48 = vrot.slane %v4892_v9, 9  ;;  %v1834_v57 = vrot.slane %v1831_v22, 2 }
 0x205   :  { %v632_v24 = vadd.f32 %v4887_v15, %v618_v41  ;;  %v1796_v29 = vadd.f32 %v4890_v53, %v1782_v25  ;;  %v1160_v41 = vsel %vm302_vm13, %v4879_v3, %v1158_v35  ;;  %v673_v34 = vsel %vm264_vm11, %v4880_v11, %v671_v30  ;;  %v4898_v3 = vld [vmem:[#allocation95_spill] sm:$0xff]  ;;  %v757_v53 = vpop.permute.xlu0 %756 }
 0x206   :  { %v633_v51 = vadd.f32 %v4893_v48, %v619_v32  ;;  %v715_v5 = vrot.slane %v4894_v19, 2  ;;  %v4896_v12 = vrot.slane %v4895_v47, 9  ;;  %v1689_v6 = vsel %vm245_vm10, %v4883_v14, %v1687_v62  ;;  %v4900_v11 = vld [vmem:[#allocation27_spill] sm:$0xff]  ;;  %v4902_v48 = vld [vmem:[#allocation68_spill] sm:$0xff]  ;;  %v4906_v47 = vld [vmem:[#allocation21_spill] sm:$0xff] }
 0x207   :  { %v1818_v25 = vadd.f32 %v1814_v20, %v1796_v29  ;;  %v670_v7 = vrot.slane %v4897_v10, 2  ;;  %v1836_v52 = vsel %vm264_vm11, %v1831_v22, %v1834_v57  ;;  %v4899_v35 = vrot.slane %v4898_v3, 9  ;;  %v4901_v29 = vld [vmem:[#allocation56_spill] sm:$0xff]  ;;  %v4129_v9 = vpop.permute.xlu1 %1045 }
 0x208   :  { %393 = vrot.lane.b32.xlu0 %v4896_v12, %s4852_s24  ;;  %v655_v32 = vadd.f32 %v651_v26, %v633_v51  ;;  %v903_v30 = vrot.slane %v4900_v11, 2  ;;  %v695_v20 = vsel %vm283_vm12, %v4888_v40, %v693_v21  ;;  %v737_v15 = vrot.slane %v3936_v42, 2  ;;  %v4903_v57 = vld [vmem:[#allocation24_spill] sm:$0xff] }
 0x209   :  { %417 = vrot.lane.b32.xlu1 %v4899_v35, %s4779_s6  ;;  %v4122_v44 = vadd.f32 %v1836_v52, %v1818_v25  ;;  %v4124_v14 = vadd.f32 %v1160_v41, %v1146_v28  ;;  %v650_v62 = vsel %vm245_vm10, %v4891_v45, %v648_v56  ;;  %v692_v22 = vrot.slane %v4901_v29, 2  ;;  %v4904_v28 = vld [vmem:[#allocation96_spill] sm:$0xff] }
 0x20a   :  { %v677_v26 = vadd.f32 %v673_v34, %v655_v32  ;;  %v4132_v51 = vadd.f32 %v1689_v6, %v4902_v48  ;;  %v886_v40 = vrot.slane %v4903_v57, 2  ;;  %v717_v21 = vsel %vm302_vm13, %v4894_v19, %v715_v5  ;;  %v4907_v12 = vld [vmem:[#allocation64_spill] sm:$0xff]  ;;  %v4152_v48 = vpop.permute.xlu0 %1025 }
 0x20b   :  { %v759_v25 = vrot.slane %v757_v53, 2  ;;  %v4905_v41 = vrot.slane %v4904_v28, 9  ;;  %v1431_v45 = vrot.slane %v4906_v47, 2  ;;  %v672_v56 = vsel %vm264_vm11, %v4897_v10, %v670_v7  ;;  %v4909_v5 = vld [vmem:[#allocation36_spill] sm:$0xff]  ;;  %v4910_v28 = vld [vmem:[#allocation22_spill] sm:$0xff] }
 0x20c   :  { %v699_v34 = vadd.f32 %v695_v20, %v677_v26  ;;  %v714_v32 = vrot.slane %v4907_v12, 2  ;;  %v4908_v6 = vrot.slane %v3821_v59, 9  ;;  %v905_v19 = vsel %vm340_vm15, %v4900_v11, %v903_v30  ;;  %v4911_v26 = vld [vmem:[#allocation100_spill] sm:$0xff] }
 0x20d   :  { %415 = vrot.lane.b32.xlu0 %v4905_v41, %s4779_s6  ;;  %v904_v52 = vrot.slane %v4909_v5, 2  ;;  %v654_v3 = vadd.f32 %v650_v62, %v632_v24  ;;  %v739_v35 = vsel %vm321_vm14, %v3936_v42, %v737_v15  ;;  %v1977_v10 = vrot.slane %v4910_v28, 2  ;;  %v4158_v41 = vpop.permute.xlu1 %1314  ;;  %v4912_v30 = vld [vmem:[#allocation52_spill] sm:$0xff]  ;;  %s4966_s6 = sld [smem:[#allocation103_spill]] }
 0x20e   :  { %439 = vrot.lane.b32.xlu1 %v4908_v6, %s4769_s21  ;;  %v694_v7 = vsel %vm283_vm12, %v4901_v29, %v692_v22  ;;  %v721_v20 = vadd.f32 %v717_v21, %v699_v34  ;;  %v736_v59 = vrot.slane %v4911_v26, 2  ;;  %v888_v11 = vsel %vm321_vm14, %v4903_v57, %v886_v40  ;;  %v4914_v6 = vld [vmem:[#allocation77_spill] sm:$0xff] }
 0x20f   :  { %v939_v24 = vrot.slane %v4912_v30, 2  ;;  %v676_v62 = vadd.f32 %v672_v56, %v654_v3  ;;  %v761_v42 = vsel %vm340_vm15, %v757_v53, %v759_v25  ;;  %v909_v15 = vadd.f32 %v905_v19, %v891_v54  ;;  %v4913_v53 = vld [vmem:[#allocation58_spill] sm:$0xff] }
 0x210   :  { %v716_v29 = vsel %vm302_vm13, %v4907_v12, %v714_v32  ;;  %v743_v22 = vadd.f32 %v739_v35, %v721_v20  ;;  %v758_v21 = vrot.slane %v3986_v1, 2  ;;  %v906_v57 = vsel %vm340_vm15, %v4909_v5, %v904_v52  ;;  %v4915_v5 = vld [vmem:[#allocation73_spill] sm:$0xff]  ;;  %v4917_v35 = vld [vmem:[#allocation55_spill] sm:$0xff] }
 0x211   :  { %437 = vrot.lane.b32.xlu0 %v2439_v4, %s4769_s21  ;;  %v698_v40 = vadd.f32 %v694_v7, %v676_v62  ;;  %v961_v25 = vrot.slane %v4913_v53, 2  ;;  %v776_v50 = vrot.slane %v4101_v17, 6  ;;  %v4177_v4 = vpop.permute.xlu0 %1294  ;;  %v892_v54 = vadd.f32 %v888_v11, %v4080_v38  ;;  %v4182_v12 = vpop.permute.xlu1 %1583 }
 0x212   :  { %461 = vrot.lane.b32.xlu1 %v2443_v43, %s4765_s17  ;;  %v738_v56 = vsel %vm321_vm14, %v4911_v26, %v736_v59  ;;  %v765_v34 = vadd.f32 %v761_v42, %v743_v22  ;;  %v1433_v43 = vsel %vm283_vm12, %v4906_v47, %v1431_v45  ;;  %v941_v46 = vsel %vm245_vm10, %v4912_v30, %v939_v24 }
 0x213   :  { %v720_v32 = vadd.f32 %v716_v29, %v698_v40  ;;  %v983_v19 = vrot.slane %v4914_v6, 2  ;;  %v910_v38 = vadd.f32 %v906_v57, %v892_v54  ;;  %v4916_v52 = vrot.slane %v4915_v5, 9  ;;  %v4922_v40 = vld [vmem:[#allocation99_spill] sm:$0xff] }
 0x214   :  { %v940_v7 = vrot.slane %v4917_v35, 2  ;;  %v760_v20 = vsel %vm340_vm15, %v3986_v1, %v758_v21  ;;  %v963_v47 = vsel %vm264_vm11, %v4913_v53, %v961_v25  ;;  %v1005_v2 = vrot.slane %v3873_v61, 2  ;;  %v4918_v1 = vld [vmem:[#allocation63_spill] sm:$0xff]  ;;  %v4923_v25 = vld [vmem:[#allocation74_spill] sm:$0xff] }
 0x215   :  { %459 = vrot.lane.b32.xlu0 %v2442_v8, %s4765_s17  ;;  %v923_v3 = vadd.f32 %v4916_v52, %v909_v15  ;;  %v742_v45 = vadd.f32 %v738_v56, %v720_v32  ;;  %v778_v8 = vsel %vm777_vm0, %v776_v50, %v4101_v17  ;;  %v4205_v26 = vpop.permute.xlu0 %1563  ;;  %v4208_v59 = vadd.f32 %v1433_v43, %v4071_v60  ;;  %v4211_v39 = vpop.permute.xlu1 %1852  ;;  %v4921_v60 = vld [vmem:[#allocation26_spill] sm:$0xff] }
 0x216   :  { %483 = vrot.lane.b32.xlu1 %v2446_v27, %s4760_s13  ;;  %v962_v30 = vrot.slane %v4918_v1, 2  ;;  %v781_v24 = vmul.f32 %v778_v8, %v765_v34  ;;  %v4919_v27 = vld [vmem:[#allocation28_spill] sm:$0xff]  ;;  %v985_v42 = vsel %vm283_vm12, %v4914_v6, %v983_v19  ;;  %v1027_v29 = vrot.slane %v4012_v58, 2 }
 0x217   :  { %v945_v11 = vadd.f32 %v941_v46, %v923_v3  ;;  %v1176_v62 = vrot.slane %v4919_v27, 2  ;;  %v764_v15 = vadd.f32 %v760_v20, %v742_v45  ;;  %v4920_v17 = vrot.slane %v3850_v0, 9 }
 0x218   :  { %v1159_v22 = vrot.slane %v4921_v60, 2  ;;  %v942_v21 = vsel %vm245_vm10, %v4917_v35, %v940_v7  ;;  %v984_v53 = vrot.slane %v4922_v40, 2  ;;  %v4924_v50 = vrot.slane %v4923_v25, 9  ;;  %v4926_v7 = vld [vmem:[#allocation33_spill] sm:$0xff] }
 0x219   :  { %481 = vrot.lane.b32.xlu0 %v4920_v17, %s4760_s13  ;;  %v967_v57 = vadd.f32 %v963_v47, %v945_v11  ;;  %v1007_v56 = vsel %vm302_vm13, %v3873_v61, %v1005_v2  ;;  %v780_v34 = vmul.f32 %v778_v8, %v764_v15  ;;  %v1049_v0 = vrot.slane %v4129_v9, 2  ;;  %v4229_v43 = vpop.permute.xlu0 %1832  ;;  %v4236_v5 = vpop.permute.xlu1 %2121  ;;  %v4925_v61 = vld [vmem:[#allocation29_spill] sm:$0xff]  ;;  %v4927_v2 = vld [vmem:[#allocation38_spill] sm:$0xff]  ;;  %s2615_s13 = sld [smem:[#allocation5 + $0x1]] }
 0x21a   :  { %786 = vrot.lane.b32.xlu1 %v781_v24, %s2708_s23  ;;  %v924_v54 = vadd.f32 %v4924_v50, %v910_v38  ;;  %v1979_v46 = vsel %vm245_vm10, %v4910_v28, %v1977_v10  ;;  %v964_v32 = vsel %vm264_vm11, %v4918_v1, %v962_v30  ;;  %v1006_v19 = vrot.slane %v3963_v33, 2  ;;  %v4928_v15 = vld [vmem:[#allocation30_spill] sm:$0xff] }
 0x21b   :  { %v989_v6 = vadd.f32 %v985_v42, %v967_v57  ;;  %v1178_v38 = vsel %vm321_vm14, %v4919_v27, %v1176_v62  ;;  %v1705_v52 = vrot.slane %v4925_v61, 2  ;;  %v1029_v35 = vsel %vm321_vm14, %v4012_v58, %v1027_v29 }
 0x21c   :  { %v946_v3 = vadd.f32 %v942_v21, %v924_v54  ;;  %v1177_v28 = vrot.slane %v4926_v7, 2  ;;  %v986_v10 = vsel %vm283_vm12, %v4922_v40, %v984_v53  ;;  %v1028_v47 = vrot.slane %v4152_v48, 2 }
 0x21d   :  { %784 = vrot.lane.b32.xlu0 %v780_v34, %s2708_s23  ;;  %v1011_v20 = vadd.f32 %v1007_v56, %v989_v6  ;;  %v1161_v45 = vsel %vm302_vm13, %v4921_v60, %v1159_v22  ;;  %v1194_v8 = vrot.slane %v4927_v2, 2  ;;  %v1051_v1 = vsel %vm340_vm15, %v4129_v9, %v1049_v0  ;;  %v4252_v30 = vpop.permute.xlu0 %2101  ;;  %v1066_v62 = vpop.permute.xlu1 %1065  ;;  %v4929_v22 = vld [vmem:[#allocation31_spill] sm:$0xff]  ;;  %v4931_v56 = vld [vmem:[#allocation37_spill] sm:$0xff] }
 0x21e   :  { %v968_v11 = vadd.f32 %v964_v32, %v946_v3  ;;  %v1182_v58 = vadd.f32 %v1178_v38, %v4124_v14  ;;  %v1008_v24 = vsel %vm302_vm13, %v3963_v33, %v1006_v19  ;;  %v1707_v42 = vsel %vm264_vm11, %v4925_v61, %v1705_v52  ;;  %v4930_v33 = vld [vmem:[#allocation35_spill] sm:$0xff]  ;;  %v4932_v0 = vld [vmem:[#allocation45_spill] sm:$0xff] }
 0x21f   :  { %v1033_v27 = vadd.f32 %v1029_v35, %v1011_v20  ;;  %v1449_v29 = vrot.slane %v4928_v15, 2  ;;  %v1067_v60 = vrot.slane %v1066_v62, 6  ;;  %v1978_v21 = vrot.slane %v4929_v22, 2  ;;  %v4933_v61 = vld [vmem:[#allocation69_spill] sm:$0xff] }
 0x220   :  { %v990_v17 = vadd.f32 %v986_v10, %v968_v11  ;;  %v1179_v9 = vsel %vm321_vm14, %v4926_v7, %v1177_v28  ;;  %v1030_v14 = vsel %vm321_vm14, %v4152_v48, %v1028_v47  ;;  %v1995_v40 = vrot.slane %v4930_v33, 2  ;;  %v4934_v3 = vld [vmem:[#allocation57_spill] sm:$0xff] }
 0x221   :  { %v1055_v57 = vadd.f32 %v1051_v1, %v1033_v27  ;;  %v1196_v53 = vsel %vm340_vm15, %v4927_v2, %v1194_v8  ;;  %v1069_v50 = vsel %vm1068_vm1, %v1067_v60, %v1066_v62  ;;  %v1048_v54 = vpop.permute.xlu0 %1047  ;;  %v1723_v34 = vrot.slane %v4931_v56, 2  ;;  %v4270_v38 = vpop.permute.xlu1 %1336 }
 0x222   :  { %v1012_v25 = vadd.f32 %v1008_v24, %v990_v17  ;;  %v1195_v32 = vrot.slane %v4932_v0, 2  ;;  %v1050_v19 = vrot.slane %v1048_v54, 2  ;;  %v1983_v52 = vadd.f32 %v1979_v46, %v4933_v61  ;;  %v4935_v46 = vld [vmem:[#allocation80_spill] sm:$0xff] }
 0x223   :  { %v1071_v6 = vmul.f32 %v1069_v50, %v1055_v57  ;;  %v1165_v48 = vadd.f32 %v1161_v45, %v4082_v16  ;;  %v1230_v35 = vrot.slane %v4934_v3, 2  ;;  %v1711_v28 = vadd.f32 %v1707_v42, %v4132_v51  ;;  %v4937_v42 = vld [vmem:[#allocation40_spill] sm:$0xff]  ;;  %v4939_v57 = vld [vmem:[#allocation75_spill] sm:$0xff] }
 0x224   :  { %v1034_v7 = vadd.f32 %v1030_v14, %v1012_v25  ;;  %v1451_v10 = vsel %vm302_vm13, %v4928_v15, %v1449_v29  ;;  %v1200_v20 = vadd.f32 %v1196_v53, %v1182_v58  ;;  %v1052_v47 = vsel %vm340_vm15, %v1048_v54, %v1050_v19  ;;  %v4936_v58 = vld [vmem:[#allocation39_spill] sm:$0xff]  ;;  %v4943_v19 = vld [vmem:[#allocation101_spill] sm:$0xff] }
 0x225   :  { %1075 = vrot.lane.b32.xlu0 %v1071_v6, %s2709_s25  ;;  %v1980_v2 = vsel %vm245_vm10, %v4929_v22, %v1978_v21  ;;  %v1183_v8 = vadd.f32 %v1179_v9, %v1165_v48  ;;  %v1252_v11 = vrot.slane %v4935_v46, 2  ;;  %v4282_v45 = vpop.permute.xlu0 %1316  ;;  %v1997_v51 = vsel %vm264_vm11, %v4930_v33, %v1995_v40  ;;  %v4291_v62 = vpop.permute.xlu1 %1605  ;;  %v4938_v21 = vld [vmem:[#allocation42_spill] sm:$0xff]  ;;  %v4942_v25 = vld [vmem:[#allocation71_spill] sm:$0xff] }
 0x226   :  { %v1056_v16 = vadd.f32 %v1052_v47, %v1034_v7  ;;  %v1725_v1 = vsel %vm283_vm12, %v4931_v56, %v1723_v34  ;;  %v1996_v24 = vrot.slane %v4936_v58, 2  ;;  %v1197_v27 = vsel %vm340_vm15, %v4932_v0, %v1195_v32  ;;  %v4941_v40 = vld [vmem:[#allocation66_spill] sm:$0xff] }
 0x227   :  { %v1467_v15 = vrot.slane %v4937_v42, 2  ;;  %v1232_v29 = vsel %vm245_vm10, %v4934_v3, %v1230_v35  ;;  %v1274_v17 = vrot.slane %v3905_v37, 2  ;;  %v1455_v22 = vadd.f32 %v1451_v10, %v4208_v59 }
 0x228   :  { %v1072_v60 = vmul.f32 %v1069_v50, %v1056_v16  ;;  %v1741_v9 = vrot.slane %v4938_v21, 2  ;;  %v4940_v14 = vrot.slane %v4939_v57, 9  ;;  %v1231_v53 = vrot.slane %v4941_v40, 2 }
 0x229   :  { %v1984_v54 = vadd.f32 %v1980_v2, %v4942_v25  ;;  %v1201_v56 = vadd.f32 %v1197_v27, %v1183_v8  ;;  %v1254_v34 = vsel %vm264_vm11, %v4935_v46, %v1252_v11  ;;  %v1296_v0 = vrot.slane %v4034_v63, 2  ;;  %v4306_v32 = vpop.permute.xlu0 %1585  ;;  %v4309_v48 = vpop.permute.xlu1 %1874  ;;  %v4944_v2 = vld [vmem:[#allocation47_spill] sm:$0xff]  ;;  %v4945_v46 = vld [vmem:[#allocation76_spill] sm:$0xff] }
 0x22a   :  { %v1214_v33 = vadd.f32 %v4940_v14, %v1200_v20  ;;  %1077 = vrot.lane.b32.xlu1 %v1072_v60, %s2709_s25  ;;  %v2001_v50 = vadd.f32 %v1997_v51, %v1983_v52  ;;  %v1729_v59 = vadd.f32 %v1725_v1, %v1711_v28  ;;  %v1253_v61 = vrot.slane %v4943_v19, 2  ;;  %v4948_v60 = vld [vmem:[#allocation44_spill] sm:$0xff] }
 0x22b   :  { %v1998_v3 = vsel %vm264_vm11, %v4936_v58, %v1996_v24  ;;  %v1469_v35 = vsel %vm321_vm14, %v4937_v42, %v1467_v15  ;;  %v1276_v7 = vsel %vm283_vm12, %v3905_v37, %v1274_v17  ;;  %v1318_v10 = vrot.slane %v4158_v41, 2  ;;  %v4947_v58 = vld [vmem:[#allocation43_spill] sm:$0xff] }
 0x22c   :  { %v1236_v6 = vadd.f32 %v1232_v29, %v1214_v33  ;;  %v1743_v52 = vsel %vm302_vm13, %v4938_v21, %v1741_v9  ;;  %v1233_v28 = vsel %vm245_vm10, %v4941_v40, %v1231_v53  ;;  %v1275_v47 = vrot.slane %v3994_v36, 2 }
 0x22d   :  { %v1485_v8 = vrot.slane %v4944_v2, 2  ;;  %v4946_v11 = vrot.slane %v4945_v46, 9  ;;  %v1298_v51 = vsel %vm302_vm13, %v4034_v63, %v1296_v0  ;;  %v1340_v37 = vrot.slane %v4270_v38, 2  ;;  %v4329_v1 = vpop.permute.xlu0 %1854  ;;  %v4335_v29 = vpop.permute.xlu1 %2143 }
 0x22e   :  { %v1258_v20 = vadd.f32 %v1254_v34, %v1236_v6  ;;  %v2013_v24 = vrot.slane %v4947_v58, 2  ;;  %v1255_v27 = vsel %vm264_vm11, %v4943_v19, %v1253_v61  ;;  %v1297_v15 = vrot.slane %v4177_v4, 2  ;;  %v4949_v6 = vld [vmem:[#allocation79_spill] sm:$0xff] }
 0x22f   :  { %v1215_v16 = vadd.f32 %v4946_v11, %v1201_v56  ;;  %v2002_v17 = vadd.f32 %v1998_v3, %v1984_v54  ;;  %v2014_v21 = vrot.slane %v4948_v60, 2  ;;  %v1320_v63 = vsel %vm321_vm14, %v4158_v41, %v1318_v10  ;;  %v4952_v11 = vld [vmem:[#allocation59_spill] sm:$0xff] }
 0x230   :  { %v1280_v42 = vadd.f32 %v1276_v7, %v1258_v20  ;;  %v1473_v57 = vadd.f32 %v1469_v35, %v1455_v22  ;;  %v1277_v14 = vsel %vm283_vm12, %v3994_v36, %v1275_v47  ;;  %v1319_v40 = vrot.slane %v4282_v45, 2  ;;  %v4950_v35 = vld [vmem:[#allocation46_spill] sm:$0xff] }
 0x231   :  { %v1237_v9 = vadd.f32 %v1233_v28, %v1215_v16  ;;  %v1747_v53 = vadd.f32 %v1743_v52, %v1729_v59  ;;  %v1487_v25 = vsel %vm340_vm15, %v4944_v2, %v1485_v8  ;;  %v1342_v54 = vsel %vm340_vm15, %v4270_v38, %v1340_v37  ;;  %v4347_v34 = vpop.permute.xlu0 %2123  ;;  %v1357_v0 = vpop.permute.xlu1 %1356  ;;  %v4951_v8 = vld [vmem:[#allocation51_spill] sm:$0xff] }
 0x232   :  { %v1302_v33 = vadd.f32 %v1298_v51, %v1280_v42  ;;  %v2015_v41 = vsel %vm283_vm12, %v4947_v58, %v2013_v24  ;;  %v1299_v36 = vsel %vm302_vm13, %v4177_v4, %v1297_v15  ;;  %v2016_v59 = vsel %vm283_vm12, %v4948_v60, %v2014_v21  ;;  %v4953_v15 = vld [vmem:[#allocation78_spill] sm:$0xff] }
 0x233   :  { %v1259_v56 = vadd.f32 %v1255_v27, %v1237_v9  ;;  %v1521_v19 = vrot.slane %v4949_v6, 2  ;;  %v1358_v3 = vrot.slane %v1357_v0, 6  ;;  %v1759_v38 = vrot.slane %v4950_v35, 2  ;;  %v4955_v9 = vld [vmem:[#allocation84_spill] sm:$0xff] }
 0x234   :  { %v1324_v22 = vadd.f32 %v1320_v63, %v1302_v33  ;;  %v1491_v7 = vadd.f32 %v1487_v25, %v1473_v57  ;;  %v1321_v52 = vsel %vm321_vm14, %v4282_v45, %v1319_v40  ;;  %v2019_v28 = vadd.f32 %v2015_v41, %v2001_v50 }
 0x235   :  { %v1281_v61 = vadd.f32 %v1277_v14, %v1259_v56  ;;  %v1543_v20 = vrot.slane %v3930_v13, 2  ;;  %v1360_v47 = vsel %vm1359_vm2, %v1358_v3, %v1357_v0  ;;  %v1339_v2 = vpop.permute.xlu0 %1338  ;;  %v2031_v46 = vrot.slane %v4951_v8, 2  ;;  %v1628_v58 = vpop.permute.xlu1 %1627  ;;  %v4956_v14 = vld [vmem:[#allocation62_spill] sm:$0xff] }
 0x236   :  { %v1346_v10 = vadd.f32 %v1342_v54, %v1324_v22  ;;  %v2032_v16 = vrot.slane %v4952_v11, 2  ;;  %v1341_v37 = vrot.slane %v1339_v2, 2  ;;  %v2020_v24 = vadd.f32 %v2016_v59, %v2002_v17 }
 0x237   :  { %v1303_v4 = vadd.f32 %v1299_v36, %v1281_v61  ;;  %v1523_v27 = vsel %vm245_vm10, %v4949_v6, %v1521_v19  ;;  %v1565_v42 = vrot.slane %v4064_v55, 2  ;;  %v1761_v50 = vsel %vm321_vm14, %v4950_v35, %v1759_v38  ;;  %v4957_v36 = vld [vmem:[#allocation82_spill] sm:$0xff]  ;;  %v4958_v6 = vld [vmem:[#allocation97_spill] sm:$0xff] }
 0x238   :  { %v1362_v51 = vmul.f32 %v1360_v47, %v1346_v10  ;;  %v4954_v60 = vrot.slane %v4953_v15, 9  ;;  %v1777_v63 = vrot.slane %v4955_v9, 2  ;;  %v1343_v57 = vsel %vm340_vm15, %v1339_v2, %v1341_v37 }
 0x239   :  { %v1325_v45 = vadd.f32 %v1321_v52, %v1303_v4  ;;  %v2049_v17 = vrot.slane %v4956_v14, 2  ;;  %v1545_v33 = vsel %vm264_vm11, %v3930_v13, %v1543_v20  ;;  %v1587_v40 = vrot.slane %v4182_v12, 2  ;;  %v1608_v56 = vpop.permute.xlu0 %1607  ;;  %v4380_v59 = vpop.permute.xlu1 %1896 }
 0x23a   :  { %v1505_v21 = vadd.f32 %v4954_v60, %v1491_v7  ;;  %1366 = vrot.lane.b32.xlu0 %v1362_v51, %s2710_s29  ;;  %v2033_v54 = vsel %vm302_vm13, %v4951_v8, %v2031_v46  ;;  %v2034_v41 = vsel %vm302_vm13, %v4952_v11, %v2032_v16  ;;  %v2050_v0 = vrot.slane %v4957_v36, 2 }
 0x23b   :  { %v1347_v25 = vadd.f32 %v1343_v57, %v1325_v45  ;;  %v2067_v19 = vrot.slane %v4958_v6, 2  ;;  %v1567_v13 = vsel %vm283_vm12, %v4064_v55, %v1565_v42  ;;  %v1609_v61 = vrot.slane %v4291_v62, 2 }
 0x23c   :  { %v1527_v22 = vadd.f32 %v1523_v27, %v1505_v21  ;;  %v1765_v35 = vadd.f32 %v1761_v50, %v1747_v53  ;;  %v1779_v38 = vsel %vm340_vm15, %v4955_v9, %v1777_v63  ;;  %v1566_v10 = vrot.slane %v4205_v26, 2  ;;  %v4959_v50 = vld [vmem:[#allocation102_spill] sm:$0xff] }
 0x23d   :  { %v1363_v3 = vmul.f32 %v1360_v47, %v1347_v25  ;;  %v2051_v52 = vsel %vm321_vm14, %v4956_v14, %v2049_v17  ;;  %v2068_v20 = vrot.slane %v3955_v18, 2  ;;  %v1589_v4 = vsel %vm302_vm13, %v4182_v12, %v1587_v40  ;;  %v4394_v55 = vpop.permute.xlu0 %1876  ;;  %v4397_v11 = vpop.permute.xlu1 %2165  ;;  %v4960_v17 = vld [vmem:[#allocation85_spill] sm:$0xff] }
 0x23e   :  { %v1549_v7 = vadd.f32 %v1545_v33, %v1527_v22  ;;  %v1631_v2 = vrot.slane %v1628_v58, 2  ;;  %v2037_v47 = vadd.f32 %v2033_v54, %v2019_v28  ;;  %v2038_v53 = vadd.f32 %v2034_v41, %v2020_v24 }
 0x23f   :  { %1368 = vrot.lane.b32.xlu1 %v1363_v3, %s2710_s29  ;;  %v1588_v46 = vrot.slane %v4306_v32, 2  ;;  %v2052_v16 = vsel %vm321_vm14, %v4957_v36, %v2050_v0  ;;  %v1783_v51 = vadd.f32 %v1779_v38, %v1765_v35  ;;  %v2069_v37 = vsel %vm340_vm15, %v4958_v6, %v2067_v19 }
 0x240   :  { %v1571_v8 = vadd.f32 %v1567_v13, %v1549_v7  ;;  %v1611_v12 = vsel %vm321_vm14, %v4291_v62, %v1609_v61  ;;  %v2055_v27 = vadd.f32 %v2051_v52, %v2037_v47  ;;  %v1568_v28 = vsel %vm283_vm12, %v4205_v26, %v1566_v10  ;;  %v4962_v13 = vld [vmem:[#allocation88_spill] sm:$0xff] }
 0x241   :  { %v1610_v24 = vrot.slane %v1608_v56, 2  ;;  %v2070_v45 = vsel %vm340_vm15, %v3955_v18, %v2068_v20  ;;  %v2596_v15 = vrot.slane %v4959_v50, 9  ;;  %v1633_v60 = vsel %vm340_vm15, %v1628_v58, %v1631_v2  ;;  %v4411_v21 = vpop.permute.xlu0 %2145  ;;  %v1648_v14 = vpop.permute.xlu1 %1647 }
 0x242   :  { %v1593_v42 = vadd.f32 %v1589_v4, %v1571_v8  ;;  %v2056_v9 = vadd.f32 %v2052_v16, %v2038_v53  ;;  %v2073_v63 = vadd.f32 %v2069_v37, %v2055_v27  ;;  %v1590_v62 = vsel %vm302_vm13, %v4306_v32, %v1588_v46 }
 0x243   :  { %v4961_v26 = vrot.slane %v4960_v17, 9  ;;  %v1572_v40 = vadd.f32 %v1568_v28, %v4042_v23  ;;  %v1856_v18 = vrot.slane %v4211_v39, 2  ;;  %v1649_v25 = vrot.slane %v1648_v14, 6 }
 0x244   :  { %v1615_v57 = vadd.f32 %v1611_v12, %v1593_v42  ;;  %v2074_v54 = vadd.f32 %v2070_v45, %v2056_v9  ;;  %v1813_v58 = vrot.slane %v4044_v49, 2  ;;  %v1612_v22 = vsel %vm321_vm14, %v1608_v56, %v1610_v24 }
 0x245   :  { %v1797_v33 = vadd.f32 %v4961_v26, %v1783_v51  ;;  %v2103_v36 = vrot.slane %v4068_v31, 2  ;;  %v1594_v0 = vadd.f32 %v1590_v62, %v1572_v40  ;;  %v1878_v32 = vrot.slane %v4309_v48, 2  ;;  %v1630_v19 = vpop.permute.xlu0 %1629  ;;  %v1919_v7 = vpop.permute.xlu1 %1918 }
 0x246   :  { %v1637_v41 = vadd.f32 %v1633_v60, %v1615_v57  ;;  %v1651_v6 = vsel %vm1650_vm3, %v1649_v25, %v1648_v14  ;;  %v4963_v61 = vrot.slane %v4962_v13, 9  ;;  %v1835_v3 = vrot.slane %v4229_v43, 2 }
 0x247   :  { %v1632_v38 = vrot.slane %v1630_v19, 2  ;;  %v1858_v56 = vsel %vm283_vm12, %v4211_v39, %v1856_v18  ;;  %v2125_v10 = vrot.slane %v4236_v5, 2  ;;  %v1616_v52 = vadd.f32 %v1612_v22, %v1594_v0 }
 0x248   :  { %v2087_v23 = vadd.f32 %v4963_v61, %v2073_v63  ;;  %v1653_v35 = vmul.f32 %v1651_v6, %v1637_v41  ;;  %v1900_v20 = vrot.slane %v4380_v59, 2  ;;  %v1815_v4 = vsel %vm245_vm10, %v4044_v49, %v1813_v58 }
 0x249   :  { %v2088_v2 = vadd.f32 %v2596_v15, %v2074_v54  ;;  %v1857_v47 = vrot.slane %v4329_v1, 2  ;;  %v1634_v53 = vsel %vm340_vm15, %v1630_v19, %v1632_v38  ;;  %v2105_v8 = vsel %vm245_vm10, %v4068_v31, %v2103_v36  ;;  %v1899_v51 = vpop.permute.xlu0 %1898  ;;  %v2188_v42 = vpop.permute.xlu1 %2187 }
 0x24a   :  { %1657 = vrot.lane.b32.xlu0 %v1653_v35, %s2711_s26  ;;  %v1880_v39 = vsel %vm302_vm13, %v4309_v48, %v1878_v32  ;;  %v1638_v46 = vadd.f32 %v1634_v53, %v1616_v52  ;;  %v1922_v16 = vrot.slane %v1919_v7, 2  ;;  %v1862_v37 = vadd.f32 %v1858_v56, %v4122_v44 }
 0x24b   :  { %v1837_v49 = vsel %vm264_vm11, %v4229_v43, %v1835_v3  ;;  %v2147_v12 = vrot.slane %v4335_v29, 2  ;;  %v1879_v27 = vrot.slane %v4394_v55, 2  ;;  %v1819_v28 = vadd.f32 %v1815_v4, %v1797_v33 }
 0x24c   :  { %v2127_v31 = vsel %vm264_vm11, %v4236_v5, %v2125_v10  ;;  %v1902_v48 = vsel %vm321_vm14, %v4380_v59, %v1900_v20  ;;  %v1654_v24 = vmul.f32 %v1651_v6, %v1638_v46  ;;  %v2104_v45 = vrot.slane %v4252_v30, 2 }
 0x24d   :  { %v1884_v50 = vadd.f32 %v1880_v39, %v1862_v37  ;;  %v1859_v44 = vsel %vm283_vm12, %v4329_v1, %v1857_v47  ;;  %v1901_v43 = vrot.slane %v1899_v51, 2  ;;  %v2109_v15 = vadd.f32 %v2105_v8, %v2087_v23  ;;  %v2168_v57 = vpop.permute.xlu0 %2167  ;;  %v1939_v17 = vpop.permute.xlu1 %1938 }
 0x24e   :  { %v1841_v60 = vadd.f32 %v1837_v49, %v1819_v28  ;;  %v2169_v9 = vrot.slane %v4397_v11, 2  ;;  %v1924_v63 = vsel %vm340_vm15, %v1919_v7, %v1922_v16  ;;  %1659 = vrot.lane.b32.xlu1 %v1654_v24, %s2711_s26  ;;  %v2149_v5 = vsel %vm283_vm12, %v4335_v29, %v2147_v12 }
 0x24f   :  { %v2126_v59 = vrot.slane %v4347_v34, 2  ;;  %v1906_v62 = vadd.f32 %v1902_v48, %v1884_v50  ;;  %v1881_v14 = vsel %vm302_vm13, %v4394_v55, %v1879_v27  ;;  %v2131_v1 = vadd.f32 %v2127_v31, %v2109_v15 }
 0x250   :  { %v1863_v26 = vadd.f32 %v1859_v44, %v1841_v60  ;;  %v2191_v33 = vrot.slane %v2188_v42, 2  ;;  %v1940_v40 = vrot.slane %v1939_v17, 6  ;;  %v2106_v18 = vsel %vm245_vm10, %v4252_v30, %v2104_v45 }
 0x251   :  { %v2148_v25 = vrot.slane %v4411_v21, 2  ;;  %v1928_v54 = vadd.f32 %v1924_v63, %v1906_v62  ;;  %v1903_v58 = vsel %vm321_vm14, %v1899_v51, %v1901_v43  ;;  %v2153_v29 = vadd.f32 %v2149_v5, %v2131_v1  ;;  %v1921_v36 = vpop.permute.xlu0 %1920  ;;  %v2210_v30 = vpop.permute.xlu1 %2209 }
 0x252   :  { %v1885_v41 = vadd.f32 %v1881_v14, %v1863_v26  ;;  %v2171_v22 = vsel %vm302_vm13, %v4397_v11, %v2169_v9  ;;  %v1942_v55 = vsel %vm1941_vm4, %v1940_v40, %v1939_v17  ;;  %v2128_v0 = vsel %vm264_vm11, %v4347_v34, %v2126_v59 }
 0x253   :  { %v2170_v32 = vrot.slane %v2168_v57, 2  ;;  %v1944_v6 = vmul.f32 %v1942_v55, %v1928_v54  ;;  %v1923_v19 = vrot.slane %v1921_v36, 2  ;;  %v2110_v13 = vadd.f32 %v2106_v18, %v2088_v2  ;;  %v2660_v54 = vld [vmem:[#allocation2] sm:$0x3f] }
 0x254   :  { %v1907_v61 = vadd.f32 %v1903_v58, %v1885_v41  ;;  %v2193_v23 = vsel %vm321_vm14, %v2188_v42, %v2191_v33  ;;  %v2213_v3 = vrot.slane %v2210_v30, 2  ;;  %v2175_v35 = vadd.f32 %v2171_v22, %v2153_v29 }
 0x255   :  { %v2150_v38 = vsel %vm283_vm12, %v4411_v21, %v2148_v25  ;;  %v1925_v11 = vsel %vm340_vm15, %v1921_v36, %v1923_v19  ;;  %1948 = vrot.lane.b32.xlu0 %v1944_v6, %s2712_s30  ;;  %v2132_v7 = vadd.f32 %v2128_v0, %v2110_v13  ;;  %v2190_v10 = vpop.permute.xlu0 %2189  ;;  %v2172_v20 = vsel %vm302_vm13, %v2168_v57, %v2170_v32  ;;  %v2230_v2 = vpop.permute.xlu1 %2229 }
 0x256   :  { %v1929_v56 = vadd.f32 %v1925_v11, %v1907_v61  ;;  %v2215_v34 = vsel %vm340_vm15, %v2210_v30, %v2213_v3  ;;  %v2197_v52 = vadd.f32 %v2193_v23, %v2175_v35  ;;  %v2192_v4 = vrot.slane %v2190_v10, 2  ;;  %v2661_v61 = vld [vmem:[#allocation2 + $0x6] sm:$0x3f] }
 0x257   :  { %v2154_v47 = vadd.f32 %v2150_v38, %v2132_v7  ;;  %v2231_v8 = vrot.slane %v2230_v2, 6  ;;  %v228_v26 = vstv %s227_s1 }
 0x258   :  { %v1945_v53 = vmul.f32 %v1942_v55, %v1929_v56  ;;  %v2219_v39 = vadd.f32 %v2215_v34, %v2197_v52  ;;  %v2194_v21 = vsel %vm321_vm14, %v2190_v10, %v2192_v4  ;;  %v229_v58 = vmul.f32 %v2660_v54, %v228_v26 }
 0x259   :  { %v2176_v46 = vadd.f32 %v2172_v20, %v2154_v47  ;;  %v2233_v16 = vsel %vm2232_vm5, %v2231_v8, %v2230_v2  ;;  %v2212_v51 = vpop.permute.xlu0 %2211  ;;  %v242_v48 = vpop.permute.xlu1 %241  ;;  %v230_v23 = vmul.f32 %v2661_v61, %v228_v26  ;;  %v348_v10 = vstv %s4484_s2 }
 0x25a   :  { %1950 = vrot.lane.b32.xlu1 %v1945_v53, %s2712_s30  ;;  %v2235_v37 = vmul.f32 %v2233_v16, %v2219_v39  ;;  %v2214_v49 = vrot.slane %v2212_v51, 2  ;;  %v244_v25 = vrot.slane %v242_v48, 2 }
 0x25b   :  { %v2198_v12 = vadd.f32 %v2194_v21, %v2176_v46 }
 0x25c   :  { %v2216_v27 = vsel %vm340_vm15, %v2212_v51, %v2214_v49  ;;  %2239 = vrot.lane.b32.xlu0 %v2235_v37, %s2713_s8  ;;  %v247_v19 = vsel %vm245_vm10, %v242_v48, %v244_v25 }
 0x25d   :  { %v2220_v42 = vadd.f32 %v2216_v27, %v2198_v12  ;;  %v240_v31 = vpop.permute.xlu0 %239  ;;  %v261_v45 = vpop.permute.xlu1 %260  ;;  %v251_v56 = vadd.f32 %v247_v19, %v230_v23 }
 0x25e   :  { %v243_v14 = vrot.slane %v240_v31, 2  ;;  %v263_v36 = vrot.slane %v261_v45, 2 }
 0x25f   :  { %v2236_v28 = vmul.f32 %v2233_v16, %v2220_v42  ;;  %v349_v16 = vmul.f32 %v2660_v54, %v348_v10 }
 0x260   :  { %v246_v40 = vsel %vm245_vm10, %v240_v31, %v243_v14  ;;  %v266_v38 = vsel %vm264_vm11, %v261_v45, %v263_v36  ;;  %v350_v45 = vmul.f32 %v2661_v61, %v348_v10 }
 0x261   :  { %2241 = vrot.lane.b32.xlu1 %v2236_v28, %s2713_s8  ;;  %v259_v24 = vpop.permute.xlu0 %258  ;;  %v280_v44 = vpop.permute.xlu1 %279  ;;  %v250_v55 = vadd.f32 %v246_v40, %v229_v58  ;;  %v270_v53 = vadd.f32 %v266_v38, %v251_v56  ;;  %v2427_v31 = vrot.slane %v349_v16, 9 }
 0x262   :  { %v262_v33 = vrot.slane %v259_v24, 2  ;;  %v282_v13 = vrot.slane %v280_v44, 2 }
 0x264   :  { %v265_v29 = vsel %vm264_vm11, %v259_v24, %v262_v33  ;;  %v285_v20 = vsel %vm283_vm12, %v280_v44, %v282_v13 }
 0x265   :  { %v278_v50 = vpop.permute.xlu0 %277  ;;  %v299_v15 = vpop.permute.xlu1 %298  ;;  %v269_v30 = vadd.f32 %v265_v29, %v250_v55  ;;  %v289_v51 = vadd.f32 %v285_v20, %v270_v53 }
 0x266   :  { %v281_v18 = vrot.slane %v278_v50, 2  ;;  %v301_v7 = vrot.slane %v299_v15, 2 }
 0x268   :  { %v284_v32 = vsel %vm283_vm12, %v278_v50, %v281_v18  ;;  %v304_v39 = vsel %vm302_vm13, %v299_v15, %v301_v7 }
 0x269   :  { %v297_v43 = vpop.permute.xlu0 %296  ;;  %v318_v9 = vpop.permute.xlu1 %317  ;;  %v288_v11 = vadd.f32 %v284_v32, %v269_v30  ;;  %v308_v12 = vadd.f32 %v304_v39, %v289_v51 }
 0x26a   :  { %v300_v41 = vrot.slane %v297_v43, 2  ;;  %v320_v2 = vrot.slane %v318_v9, 2 }
 0x26c   :  { %v303_v3 = vsel %vm302_vm13, %v297_v43, %v300_v41  ;;  %v323_v37 = vsel %vm321_vm14, %v318_v9, %v320_v2 }
 0x26d   :  { %v316_v60 = vpop.permute.xlu0 %315  ;;  %v337_v57 = vpop.permute.xlu1 %336  ;;  %v307_v4 = vadd.f32 %v303_v3, %v288_v11  ;;  %v327_v24 = vadd.f32 %v323_v37, %v308_v12 }
 0x26e   :  { %v319_v6 = vrot.slane %v316_v60, 2  ;;  %v339_v46 = vrot.slane %v337_v57, 2 }
 0x270   :  { %v322_v34 = vsel %vm321_vm14, %v316_v60, %v319_v6  ;;  %v342_v28 = vsel %vm340_vm15, %v337_v57, %v339_v46 }
 0x271   :  { %v335_v63 = vpop.permute.xlu0 %334  ;;  %v326_v21 = vadd.f32 %v322_v34, %v307_v4  ;;  %v346_v43 = vadd.f32 %v342_v28, %v327_v24 }
 0x272   :  { %v4475_v59 = vpop.permute.xlu1 %373  ;;  %v338_v35 = vrot.slane %v335_v63, 2 }
 0x273   :  { %v376_v9 = vrot.slane %v4475_v59, 2 }
 0x274   :  { %v341_v8 = vsel %vm340_vm15, %v335_v63, %v338_v35  ;;  %v2428_v63 = vrot.slane %v350_v45, 9 }
 0x275   :  { %v372_v5 = vpop.permute.xlu0 %371  ;;  %v345_v49 = vadd.f32 %v341_v8, %v326_v21 }
 0x276   :  { %v4479_v17 = vpop.permute.xlu1 %395  ;;  %v375_v27 = vrot.slane %v372_v5, 2  ;;  %v360_v25 = vadd.f32 %v2428_v63, %v346_v43 }
 0x277   :  { %v359_v44 = vadd.f32 %v2427_v31, %v345_v49  ;;  %v398_v40 = vrot.slane %v4479_v17, 2 }
 0x278   :  { %v377_v15 = vsel %vm245_vm10, %v372_v5, %v375_v27  ;;  %v378_v5 = vsel %vm245_vm10, %v4475_v59, %v376_v9  ;;  %vm1954_vm10 = vcmask 1006592  }
 0x279   :  { %v381_v33 = vadd.f32 %v377_v15, %v359_v44  ;;  %v400_v36 = vsel %vm264_vm11, %v4479_v17, %v398_v40  ;;  %v382_v30 = vadd.f32 %v378_v5, %v360_v25 }
 0x27a   :  { %v4477_v62 = vpop.permute.xlu0 %393 }
 0x27b   :  { %v4487_v22 = vpop.permute.xlu1 %417  ;;  %v397_v50 = vrot.slane %v4477_v62, 2  ;;  %v404_v3 = vadd.f32 %v400_v36, %v382_v30 }
 0x27c   :  { %v420_v41 = vrot.slane %v4487_v22, 2 }
 0x27d   :  { %v399_v14 = vsel %vm264_vm11, %v4477_v62, %v397_v50  ;;  %vm2245_vm11 = vcmask 998400  }
 0x27e   :  { %v403_v29 = vadd.f32 %v399_v14, %v381_v33  ;;  %v422_v61 = vsel %vm283_vm12, %v4487_v22, %v420_v41  ;;  %v4964_v22 = vld [vmem:[#allocation34_spill] sm:$0xff] }
 0x27f   :  { %v4481_v1 = vpop.permute.xlu0 %415  ;;  %v426_v56 = vadd.f32 %v422_v61, %v404_v3 }
 0x280   :  { %v440_v52 = vpop.permute.xlu1 %439  ;;  %v419_v60 = vrot.slane %v4481_v1, 2 }
 0x281   :  { %v442_v6 = vrot.slane %v440_v52, 2 }
 0x282   :  { %v421_v54 = vsel %vm283_vm12, %v4481_v1, %v419_v60  ;;  %vm2274_vm12 = vcmask 1040384  }
 0x283   :  { %v438_v0 = vpop.permute.xlu0 %437  ;;  %v425_v32 = vadd.f32 %v421_v54, %v403_v29  ;;  %v444_v17 = vsel %vm302_vm13, %v440_v52, %v442_v6  ;;  %v4965_v29 = vld [vmem:[#allocation9_spill] sm:$0xff] }
 0x284   :  { %v462_v42 = vpop.permute.xlu1 %461  ;;  %v441_v26 = vrot.slane %v438_v0, 2  ;;  %v448_v2 = vadd.f32 %v444_v17, %v426_v56  ;;  %v4535_v41 = vsub.s32 0, %v4965_v29  ;;  %v4539_v36 = vsub.s32 2, %v4965_v29 }
 0x285   :  { %v464_v23 = vrot.slane %v462_v42, 2  ;;  %v2347_v29 = vstv %s2615_s13 }
 0x286   :  { %v443_v55 = vsel %vm302_vm13, %v438_v0, %v441_v26  ;;  %v220_v0 = vld [vmem:[%s4583_s3] sm:$0x3] }
 0x287   :  { %v460_v47 = vpop.permute.xlu0 %459  ;;  %v447_v59 = vadd.f32 %v443_v55, %v425_v32  ;;  %v466_v10 = vsel %vm321_vm14, %v462_v42, %v464_v23  ;;  %v500_v4 = vrot.slane %v220_v0, %v4964_v22 }
 0x288   :  { %v484_v57 = vpop.permute.xlu1 %483  ;;  %v463_v58 = vrot.slane %v460_v47, 2  ;;  %v470_v39 = vadd.f32 %v466_v10, %v448_v2 }
 0x289   :  { %v486_v11 = vrot.slane %v484_v57, 2 }
 0x28a   :  { %v465_v13 = vsel %vm321_vm14, %v460_v47, %v463_v58 }
 0x28b   :  { %v482_v48 = vpop.permute.xlu0 %481  ;;  %v469_v38 = vadd.f32 %v465_v13, %v447_v59  ;;  %v488_v53 = vsel %vm340_vm15, %v484_v57, %v486_v11 }
 0x28c   :  { %v485_v62 = vrot.slane %v482_v48, 2  ;;  %v787_v1 = vpop.permute.xlu1 %786  ;;  %v492_v16 = vadd.f32 %v488_v53, %v470_v39 }
 0x28d   :  { %v789_v49 = vrot.slane %v787_v1, 2 }
 0x28e   :  { %v487_v35 = vsel %vm340_vm15, %v482_v48, %v485_v62  ;;  %v503_v24 = vmul.f32 %v500_v4, %v492_v16 }
 0x28f   :  { %v785_v18 = vpop.permute.xlu0 %784  ;;  %v491_v20 = vadd.f32 %v487_v35, %v469_v38  ;;  %v792_v44 = vsel %vm790_vm6, %v787_v1, %v789_v49 }
 0x290   :  { %v788_v47 = vrot.slane %v785_v18, 2  ;;  %v796_v57 = vadd.f32 %v792_v44, %v503_v24 }
 0x291   :  { %v502_v52 = vmul.f32 %v500_v4, %v491_v20 }
 0x292   :  { %v791_v51 = vsel %vm790_vm6, %v785_v18, %v788_v47 }
 0x293   :  { %v795_v31 = vadd.f32 %v791_v51, %v502_v52 }
 0x297   :  { %v1076_v19 = vpop.permute.xlu0 %1075 }
 0x298   :  { %v1079_v21 = vrot.slane %v1076_v19, 2 }
 0x29a   :  { %v1082_v27 = vsel %vm1081_vm7, %v1076_v19, %v1079_v21 }
 0x29b   :  { %v1086_v43 = vadd.f32 %v1082_v27, %v795_v31 }
 0x29c   :  { %v1078_v34 = vpop.permute.xlu1 %1077 }
 0x29d   :  { %v1080_v48 = vrot.slane %v1078_v34, 2 }
 0x29f   :  { %v1083_v63 = vsel %vm1081_vm7, %v1078_v34, %v1080_v48 }
 0x2a0   :  { %v1087_v58 = vadd.f32 %v1083_v63, %v796_v57 }
 0x2ac   :  { %v1367_v7 = vpop.permute.xlu0 %1366 }
 0x2ad   :  { %v1370_v37 = vrot.slane %v1367_v7, 2 }
 0x2af   :  { %v1373_v45 = vsel %vm1372_vm8, %v1367_v7, %v1370_v37 }
 0x2b0   :  { %v1377_v14 = vadd.f32 %v1373_v45, %v1086_v43 }
 0x2b1   :  { %v1369_v46 = vpop.permute.xlu1 %1368 }
 0x2b2   :  { %v1371_v15 = vrot.slane %v1369_v46, 2 }
 0x2b4   :  { %v1374_v40 = vsel %vm1372_vm8, %v1369_v46, %v1371_v15 }
 0x2b5   :  { %v1378_v32 = vadd.f32 %v1374_v40, %v1087_v58 }
 0x2bc   :  { %v1658_v8 = vpop.permute.xlu0 %1657 }
 0x2bd   :  { %v1661_v42 = vrot.slane %v1658_v8, 2 }
 0x2bf   :  { %v1664_v60 = vsel %vm1663_vm9, %v1658_v8, %v1661_v42 }
 0x2c0   :  { %v1660_v28 = vpop.permute.xlu1 %1659  ;;  %v1668_v18 = vadd.f32 %v1664_v60, %v1377_v14 }
 0x2c1   :  { %v1662_v26 = vrot.slane %v1660_v28, 2 }
 0x2c3   :  { %v1665_v55 = vsel %vm1663_vm9, %v1660_v28, %v1662_v26 }
 0x2c4   :  { %v1669_v13 = vadd.f32 %v1665_v55, %v1378_v32 }
 0x2c7   :  { %v1949_v12 = vpop.permute.xlu0 %1948 }
 0x2c8   :  { %v1952_v50 = vrot.slane %v1949_v12, 2 }
 0x2ca   :  { %v1955_v33 = vsel %vm1954_vm10, %v1949_v12, %v1952_v50 }
 0x2cb   :  { %v1959_v62 = vadd.f32 %v1955_v33, %v1668_v18 }
 0x2cc   :  { %v1951_v9 = vpop.permute.xlu1 %1950 }
 0x2cd   :  { %v1953_v25 = vrot.slane %v1951_v9, 2 }
 0x2ce   :  { %v2240_v54 = vpop.permute.xlu0 %2239 }
 0x2cf   :  { %v2243_v5 = vrot.slane %v2240_v54, 2  ;;  %v1956_v19 = vsel %vm1954_vm10, %v1951_v9, %v1953_v25 }
 0x2d0   :  { %v1960_v3 = vadd.f32 %v1956_v19, %v1669_v13 }
 0x2d1   :  { %v2246_v6 = vsel %vm2245_vm11, %v2240_v54, %v2243_v5  ;;  %v2343_v54 = vstv %s2342_s12 }
 0x2d2   :  { %v2250_v30 = vadd.f32 %v2246_v6, %v1959_v62 }
 0x2d3   :  { %v2242_v1 = vpop.permute.xlu1 %2241 }
 0x2d4   :  { %v2257_v61 = vrot.slane %v2250_v30, %v4535_v41  ;;  %v2261_v59 = vrot.slane %v2250_v30, %v4539_v36  ;;  %v2244_v23 = vrot.slane %v2242_v1, 2 }
 0x2d6   :  { %v2247_v35 = vsel %vm2245_vm11, %v2242_v1, %v2244_v23  ;;  %v2275_v0 = vsel %vm2274_vm12, %v2257_v61, 0.0  ;;  %v2276_v17 = vsel %vm2274_vm12, %v2261_v59, 0.0 }
 0x2d7   :  { %v2251_v38 = vadd.f32 %v2247_v35, %v1960_v3  ;;  %v2277_v11 = vadd.f32 %v2276_v17, %v2275_v0 }
 0x2d9   :  { %v2265_v7 = vrot.slane %v2251_v38, %v4535_v41  ;;  %v2269_v56 = vrot.slane %v2251_v38, %v4539_v36 }
 0x2db   :  { %v2278_v34 = vsel %vm2274_vm12, %v2265_v7, 0.0  ;;  %v2280_v20 = vsel %vm2274_vm12, %v2269_v56, 0.0  ;;  %v2362_v56 = vld [vmem:[%s4580_s0] sm:$0xff] }
 0x2dc   :  { %v2279_v10 = vadd.f32 %v2278_v34, %v2277_v11 }
 0x2de   :  { %v2281_v22 = vadd.f32 %v2280_v20, %v2279_v10  ;;  %v2363_v20 = vld [vmem:[%s4580_s0 + $0x8] sm:$0xff] }
 0x2e0   :  { %2282 = vadd.xlane.f32.xlu0 %v2281_v22 }
 0x36d   :  { %v2283_v4 = vpop.xlane.xlu0 %2282 }
 0x36e   :  { %v2284_v2 = vrot.slane %v2283_v4, 4 }
 0x370   :  { %v2285_v47 = vadd.f32 %v2284_v2, %v2283_v4 }
 0x372   :  { %v2286_v53 = vrot.slane %v2285_v47, 2 }
 0x374   :  { %v2287_v8 = vadd.f32 %v2286_v53, %v2285_v47 }
 0x376   :  { %v2288_v39 = vrot.slane %v2287_v8, 1 }
 0x378   :  { %v2289_v21 = vadd.f32 %v2288_v39, %v2287_v8 }
 0x37a   :  { %2618 = vpush %v2289_v21 }
 0x3ab   :  { %s2619_s3 = spop %2618 }
 0x3ac   :  { %v2291_v46 = vstv %s2619_s3 }
 0x3ad   :  { %v2293_v52 = vmul.f32 0.001953125, %v2291_v46 }
 0x3af   :  { %v2294_v16 = vsub.f32 %v2250_v30, %v2293_v52  ;;  %v2295_v51 = vsub.f32 %v2251_v38, %v2293_v52 }
 0x3b1   :  { %v2296_v37 = vmul.f32 %v2294_v16, %v2294_v16  ;;  %v2297_v49 = vmul.f32 %v2295_v51, %v2295_v51 }
 0x3b3   :  { %v2303_v12 = vrot.slane %v2296_v37, %v4535_v41  ;;  %v2307_v27 = vrot.slane %v2296_v37, %v4539_v36  ;;  %v2311_v42 = vrot.slane %v2297_v49, %v4535_v41  ;;  %v2315_v28 = vrot.slane %v2297_v49, %v4539_v36 }
 0x3b5   :  { %v2320_v31 = vsel %vm2274_vm12, %v2303_v12, 0.0  ;;  %v2321_v48 = vsel %vm2274_vm12, %v2307_v27, 0.0  ;;  %v2323_v45 = vsel %vm2274_vm12, %v2311_v42, 0.0  ;;  %v2325_v44 = vsel %vm2274_vm12, %v2315_v28, 0.0 }
 0x3b6   :  { %v2322_v24 = vadd.f32 %v2321_v48, %v2320_v31 }
 0x3b8   :  { %v2324_v50 = vadd.f32 %v2323_v45, %v2322_v24 }
 0x3ba   :  { %v2326_v43 = vadd.f32 %v2325_v44, %v2324_v50 }
 0x3bc   :  { %2327 = vadd.xlane.f32.xlu1 %v2326_v43 }
 0x449   :  { %v2328_v15 = vpop.xlane.xlu1 %2327 }
 0x44a   :  { %v2329_v60 = vrot.slane %v2328_v15, 4 }
 0x44c   :  { %v2330_v9 = vadd.f32 %v2329_v60, %v2328_v15 }
 0x44e   :  { %v2331_v63 = vrot.slane %v2330_v9, 2 }
 0x450   :  { %v2332_v14 = vadd.f32 %v2331_v63, %v2330_v9 }
 0x452   :  { %v2333_v26 = vrot.slane %v2332_v14, 1 }
 0x454   :  { %v2334_v57 = vadd.f32 %v2333_v26, %v2332_v14 }
 0x456   :  { %2620 = vpush %v2334_v57 }
 0x487   :  { %s2621_s28 = spop %2620 }
 0x488   :  { %v2336_v33 = vstv %s2621_s28 }
 0x489   :  { %v2337_v40 = vmul.f32 0.001953125, %v2336_v33 }
 0x48b   :  { %v2338_v18 = vadd.f32 0.001, %v2337_v40 }
 0x48d   :  { %2648 = vrsqrt.f32 %v2338_v18 }
 0x497   :  { %v2649_v25 = vpop.eup %2648 }
 0x498   :  { %v2340_v58 = vmul.f32 %v2649_v25, %v2294_v16  ;;  %v2341_v5 = vmul.f32 %v2649_v25, %v2295_v51 }
 0x49a   :  { %v2344_v55 = vmul.f32 %v2343_v54, %v2340_v58  ;;  %v2345_v62 = vmul.f32 %v2343_v54, %v2341_v5 }
 0x49c   :  { %v2348_v32 = vadd.f32 %v2347_v29, %v2344_v55  ;;  %v2349_v6 = vadd.f32 %v2347_v29, %v2345_v62 }
 0x49e   :  { %v2616_v19 = vmul.f32 -1.442695, %v2348_v32  ;;  %v2617_v30 = vmul.f32 -1.442695, %v2349_v6 }
 0x4a0   :  { %2650 = vpow2.f32 %v2616_v19 }
 0x4a1   :  { %2652 = vpow2.f32 %v2617_v30 }
 0x4aa   :  { %v2651_v13 = vpop.eup %2650 }
 0x4ab   :  { %v2653_v1 = vpop.eup %2652  ;;  %v2356_v61 = vadd.f32 1.0, %v2651_v13 }
 0x4ac   :  { %v2357_v59 = vadd.f32 1.0, %v2653_v1 }
 0x4ad   :  { %2654 = vrcp.f32 %v2356_v61 }
 0x4ae   :  { %2656 = vrcp.f32 %v2357_v59 }
 0x4b7   :  { %v2655_v23 = vpop.eup %2654 }
 0x4b8   :  { %v2657_v3 = vpop.eup %2656  ;;  %v2369_v35 = vrot.slane %v2655_v23, %v4535_v41  ;;  %v2373_v0 = vrot.slane %v2655_v23, %v4539_v36 }
 0x4b9   :  { %v2377_v17 = vrot.slane %v2657_v3, %v4535_v41  ;;  %v2381_v38 = vrot.slane %v2657_v3, %v4539_v36 }
 0x4ba   :  { %v2389_v11 = vrot.slane %v2369_v35, %v4535_v41  ;;  %v2393_v7 = vrot.slane %v2373_v0, %v4535_v41 }
 0x4bb   :  { %v2397_v34 = vrot.slane %v2377_v17, %v4535_v41  ;;  %v2401_v10 = vrot.slane %v2381_v38, %v4535_v41 }
 0x4bc   :  { %v2406_v22 = vcombine.low %v2389_v11, %v2393_v7 }
 0x4bd   :  { %v2407_v4 = vcombine.low %v2397_v34, %v2401_v10 }
 0x4be   :  { %v2410_v2 = vmul.f32 %v2406_v22, %v2362_v56 }
 0x4bf   :  { %v2411_v36 = vmul.f32 %v2407_v4, %v2363_v20 }
 0x4c0   :  { %2412 = vst [vmem:[%s4966_s6] sm:$0xff] %v2410_v2 }
 0x4c1   :  { %2413 = vst [vmem:[%s4966_s6 + $0x8] sm:$0xff] %v2411_v36 }
 0x4c2   :  { %2418 = vsyncpa [#allocation4], 1 }
 0x4c3   :  { %2419 = vsyncpa [#allocation6], 1 }

</bundles_post_ra>
